<compile_context>
chip_gen: v7x
topology: tpu7x:2x2x1
jax: 0.10.0
libtpu: 0.0.40
codegen_flags: <defaults>
</compile_context>

<pallas_src>
import functools

import jax
import jax.numpy as jnp
from jax.experimental import pallas as pl
from jax.experimental.pallas import tpu as pltpu

HIDDEN = 1024
LANE = 128
M_UNIT = 16  # bf16 packs 16 sublanes per vreg -> keep LHS token tiles 16-row aligned


def _round_up(a, b):
    return (a + b - 1) // b * b


def _vmem_limit_bytes():
    """Generation-aware scoped VMEM limit (v7x has only 64 MiB per TensorCore)."""
    try:
        info = pltpu.get_tpu_info()
        cap = getattr(info, "vmem_capacity_bytes", None)
        if cap is None:
            cap = getattr(info, "vmem_bytes", None)
        if cap:
            return max(32 << 20, min((int(cap) * 3) // 4, 96 << 20))
    except Exception:
        pass
    return 48 << 20  # safe on v5e / v6e / v7x


# -----------------------------------------------------------------------------
# One-time capability check: single-buffered (resident) grid-invariant operands.
# Probing trace+lower+compile of a tiny kernel at import time replaces the old
# per-call try/except around the real pallas_call.
# -----------------------------------------------------------------------------
def _detect_buffered_support():
    try:
        wspec = pl.BlockSpec((8, 128), lambda i: (0, 0), pipeline_mode=pl.Buffered(1))

        def _k(x_ref, w_ref, o_ref):
            o_ref[...] = x_ref[...] + w_ref[...]

        f = pl.pallas_call(
            _k,
            out_shape=jax.ShapeDtypeStruct((16, 128), jnp.float32),
            grid_spec=pltpu.PrefetchScalarGridSpec(
                num_scalar_prefetch=0,
                grid=(2,),
                in_specs=[pl.BlockSpec((8, 128), lambda i: (i, 0)), wspec],
                out_specs=pl.BlockSpec((8, 128), lambda i: (i, 0)),
            ),
        )
        jax.jit(f).lower(
            jax.ShapeDtypeStruct((16, 128), jnp.float32),
            jax.ShapeDtypeStruct((8, 128), jnp.float32),
        ).compile()
        return True
    except Exception:
        return False


_BUFFERED_WEIGHTS = _detect_buffered_support()


def _invariant_spec(shape, index_map):
    """BlockSpec for a grid-invariant operand: resident, single-buffered if supported."""
    if _BUFFERED_WEIGHTS:
        return pl.BlockSpec(shape, index_map, pipeline_mode=pl.Buffered(1))
    return pl.BlockSpec(shape, index_map)


def _choose_tile_m(M, per_row_bytes, resident_bytes, vmem_limit):
    """VMEM-budget-aware token tile (multiple of 16; single full-M step for small M)."""
    M = int(M)
    cap = 1024 if vmem_limit >= (64 << 20) else 512  # v5e/v6e afford bigger tiles
    avail = vmem_limit - resident_bytes - (4 << 20)
    if avail <= 0:
        fit = M_UNIT
    else:
        fit = max(M_UNIT, (avail // max(per_row_bytes, 1)) // M_UNIT * M_UNIT)
    tile = min(cap, fit)
    if tile >= M:
        return M  # one step; a full-M block is always legal, no tiny MXU tiles
    steps = -(-M // tile)  # balance steps so the tail block isn't tiny
    tile = _round_up(-(-M // steps), M_UNIT)
    tile = min(tile, (M // M_UNIT) * M_UNIT)
    return max(M_UNIT, tile)


# -----------------------------------------------------------------------------
# Kernels
# -----------------------------------------------------------------------------
def _fs_fused_kernel(x_ref, w1_ref, b1_ref, w2_ref, b2_ref, w3_ref, b3_ref, o_ref):
    # bf16 MXU operands, f32 accumulation; bias/ReLU/sigmoid epilogue stays f32
    # (v5e's VPU/EUP have no bf16 path).
    x = x_ref[...].astype(jnp.bfloat16)
    h1 = jnp.dot(x, w1_ref[...], preferred_element_type=jnp.float32)
    h1 = jnp.maximum(h1 + b1_ref[...], 0.0)
    h2 = jnp.dot(h1.astype(jnp.bfloat16), w2_ref[...],
                 preferred_element_type=jnp.float32)
    h2 = jnp.maximum(h2 + b2_ref[...], 0.0)
    z = jnp.dot(h2.astype(jnp.bfloat16), w3_ref[...],
                preferred_element_type=jnp.float32)
    o_ref[...] = jax.nn.sigmoid(z + b3_ref[...]).astype(o_ref.dtype)


def _fs_hidden_kernel(x_ref, w1_ref, b1_ref, w2_ref, b2_ref, h2_ref, acc_ref):
    # D-tiled path, stage 1: accumulate x @ W1 over K tiles into an f32 scratch,
    # then fuse bias/ReLU and the resident 1024x1024 second layer at the last step.
    k = pl.program_id(1)

    @pl.when(k == 0)
    def _():
        acc_ref[...] = jnp.zeros_like(acc_ref)

    acc_ref[...] += jnp.dot(x_ref[...].astype(jnp.bfloat16), w1_ref[...],
                            preferred_element_type=jnp.float32)

    @pl.when(k == pl.num_programs(1) - 1)
    def _():
        h1 = jnp.maximum(acc_ref[...] + b1_ref[...], 0.0)
        h2 = jnp.dot(h1.astype(jnp.bfloat16), w2_ref[...],
                     preferred_element_type=jnp.float32)
        h2_ref[...] = jnp.maximum(h2 + b2_ref[...], 0.0).astype(h2_ref.dtype)


def _fs_output_kernel(h2_ref, w3_ref, b3_ref, o_ref):
    # D-tiled path, stage 2: out[:, n-block] = sigmoid(H2 @ W3[:, n-block] + b3).
    z = jnp.dot(h2_ref[...], w3_ref[...], preferred_element_type=jnp.float32)
    o_ref[...] = jax.nn.sigmoid(z + b3_ref[...]).astype(o_ref.dtype)


# -----------------------------------------------------------------------------
# Jitted forward paths
# -----------------------------------------------------------------------------
@jax.jit
def _forward_fused(x, w1, b1, w2, b2, w3, b3):
    D = x.shape[-1]
    x2d = x.reshape(-1, D)
    M = x2d.shape[0]
    vmem_limit = _vmem_limit_bytes()
    buf = 1 if _BUFFERED_WEIGHTS else 2
    resident = buf * (2 * (2 * D * HIDDEN + HIDDEN * HIDDEN) + 4 * (2 * HIDDEN + D))
    per_row = 26 * D + 12 * HIDDEN  # 2x-buffered f32 x/out tiles + f32/bf16 temps
    tile_m = _choose_tile_m(M, per_row, resident, vmem_limit)

    cost = pl.CostEstimate(
        flops=2 * M * (2 * D * HIDDEN + HIDDEN * HIDDEN),
        transcendentals=M * D,
        bytes_accessed=8 * M * D + 2 * (2 * D * HIDDEN + HIDDEN * HIDDEN)
        + 4 * (2 * HIDDEN + D),
    )
    out = pl.pallas_call(
        _fs_fused_kernel,
        out_shape=jax.ShapeDtypeStruct((M, D), x.dtype),
        grid_spec=pltpu.PrefetchScalarGridSpec(
            num_scalar_prefetch=0,
            grid=(pl.cdiv(M, tile_m),),
            in_specs=[
                pl.BlockSpec((tile_m, D), lambda i: (i, 0)),         # x tile (pipelined)
                _invariant_spec((D, HIDDEN), lambda i: (0, 0)),      # W1 (bf16, resident)
                _invariant_spec((1, HIDDEN), lambda i: (0, 0)),      # b1 (f32)
                _invariant_spec((HIDDEN, HIDDEN), lambda i: (0, 0)), # W2 (bf16, resident)
                _invariant_spec((1, HIDDEN), lambda i: (0, 0)),      # b2 (f32)
                _invariant_spec((HIDDEN, D), lambda i: (0, 0)),      # W3 (bf16, resident)
                _invariant_spec((1, D), lambda i: (0, 0)),           # b3 (f32)
            ],
            out_specs=pl.BlockSpec((tile_m, D), lambda i: (i, 0)),
        ),
        compiler_params=pltpu.CompilerParams(
            dimension_semantics=("parallel",),
            vmem_limit_bytes=vmem_limit,
        ),
        cost_estimate=cost,
    )(x2d, w1, b1, w2, b2, w3, b3)
    return out.reshape(x.shape)


@functools.partial(jax.jit, static_argnames=("tile_d",))
def _forward_tiled(x, w1p, b1, w2, b2, w3, b3, *, tile_d):
    """Two-stage path for large input_size: K-tiled W1, N-tiled W3 (bounded VMEM)."""
    input_size = x.shape[-1]
    x2d = x.reshape(-1, input_size)
    M = x2d.shape[0]
    Dp = w1p.shape[0]  # contraction dim padded to a multiple of tile_d (done in prep)
    if Dp != input_size:
        # Only the contraction (K) side needs zero padding for correctness; the
        # N side relies on masked partial-block stores instead.
        x2d = jnp.pad(x2d, ((0, 0), (0, Dp - input_size)))

    vmem_limit = _vmem_limit_bytes()
    buf = 1 if _BUFFERED_WEIGHTS else 2

    # ---- stage 1: H2 = relu(relu(x @ W1 + b1) @ W2 + b2), K-tiled over Dp.
    resident_a = 4 * tile_d * HIDDEN + buf * (2 * HIDDEN * HIDDEN + 8 * HIDDEN)
    per_row_a = 10 * tile_d + 20 * HIDDEN
    tile_m = _choose_tile_m(M, per_row_a, resident_a, vmem_limit)
    cost_a = pl.CostEstimate(
        flops=2 * M * (Dp * HIDDEN + HIDDEN * HIDDEN),
        transcendentals=0,
        bytes_accessed=4 * M * Dp + 2 * M * HIDDEN
        + 2 * (Dp * HIDDEN + HIDDEN * HIDDEN) + 8 * HIDDEN,
    )
    h2 = pl.pallas_call(
        _fs_hidden_kernel,
        out_shape=jax.ShapeDtypeStruct((M, HIDDEN), jnp.bfloat16),
        grid_spec=pltpu.PrefetchScalarGridSpec(
            num_scalar_prefetch=0,
            grid=(pl.cdiv(M, tile_m), Dp // tile_d),
            in_specs=[
                pl.BlockSpec((tile_m, tile_d), lambda i, k: (i, k)),    # x K-tile
                pl.BlockSpec((tile_d, HIDDEN), lambda i, k: (k, 0)),    # W1 K-tile
                _invariant_spec((1, HIDDEN), lambda i, k: (0, 0)),      # b1
                _invariant_spec((HIDDEN, HIDDEN), lambda i, k: (0, 0)), # W2 (resident)
                _invariant_spec((1, HIDDEN), lambda i, k: (0, 0)),      # b2
            ],
            out_specs=pl.BlockSpec((tile_m, HIDDEN), lambda i, k: (i, 0)),
            scratch_shapes=[pltpu.VMEM((tile_m, HIDDEN), jnp.float32)],
        ),
        compiler_params=pltpu.CompilerParams(
            dimension_semantics=("parallel", "arbitrary"),
            vmem_limit_bytes=vmem_limit,
        ),
        cost_estimate=cost_a,
    )(x2d, w1p, b1, w2, b2)

    # ---- stage 2: out = sigmoid(H2 @ W3 + b3), N-tiled over input_size.
    resident_b = 4 * HIDDEN * tile_d + 8 * tile_d
    per_row_b = 4 * HIDDEN + 16 * tile_d
    tile_m2 = _choose_tile_m(M, per_row_b, resident_b, vmem_limit)
    cost_b = pl.CostEstimate(
        flops=2 * M * HIDDEN * input_size,
        transcendentals=M * input_size,
        bytes_accessed=2 * M * HIDDEN + 4 * M * input_size
        + 2 * HIDDEN * input_size + 4 * input_size,
    )
    out = pl.pallas_call(
        _fs_output_kernel,
        out_shape=jax.ShapeDtypeStruct((M, input_size), x.dtype),
        grid_spec=pltpu.PrefetchScalarGridSpec(
            num_scalar_prefetch=0,
            grid=(pl.cdiv(M, tile_m2), pl.cdiv(input_size, tile_d)),
            in_specs=[
                pl.BlockSpec((tile_m2, HIDDEN), lambda i, j: (i, 0)),   # H2 (bf16)
                pl.BlockSpec((HIDDEN, tile_d), lambda i, j: (0, j)),    # W3 N-tile
                pl.BlockSpec((1, tile_d), lambda i, j: (0, j)),         # b3 N-tile
            ],
            out_specs=pl.BlockSpec((tile_m2, tile_d), lambda i, j: (i, j)),
        ),
        compiler_params=pltpu.CompilerParams(
            dimension_semantics=("parallel", "parallel"),
            vmem_limit_bytes=vmem_limit,
        ),
        cost_estimate=cost_b,
    )(h2, w3, b3)
    return out.reshape(x.shape)


# -----------------------------------------------------------------------------
# Public API: one-time prep + dispatch
# -----------------------------------------------------------------------------
def prepare_params(params, *, force_d_tiling=False, tile_d=512):
    """One-time weight prep (bf16 casts, bias reshapes, optional K-padding of W1).

    Call once and keep the result alongside the params; the forward path is then a
    pure jitted reshape + pallas_call with no per-call pads/casts/syncs.
    """
    input_size = int(params["w1"].shape[0])
    vmem_limit = _vmem_limit_bytes()
    buf = 1 if _BUFFERED_WEIGHTS else 2
    fused_resident = buf * (2 * (2 * input_size * HIDDEN + HIDDEN * HIDDEN)
                            + 4 * (2 * HIDDEN + input_size))
    # Use the D-tiled (two-stage) path when resident bf16 W1/W3 would not leave
    # room for token tiles (matters on v7x's 64 MiB VMEM around input_size >= ~8K).
    use_tiled = force_d_tiling or fused_resident > vmem_limit - (16 << 20)
    use_tiled = use_tiled and input_size >= 2 * LANE

    tile_d = max(LANE, _round_up(int(tile_d), LANE))
    tile_d = min(tile_d, max(LANE, (input_size // LANE) * LANE))

    w1 = params["w1"]
    if use_tiled:
        Dp = _round_up(input_size, tile_d)
        if Dp != input_size:
            # Zero rows: no effect on x @ W1 (x is zero-padded to match at call time).
            w1 = jnp.pad(w1, ((0, Dp - input_size), (0, 0)))

    arrays = {
        "w1": w1.astype(jnp.bfloat16),
        "w2": params["w2"].astype(jnp.bfloat16),
        "w3": params["w3"].astype(jnp.bfloat16),
        "b1": params["b1"].reshape(1, HIDDEN).astype(jnp.float32),
        "b2": params["b2"].reshape(1, HIDDEN).astype(jnp.float32),
        "b3": params["b3"].reshape(1, input_size).astype(jnp.float32),
    }
    return {"mode": "tiled" if use_tiled else "fused",
            "tile_d": int(tile_d), "input_size": input_size, "arrays": arrays}


def feature_selection_forward(x, prep):
    """x: (..., input_size) float32. prep: output of prepare_params."""
    a = prep["arrays"]
    if prep["mode"] == "tiled":
        return _forward_tiled(x, a["w1"], a["b1"], a["w2"], a["b2"], a["w3"], a["b3"],
                              tile_d=prep["tile_d"])
    return _forward_fused(x, a["w1"], a["b1"], a["w2"], a["b2"], a["w3"], a["b3"])


# -----------------------------------------------------------------------------
# Reference / init / test
# -----------------------------------------------------------------------------
def init_params(key, input_size):
    """Deterministic init matching torch.nn.Linear shapes (stored transposed)."""
    ks = jax.random.split(key, 6)

    def linear_init(kw, kb, fan_in, fan_out):
        bound = 1.0 / jnp.sqrt(fan_in)
        w = jax.random.uniform(kw, (fan_in, fan_out), jnp.float32, -bound, bound)
        b = jax.random.uniform(kb, (fan_out,), jnp.float32, -bound, bound)
        return w, b

    w1, b1 = linear_init(ks[0], ks[1], input_size, HIDDEN)   # ln1
    w2, b2 = linear_init(ks[2], ks[3], HIDDEN, HIDDEN)       # ln2
    w3, b3 = linear_init(ks[4], ks[5], HIDDEN, input_size)   # weight
    return {"w1": w1, "b1": b1, "w2": w2, "b2": b2, "w3": w3, "b3": b3}


def reference_forward(x, p):
    h1 = jnp.maximum(x @ p["w1"] + p["b1"], 0.0)
    h2 = jnp.maximum(h1 @ p["w2"] + p["b2"], 0.0)
    return jax.nn.sigmoid(h2 @ p["w3"] + p["b3"])


if __name__ == "__main__":
    key = jax.random.PRNGKey(0)
    k_x, k_p = jax.random.split(key)

    # Case 1: batch=2, seq=8, input_size=128 (lane-aligned, single-step fused path).
    B, T, Din = 2, 8, 128
    x = jax.random.normal(k_x, (B, T, Din), dtype=jnp.float32)
    params = init_params(k_p, Din)
    prep = prepare_params(params)
    out = jax.block_until_ready(feature_selection_forward(x, prep))
    ref = reference_forward(x.reshape(-1, Din), params).reshape(x.shape)
    assert out.shape == (B, T, Din)
    # bf16 MXU operands vs f32 reference -> loosened tolerance (sigmoid-compressed).
    assert jnp.max(jnp.abs(out - ref)) < 2e-2, float(jnp.max(jnp.abs(out - ref)))

    # Case 2: non-128-multiple feature dim (full-dim blocks, masked lane stores).
    B2, T2, D2 = 2, 12, 192
    x2 = jax.random.normal(jax.random.PRNGKey(1), (B2, T2, D2), dtype=jnp.float32)
    p2 = init_params(jax.random.PRNGKey(2), D2)
    prep2 = prepare_params(p2)
    out2 = jax.block_until_ready(feature_selection_forward(x2, prep2))
    ref2 = reference_forward(x2.reshape(-1, D2), p2).reshape(x2.shape)
    assert out2.shape == (B2, T2, D2)
    assert jnp.max(jnp.abs(out2 - ref2)) < 2e-2, float(jnp.max(jnp.abs(out2 - ref2)))

    # Case 3: force the D-tiled two-stage path (used when bf16 W1/W3 would not fit
    # the v7x VMEM budget for very large input_size): K-tiled W1 + N-tiled W3.
    B3, T3, D3 = 2, 20, 320
    x3 = jax.random.normal(jax.random.PRNGKey(3), (B3, T3, D3), dtype=jnp.float32)
    p3 = init_params(jax.random.PRNGKey(4), D3)
    prep3 = prepare_params(p3, force_d_tiling=True, tile_d=128)
    out3 = jax.block_until_ready(feature_selection_forward(x3, prep3))
    ref3 = reference_forward(x3.reshape(-1, D3), p3).reshape(x3.shape)
    assert out3.shape == (B3, T3, D3)
    assert jnp.max(jnp.abs(out3 - ref3)) < 2e-2, float(jnp.max(jnp.abs(out3 - ref3)))

    # TODO(synk): classify()/calc_loss() heads are not exercised by forward(); omitted.
    print("KERNEL_OK")
</pallas_src>

<mosaic_0001>
module attributes {stable_mosaic.version = 11 : i64} {
  func.func @_fs_fused_kernel(%arg0: i32, %arg1: memref<16x128xf32, #tpu.memory_space<vmem>>, %arg2: memref<128x1024xbf16, #tpu.memory_space<vmem>>, %arg3: memref<1x1024xf32, #tpu.memory_space<vmem>>, %arg4: memref<1024x1024xbf16, #tpu.memory_space<vmem>>, %arg5: memref<1x1024xf32, #tpu.memory_space<vmem>>, %arg6: memref<1024x128xbf16, #tpu.memory_space<vmem>>, %arg7: memref<1x128xf32, #tpu.memory_space<vmem>>, %arg8: memref<16x128xf32, #tpu.memory_space<vmem>>) attributes {dimension_semantics = [#tpu.dimension_semantics<parallel>], iteration_bounds = array<i64: 1>, scalar_prefetch = 0 : i64, scratch_operands = 0 : i64, tpu.core_type = #tpu.core_type<tc>, window_params = [{transform_indices = @transform_0, window_bounds = array<i64: 16, 128>}, {pipeline_mode = #tpu.pipeline_mode<synchronous>, transform_indices = @transform_1, window_bounds = array<i64: 128, 1024>}, {pipeline_mode = #tpu.pipeline_mode<synchronous>, transform_indices = @transform_2, window_bounds = array<i64: 1, 1024>}, {pipeline_mode = #tpu.pipeline_mode<synchronous>, transform_indices = @transform_3, window_bounds = array<i64: 1024, 1024>}, {pipeline_mode = #tpu.pipeline_mode<synchronous>, transform_indices = @transform_4, window_bounds = array<i64: 1, 1024>}, {pipeline_mode = #tpu.pipeline_mode<synchronous>, transform_indices = @transform_5, window_bounds = array<i64: 1024, 128>}, {pipeline_mode = #tpu.pipeline_mode<synchronous>, transform_indices = @transform_6, window_bounds = array<i64: 1, 128>}, {transform_indices = @transform_7, window_bounds = array<i64: 16, 128>}]} {
    %c0 = arith.constant 0 : index
    %c0_0 = arith.constant 0 : index
    %0 = vector.load %arg1[%c0, %c0_0] : memref<16x128xf32, #tpu.memory_space<vmem>>, vector<16x128xf32>
    %1 = arith.truncf %0 : vector<16x128xf32> to vector<16x128xbf16>
    %c0_1 = arith.constant 0 : index
    %c0_2 = arith.constant 0 : index
    %2 = vector.load %arg2[%c0_1, %c0_2] : memref<128x1024xbf16, #tpu.memory_space<vmem>>, vector<128x1024xbf16>
    %cst = arith.constant dense<0.000000e+00> : vector<16x1024xf32>
    %3 = tpu.matmul %1, %2, %cst {dimension_numbers = #tpu.dot_dimension_numbers<[1], [0], [0], [1], [0, 0, 1, 1], [], []>} : vector<16x128xbf16>, vector<128x1024xbf16>, vector<16x1024xf32> -> vector<16x1024xf32>
    %c0_3 = arith.constant 0 : index
    %c0_4 = arith.constant 0 : index
    %4 = vector.load %arg3[%c0_3, %c0_4] : memref<1x1024xf32, #tpu.memory_space<vmem>>, vector<1x1024xf32>
    %5 = vector.broadcast %4 : vector<1x1024xf32> to vector<16x1024xf32>
    %6 = arith.addf %3, %5 : vector<16x1024xf32>
    %cst_5 = arith.constant 0.000000e+00 : f32
    %7 = vector.broadcast %cst_5 : f32 to vector<16x1024xf32>
    %8 = arith.maximumf %6, %7 : vector<16x1024xf32>
    %9 = arith.truncf %8 : vector<16x1024xf32> to vector<16x1024xbf16>
    %c0_6 = arith.constant 0 : index
    %c0_7 = arith.constant 0 : index
    %10 = vector.load %arg4[%c0_6, %c0_7] : memref<1024x1024xbf16, #tpu.memory_space<vmem>>, vector<1024x1024xbf16>
    %cst_8 = arith.constant dense<0.000000e+00> : vector<16x1024xf32>
    %11 = tpu.matmul %9, %10, %cst_8 {dimension_numbers = #tpu.dot_dimension_numbers<[1], [0], [0], [1], [0, 0, 1, 1], [], []>} : vector<16x1024xbf16>, vector<1024x1024xbf16>, vector<16x1024xf32> -> vector<16x1024xf32>
    %c0_9 = arith.constant 0 : index
    %c0_10 = arith.constant 0 : index
    %12 = vector.load %arg5[%c0_9, %c0_10] : memref<1x1024xf32, #tpu.memory_space<vmem>>, vector<1x1024xf32>
    %13 = vector.broadcast %12 : vector<1x1024xf32> to vector<16x1024xf32>
    %14 = arith.addf %11, %13 : vector<16x1024xf32>
    %cst_11 = arith.constant 0.000000e+00 : f32
    %15 = vector.broadcast %cst_11 : f32 to vector<16x1024xf32>
    %16 = arith.maximumf %14, %15 : vector<16x1024xf32>
    %17 = arith.truncf %16 : vector<16x1024xf32> to vector<16x1024xbf16>
    %c0_12 = arith.constant 0 : index
    %c0_13 = arith.constant 0 : index
    %18 = vector.load %arg6[%c0_12, %c0_13] : memref<1024x128xbf16, #tpu.memory_space<vmem>>, vector<1024x128xbf16>
    %cst_14 = arith.constant dense<0.000000e+00> : vector<16x128xf32>
    %19 = tpu.matmul %17, %18, %cst_14 {dimension_numbers = #tpu.dot_dimension_numbers<[1], [0], [0], [1], [0, 0, 1, 1], [], []>} : vector<16x1024xbf16>, vector<1024x128xbf16>, vector<16x128xf32> -> vector<16x128xf32>
    %c0_15 = arith.constant 0 : index
    %c0_16 = arith.constant 0 : index
    %20 = vector.load %arg7[%c0_15, %c0_16] : memref<1x128xf32, #tpu.memory_space<vmem>>, vector<1x128xf32>
    %21 = vector.broadcast %20 : vector<1x128xf32> to vector<16x128xf32>
    %22 = arith.addf %19, %21 : vector<16x128xf32>
    %23 = arith.negf %22 : vector<16x128xf32>
    %24 = math.exp %23 : vector<16x128xf32>
    %cst_17 = arith.constant 1.000000e+00 : f32
    %25 = vector.broadcast %cst_17 : f32 to vector<16x128xf32>
    %26 = arith.addf %25, %24 : vector<16x128xf32>
    %27 = arith.divf %25, %26 : vector<16x128xf32>
    %c0_18 = arith.constant 0 : index
    %c0_19 = arith.constant 0 : index
    %28 = vector.load %arg8[%c0_18, %c0_19] : memref<16x128xf32, #tpu.memory_space<vmem>>, vector<16x128xf32>
    tpu.vector_store %arg8[%c0_18, %c0_19], %27 {strides = array<i32>} : memref<16x128xf32, #tpu.memory_space<vmem>>, vector<16x128xf32>,
    return
  }
  func.func @transform_0(%arg0: i32) -> (i32, i32) {
    %c0_i32 = arith.constant 0 : i32
    %c0_i32_0 = arith.constant 0 : i32
    return %arg0, %c0_i32 : i32, i32
  }
  func.func @transform_1(%arg0: i32) -> (i32, i32) {
    %c0_i32 = arith.constant 0 : i32
    %c0_i32_0 = arith.constant 0 : i32
    %c0_i32_1 = arith.constant 0 : i32
    return %c0_i32, %c0_i32_0 : i32, i32
  }
  func.func @transform_2(%arg0: i32) -> (i32, i32) {
    %c0_i32 = arith.constant 0 : i32
    %c0_i32_0 = arith.constant 0 : i32
    %c0_i32_1 = arith.constant 0 : i32
    return %c0_i32, %c0_i32_0 : i32, i32
  }
  func.func @transform_3(%arg0: i32) -> (i32, i32) {
    %c0_i32 = arith.constant 0 : i32
    %c0_i32_0 = arith.constant 0 : i32
    %c0_i32_1 = arith.constant 0 : i32
    return %c0_i32, %c0_i32_0 : i32, i32
  }
  func.func @transform_4(%arg0: i32) -> (i32, i32) {
    %c0_i32 = arith.constant 0 : i32
    %c0_i32_0 = arith.constant 0 : i32
    %c0_i32_1 = arith.constant 0 : i32
    return %c0_i32, %c0_i32_0 : i32, i32
  }
  func.func @transform_5(%arg0: i32) -> (i32, i32) {
    %c0_i32 = arith.constant 0 : i32
    %c0_i32_0 = arith.constant 0 : i32
    %c0_i32_1 = arith.constant 0 : i32
    return %c0_i32, %c0_i32_0 : i32, i32
  }
  func.func @transform_6(%arg0: i32) -> (i32, i32) {
    %c0_i32 = arith.constant 0 : i32
    %c0_i32_0 = arith.constant 0 : i32
    %c0_i32_1 = arith.constant 0 : i32
    return %c0_i32, %c0_i32_0 : i32, i32
  }
  func.func @transform_7(%arg0: i32) -> (i32, i32) {
    %c0_i32 = arith.constant 0 : i32
    %c0_i32_0 = arith.constant 0 : i32
    return %arg0, %c0_i32 : i32, i32
  }
}

</mosaic_0001>

<bundles_post_ra>
// kernel: _forward_fused.1
= control target key start
LH: loop header
LB: loop body
LE: loop exit
PB: predicated region body
PF: predicated region fallthrough
CT: control target
= control target key end

     0   :  { %12 = vsyncpa [#allocation3], 0  ;;  %s6658_s0 = inlined_call_operand.hbm [shape: f32[16,128], index: 0, kind: input, shape index: {}]   ;;  %s6659_s1 = inlined_call_operand.hbm [shape: bf16[128,1024], index: 1, kind: input, shape index: {}]   ;;  %s6660_s2 = inlined_call_operand.hbm [shape: f32[1,1024], index: 2, kind: input, shape index: {}]   ;;  %s6661_s3 = inlined_call_operand.hbm [shape: bf16[1024,1024], index: 3, kind: input, shape index: {}]   ;;  %s6662_s4 = inlined_call_operand.hbm [shape: f32[1,1024], index: 4, kind: input, shape index: {}]   ;;  %s6663_s5 = inlined_call_operand.hbm [shape: bf16[1024,128], index: 5, kind: input, shape index: {}]   ;;  %s6664_s6 = inlined_call_operand.hbm [shape: f32[1,128], index: 6, kind: input, shape index: {}]   ;;  %s6665_s7 = inlined_call_operand.hbm [shape: f32[16,128], index: 7, kind: output, shape index: {}]  }
   0x1   :  { %13 = vsyncpa [#allocation6], 0 }
   0x2   :  { %14 = vsyncpa [#allocation9], 0 }
   0x3   :  { %15 = vsyncpa [#allocation12], 0 }
   0x4   :  { %16 = vsyncpa [#allocation4], 0  ;;  %s6353_s24 = smov [#allocation5]   ;;  %s6167_s28 = scalar_lea.hbm %s6659_s1, 8192 }
   0x5   :  { %s34_s25 = sshll.u32 %s6353_s24, 4  ;;  %p6168_p0 = scmp.ne.s32.totalorder %s6659_s1, %s6167_s28  ;;  %s35_s25 = int_to_ptr.vmem [resolvable:$true] %s34_s25 }
   0x6   :  { %p6171_p1 = scmp.lt.u32.totalorder %s6167_s28, %s6659_s1 }
   0x8   :  { %p6173_p2 = pnand %p6171_p1, %p6168_p0 }
   0xa   :  { %6176 = shalt.err (!%p6173_p2)
}
   0xb   :  { %s6177_s10 = scalar_lea.vmem %s35_s25, 8192  ;;  %p6182_p4 = scmp.lt.s32.totalorder %s35_s25, %s35_s25 }
   0xc   :  { %p6178_p3 = scmp.ne.s32.totalorder %s35_s25, %s6177_s10  ;;  %p6183_p5 = scmp.lt.s32.totalorder %s6177_s10, %s6177_s10 }
   0xe   :  { %p6184_p6 = por %p6183_p5, %p6182_p4 }
  0x10   :  { %p6185_p7 = pnand %p6184_p6, %p6178_p3 }
  0x12   :  { %6188 = shalt.err (!%p6185_p7)
}
  0x13   :  { %s6354_s11 = smov 512   ;;  %s6355_s12 = smov 32  }
  0x14   :  { %40 = dma.hbm_to_vmem [thread:$0]  %s6659_s1, 8192, %s35_s25, [#allocation6], %s6354_s11, %s6354_s11, %s6355_s12  }
  0x15   :  { %s6356_s15 = smov [#allocation8]   ;;  %s6357_s17 = smov [#allocation11]  }
  0x16   :  { %s56_s16 = sshll.u32 %s6356_s15, 4  ;;  %s78_s18 = sshll.u32 %s6357_s17, 4  ;;  %s57_s16 = int_to_ptr.vmem [resolvable:$true] %s56_s16  ;;  %s79_s18 = int_to_ptr.vmem [resolvable:$true] %s78_s18 }
  0x17   :  { %s6189_s21 = scalar_lea.hbm %s6661_s3, 65536 }
  0x18   :  { %p6190_p8 = scmp.ne.s32.totalorder %s6661_s3, %s6189_s21  ;;  %p6193_p9 = scmp.lt.u32.totalorder %s6189_s21, %s6661_s3 }
  0x1a   :  { %p6195_p10 = pnand %p6193_p9, %p6190_p8 }
  0x1c   :  { %6198 = shalt.err (!%p6195_p10)
}
  0x1d   :  { %s6199_s1 = scalar_lea.vmem %s57_s16, 65536  ;;  %p6204_p12 = scmp.lt.s32.totalorder %s57_s16, %s57_s16 }
  0x1e   :  { %p6200_p11 = scmp.ne.s32.totalorder %s57_s16, %s6199_s1  ;;  %p6205_p13 = scmp.lt.s32.totalorder %s6199_s1, %s6199_s1 }
  0x20   :  { %p6206_p0 = por %p6205_p13, %p6204_p12 }
  0x22   :  { %p6207_p1 = pnand %p6206_p0, %p6200_p11 }
  0x24   :  { %6210 = shalt.err (!%p6207_p1)
}
  0x25   :  { %62 = dma.hbm_to_vmem [thread:$0]  %s6661_s3, 65536, %s57_s16, [#allocation9], %s6354_s11, %s6354_s11, %s6355_s12  }
  0x26   :  { %s6211_s30 = scalar_lea.hbm %s6663_s5, 8192 }
  0x27   :  { %p6212_p2 = scmp.ne.s32.totalorder %s6663_s5, %s6211_s30  ;;  %p6215_p3 = scmp.lt.u32.totalorder %s6211_s30, %s6663_s5 }
  0x29   :  { %p6217_p4 = pnand %p6215_p3, %p6212_p2 }
  0x2b   :  { %6220 = shalt.err (!%p6217_p4)
}
  0x2c   :  { %s6221_s14 = scalar_lea.vmem %s79_s18, 8192  ;;  %p6226_p6 = scmp.lt.s32.totalorder %s79_s18, %s79_s18 }
  0x2d   :  { %p6222_p5 = scmp.ne.s32.totalorder %s79_s18, %s6221_s14  ;;  %p6227_p7 = scmp.lt.s32.totalorder %s6221_s14, %s6221_s14 }
  0x2f   :  { %p6228_p8 = por %p6227_p7, %p6226_p6 }
  0x31   :  { %p6229_p9 = pnand %p6228_p8, %p6222_p5 }
  0x33   :  { %6232 = shalt.err (!%p6229_p9)
}
  0x34   :  { %s6358_s3 = smov 64   ;;  %s6359_s11 = smov 4  }
  0x35   :  { %84 = dma.hbm_to_vmem [thread:$0]  %s6663_s5, 8192, %s79_s18, [#allocation12], %s6358_s3, %s6358_s3, %s6359_s11  }
  0x36   :  { %s6360_s16 = smov [#allocation2]   ;;  %s6233_s21 = scalar_lea.hbm %s6658_s0, 256 }
  0x37   :  { %s22_s17 = sshll.u32 %s6360_s16, 4  ;;  %p6234_p10 = scmp.ne.s32.totalorder %s6658_s0, %s6233_s21  ;;  %s23_s17 = int_to_ptr.vmem [resolvable:$true] %s22_s17 }
  0x38   :  { %p6237_p11 = scmp.lt.u32.totalorder %s6233_s21, %s6658_s0 }
  0x3a   :  { %p6239_p12 = pnand %p6237_p11, %p6234_p10 }
  0x3c   :  { %6242 = shalt.err (!%p6239_p12)
}
  0x3d   :  { %s6243_s1 = scalar_lea.vmem %s23_s17, 256  ;;  %p6248_p0 = scmp.lt.s32.totalorder %s23_s17, %s23_s17 }
  0x3e   :  { %p6244_p13 = scmp.ne.s32.totalorder %s23_s17, %s6243_s1  ;;  %p6249_p1 = scmp.lt.s32.totalorder %s6243_s1, %s6243_s1 }
  0x40   :  { %p6250_p2 = por %p6249_p1, %p6248_p0 }
  0x42   :  { %p6251_p3 = pnand %p6250_p2, %p6244_p13 }
  0x44   :  { %6254 = shalt.err (!%p6251_p3)
}
  0x45   :  { %s6361_s5 = smov 128   ;;  %s6362_s18 = smov 8  }
  0x46   :  { %28 = dma.hbm_to_vmem [thread:$0]  %s6658_s0, 256, %s23_s17, [#allocation3], %s6361_s5, %s6361_s5, %s6362_s18  }
  0x47   :  { %s6363_s28 = smov [#allocation7]   ;;  %s6364_s30 = smov [#allocation10]  }
  0x48   :  { %s47_s29 = sshll.u32 %s6363_s28, 4  ;;  %s69_s8 = sshll.u32 %s6364_s30, 4  ;;  %s48_s29 = int_to_ptr.vmem [resolvable:$true] %s47_s29  ;;  %s70_s8 = int_to_ptr.vmem [resolvable:$true] %s69_s8 }
  0x49   :  { %s6255_s13 = scalar_lea.hbm %s6660_s2, 128 }
  0x4a   :  { %p6256_p4 = scmp.ne.s32.totalorder %s6660_s2, %s6255_s13  ;;  %p6259_p5 = scmp.lt.u32.totalorder %s6255_s13, %s6660_s2 }
  0x4c   :  { %p6261_p6 = pnand %p6259_p5, %p6256_p4 }
  0x4e   :  { %6264 = shalt.err (!%p6261_p6)
}
  0x4f   :  { %s6265_s0 = scalar_lea.vmem %s48_s29, 128  ;;  %p6270_p8 = scmp.lt.s32.totalorder %s48_s29, %s48_s29 }
  0x50   :  { %p6266_p7 = scmp.ne.s32.totalorder %s48_s29, %s6265_s0  ;;  %p6271_p9 = scmp.lt.s32.totalorder %s6265_s0, %s6265_s0 }
  0x52   :  { %p6272_p10 = por %p6271_p9, %p6270_p8 }
  0x54   :  { %p6273_p11 = pnand %p6272_p10, %p6266_p7 }
  0x56   :  { %6276 = shalt.err (!%p6273_p11)
}
  0x57   :  { %50 = dma.hbm_to_vmem [thread:$0]  %s6660_s2, 128, %s48_s29, [#allocation6]  }
  0x58   :  { %s6277_s20 = scalar_lea.hbm %s6662_s4, 128 }
  0x59   :  { %p6278_p12 = scmp.ne.s32.totalorder %s6662_s4, %s6277_s20  ;;  %p6281_p13 = scmp.lt.u32.totalorder %s6277_s20, %s6662_s4 }
  0x5b   :  { %p6283_p0 = pnand %p6281_p13, %p6278_p12 }
  0x5d   :  { %6286 = shalt.err (!%p6283_p0)
}
  0x5e   :  { %s6287_s26 = scalar_lea.vmem %s70_s8, 128  ;;  %p6292_p2 = scmp.lt.s32.totalorder %s70_s8, %s70_s8 }
  0x5f   :  { %p6288_p1 = scmp.ne.s32.totalorder %s70_s8, %s6287_s26  ;;  %p6293_p3 = scmp.lt.s32.totalorder %s6287_s26, %s6287_s26 }
  0x61   :  { %p6294_p4 = por %p6293_p3, %p6292_p2 }
  0x63   :  { %p6295_p5 = pnand %p6294_p4, %p6288_p1 }
  0x65   :  { %6298 = shalt.err (!%p6295_p5)
}
  0x66   :  { %72 = dma.hbm_to_vmem [thread:$0]  %s6662_s4, 128, %s70_s8, [#allocation9]  }
  0x67   :  { %s6365_s25 = smov [#allocation13]   ;;  %s6299_s30 = scalar_lea.hbm %s6664_s6, 16 }
  0x68   :  { %s91_s27 = sshll.u32 %s6365_s25, 4  ;;  %p6300_p6 = scmp.ne.s32.totalorder %s6664_s6, %s6299_s30  ;;  %s92_s27 = int_to_ptr.vmem [resolvable:$true] %s91_s27 }
  0x69   :  { %p6303_p7 = scmp.lt.u32.totalorder %s6299_s30, %s6664_s6 }
  0x6b   :  { %p6305_p8 = pnand %p6303_p7, %p6300_p6 }
  0x6d   :  { %6308 = shalt.err (!%p6305_p8)
}
  0x6e   :  { %s6309_s3 = scalar_lea.vmem %s92_s27, 16  ;;  %s6313_s4 = scalar_lea.vmem %s92_s27, 32 }
  0x6f   :  { %p6310_p9 = scmp.ne.s32.totalorder %s92_s27, %s6309_s3  ;;  %p6314_p10 = scmp.lt.s32.totalorder %s92_s27, %s92_s27 }
  0x70   :  { %p6315_p11 = scmp.lt.s32.totalorder %s6313_s4, %s6309_s3 }
  0x72   :  { %p6316_p12 = por %p6315_p11, %p6314_p10 }
  0x74   :  { %p6317_p13 = pnand %p6316_p12, %p6310_p9 }
  0x76   :  { %6320 = shalt.err (!%p6317_p13)
}
  0x77   :  { %94 = dma.hbm_to_vmem [thread:$0]  %s6664_s6, 16, %s92_s27, [#allocation12]  }
  0x78   :  { %6343 = dma.done.wait [#allocation3], 256  }
  0x79   :  { %6344 = vsyncadd [#allocation3], 4294967040 }
  0x7a   :  { %6345 = dma.done.wait [#allocation6], 8320  }
  0x7b   :  { %6346 = vsyncadd [#allocation6], 4294958976 }
  0x7c   :  { %6347 = dma.done.wait [#allocation9], 65664  }
  0x7d   :  { %6348 = vsyncadd [#allocation9], 4294901632 }
  0x7e   :  { %6349 = dma.done.wait [#allocation12], 8208  }
  0x7f   :  { %6350 = vsyncadd [#allocation12], 4294959088  ;;  %v6366_v0 = vmov 0   ;;  %v120_v1 = vld [vmem:[#allocation5] sm:$0xff]  ;;  %v121_v14 = vld [vmem:[#allocation5 + $0x8] sm:$0xff]  ;;  %s6367_s6 = smov [#allocation14]  }
  0x80   :  { %578 = vmatprep.mubr.bf16.mxu0 %v6366_v0  ;;  %621 = vmatprep.mubr.bf16.mxu1 %v6366_v0  ;;  %v124_v2 = vld [vmem:[#allocation5 + $0x20] sm:$0xff]  ;;  %v125_v15 = vld [vmem:[#allocation5 + $0x28] sm:$0xff]  ;;  %v122_v58 = vld [vmem:[#allocation5 + $0x10] sm:$0xff]  ;;  %s5270_s12 = sshll.u32 %s6367_s6, 4  ;;  %s5271_s12 = int_to_ptr.vmem [resolvable:$true] %s5270_s12 }
  0x81   :  { %v128_v3 = vld [vmem:[#allocation5 + $0x40] sm:$0xff]  ;;  %v5286_v4 = vcombine.high %v120_v1, %v124_v2  ;;  %v5285_v5 = vcombine.low %v120_v1, %v124_v2  ;;  %v129_v16 = vld [vmem:[#allocation5 + $0x48] sm:$0xff]  ;;  %v5288_v17 = vcombine.high %v121_v14, %v125_v15  ;;  %v5287_v18 = vcombine.low %v121_v14, %v125_v15  ;;  %v126_v59 = vld [vmem:[#allocation5 + $0x30] sm:$0xff]  ;;  %s6321_s0 = scalar_lea.vmem %s5271_s12, 256  ;;  %p6326_p1 = scmp.lt.s32.totalorder %s5271_s12, %s5271_s12 }
  0x82   :  { %v132_v6 = vld [vmem:[#allocation5 + $0x60] sm:$0xff]  ;;  %v133_v19 = vld [vmem:[#allocation5 + $0x68] sm:$0xff]  ;;  %v117_v60 = vld [vmem:[#allocation2] sm:$0xff]  ;;  %p6322_p0 = scmp.ne.s32.totalorder %s5271_s12, %s6321_s0  ;;  %p6327_p2 = scmp.lt.s32.totalorder %s6321_s0, %s6321_s0 }
  0x83   :  { %v5294_v7 = vcombine.high %v128_v3, %v132_v6  ;;  %v136_v8 = vld [vmem:[#allocation5 + $0x80] sm:$0xff]  ;;  %546 = vmatprep.subr.bf16.mxu0 %v5286_v4  ;;  %v5293_v10 = vcombine.low %v128_v3, %v132_v6  ;;  %v5296_v21 = vcombine.high %v129_v16, %v133_v19  ;;  %v137_v22 = vld [vmem:[#allocation5 + $0x88] sm:$0xff]  ;;  %589 = vmatprep.subr.bf16.mxu1 %v5288_v17  ;;  %v118_v63 = vld [vmem:[#allocation2 + $0x8] sm:$0xff] }
  0x84   :  { %v140_v9 = vld [vmem:[#allocation5 + $0xa0] sm:$0xff]  ;;  %547 = vmatpush1.bf16.msra.mxu0 %v5285_v5  ;;  %v141_v23 = vld [vmem:[#allocation5 + $0xa8] sm:$0xff]  ;;  %590 = vmatpush1.bf16.msra.mxu1 %v5287_v18  ;;  %v5295_v27 = vcombine.low %v129_v16, %v133_v19  ;;  %v5290_v3 = vcombine.high %v122_v58, %v126_v59  ;;  %v130_v5 = vld [vmem:[#allocation5 + $0x50] sm:$0xff]  ;;  %p6328_p3 = por %p6327_p2, %p6326_p1 }
  0x85   :  { %548 = vmatprep.subr.bf16.mxu0 %v5294_v7  ;;  %v5302_v11 = vcombine.high %v136_v8, %v140_v9  ;;  %v144_v12 = vld [vmem:[#allocation5 + $0xc0] sm:$0xff]  ;;  %v5301_v20 = vcombine.low %v136_v8, %v140_v9  ;;  %591 = vmatprep.subr.bf16.mxu1 %v5296_v21  ;;  %v5304_v28 = vcombine.high %v137_v22, %v141_v23  ;;  %v145_v30 = vld [vmem:[#allocation5 + $0xc8] sm:$0xff]  ;;  %v134_v6 = vld [vmem:[#allocation5 + $0x70] sm:$0xff] }
  0x86   :  { %v148_v13 = vld [vmem:[#allocation5 + $0xe0] sm:$0xff]  ;;  %v149_v31 = vld [vmem:[#allocation5 + $0xe8] sm:$0xff]  ;;  %v5303_v35 = vcombine.low %v137_v22, %v141_v23  ;;  %v6497_v7 = vpack.c.bf16 %v118_v63, %v117_v60  ;;  %v5289_v9 = vcombine.low %v122_v58, %v126_v59  ;;  %v138_v14 = vld [vmem:[#allocation5 + $0x90] sm:$0xff]  ;;  %v5297_v17 = vcombine.low %v130_v5, %v134_v6  ;;  %p6329_p4 = pnand %p6328_p3, %p6322_p0 }
  0x87   :  { %v5310_v24 = vcombine.high %v144_v12, %v148_v13  ;;  %v152_v25 = vld [vmem:[#allocation5 + $0x100] sm:$0xff]  ;;  %v5309_v29 = vcombine.low %v144_v12, %v148_v13  ;;  %v5312_v36 = vcombine.high %v145_v30, %v149_v31  ;;  %v153_v38 = vld [vmem:[#allocation5 + $0x108] sm:$0xff]  ;;  %v5311_v43 = vcombine.low %v145_v30, %v149_v31  ;;  %v142_v15 = vld [vmem:[#allocation5 + $0xb0] sm:$0xff] }
  0x88   :  { %549 = vmatpush1.bf16.msra.mxu0 %v5293_v10  ;;  %v156_v26 = vld [vmem:[#allocation5 + $0x120] sm:$0xff]  ;;  %592 = vmatpush1.bf16.msra.mxu1 %v5295_v27  ;;  %v157_v39 = vld [vmem:[#allocation5 + $0x128] sm:$0xff]  ;;  %v123_v10 = vld [vmem:[#allocation5 + $0x18] sm:$0xff]  ;;  %v5298_v12 = vcombine.high %v130_v5, %v134_v6 }
  0x89   :  { %550 = vmatprep.subr.bf16.mxu0 %v5302_v11  ;;  %v5318_v32 = vcombine.high %v152_v25, %v156_v26  ;;  %v160_v33 = vld [vmem:[#allocation5 + $0x140] sm:$0xff]  ;;  %593 = vmatprep.subr.bf16.mxu1 %v5304_v28  ;;  %v5317_v37 = vcombine.low %v152_v25, %v156_v26  ;;  %v5320_v44 = vcombine.high %v153_v38, %v157_v39  ;;  %v161_v46 = vld [vmem:[#allocation5 + $0x148] sm:$0xff]  ;;  %v127_v11 = vld [vmem:[#allocation5 + $0x38] sm:$0xff] }
  0x8a   :  { %v164_v34 = vld [vmem:[#allocation5 + $0x160] sm:$0xff]  ;;  %v165_v47 = vld [vmem:[#allocation5 + $0x168] sm:$0xff]  ;;  %v5319_v51 = vcombine.low %v153_v38, %v157_v39  ;;  %v5292_v16 = vcombine.high %v123_v10, %v127_v11  ;;  %v131_v18 = vld [vmem:[#allocation5 + $0x58] sm:$0xff]  ;;  %v5291_v23 = vcombine.low %v123_v10, %v127_v11  ;;  %v5305_v25 = vcombine.low %v138_v14, %v142_v15 }
  0x8b   :  { %v5326_v40 = vcombine.high %v160_v33, %v164_v34  ;;  %v168_v41 = vld [vmem:[#allocation5 + $0x180] sm:$0xff]  ;;  %v5325_v45 = vcombine.low %v160_v33, %v164_v34  ;;  %v5328_v52 = vcombine.high %v161_v46, %v165_v47  ;;  %v169_v54 = vld [vmem:[#allocation5 + $0x188] sm:$0xff]  ;;  %v5327_v57 = vcombine.low %v161_v46, %v165_v47  ;;  %v135_v19 = vld [vmem:[#allocation5 + $0x78] sm:$0xff] }
  0x8c   :  { %551 = vmatpush1.bf16.msra.mxu0 %v5301_v20  ;;  %v172_v42 = vld [vmem:[#allocation5 + $0x1a0] sm:$0xff]  ;;  %594 = vmatpush1.bf16.msra.mxu1 %v5303_v35  ;;  %v173_v55 = vld [vmem:[#allocation5 + $0x1a8] sm:$0xff]  ;;  %v5306_v20 = vcombine.high %v138_v14, %v142_v15  ;;  %v146_v21 = vld [vmem:[#allocation5 + $0xd0] sm:$0xff]  ;;  %v5299_v31 = vcombine.low %v131_v18, %v135_v19 }
  0x8d   :  { %552 = vmatprep.subr.bf16.mxu0 %v5310_v24  ;;  %595 = vmatprep.subr.bf16.mxu1 %v5312_v36  ;;  %v5334_v48 = vcombine.high %v168_v41, %v172_v42  ;;  %v176_v49 = vld [vmem:[#allocation5 + $0x1c0] sm:$0xff]  ;;  %v5333_v53 = vcombine.low %v168_v41, %v172_v42  ;;  %v5336_v61 = vcombine.high %v169_v54, %v173_v55  ;;  %v177_v1 = vld [vmem:[#allocation5 + $0x1c8] sm:$0xff]  ;;  %v150_v22 = vld [vmem:[#allocation5 + $0xf0] sm:$0xff] }
  0x8e   :  { %v180_v50 = vld [vmem:[#allocation5 + $0x1e0] sm:$0xff]  ;;  %v181_v2 = vld [vmem:[#allocation5 + $0x1e8] sm:$0xff]  ;;  %v5335_v4 = vcombine.low %v169_v54, %v173_v55  ;;  %v5300_v24 = vcombine.high %v131_v18, %v135_v19  ;;  %v154_v26 = vld [vmem:[#allocation5 + $0x110] sm:$0xff]  ;;  %v5314_v30 = vcombine.high %v146_v21, %v150_v22  ;;  %v5313_v35 = vcombine.low %v146_v21, %v150_v22 }
  0x8f   :  { %v5342_v56 = vcombine.high %v176_v49, %v180_v50  ;;  %v5341_v62 = vcombine.low %v176_v49, %v180_v50  ;;  %v5344_v8 = vcombine.high %v177_v1, %v181_v2  ;;  %v5343_v13 = vcombine.low %v177_v1, %v181_v2  ;;  %v158_v27 = vld [vmem:[#allocation5 + $0x130] sm:$0xff]  ;;  %v139_v28 = vld [vmem:[#allocation5 + $0x98] sm:$0xff]  ;;  %v742_v59 = vld [vmem:[#allocation8] sm:$0xff] }
  0x90   :  { %553 = vmatpush1.bf16.msra.mxu0 %v5309_v29  ;;  %596 = vmatpush1.bf16.msra.mxu1 %v5311_v43  ;;  %v143_v29 = vld [vmem:[#allocation5 + $0xb8] sm:$0xff]  ;;  %v162_v36 = vld [vmem:[#allocation5 + $0x150] sm:$0xff]  ;;  %v5322_v38 = vcombine.high %v154_v26, %v158_v27  ;;  %v5321_v43 = vcombine.low %v154_v26, %v158_v27  ;;  %v746_v60 = vld [vmem:[#allocation8 + $0x20] sm:$0xff] }
  0x91   :  { %554 = vmatprep.subr.bf16.mxu0 %v5318_v32  ;;  %597 = vmatprep.subr.bf16.mxu1 %v5320_v44  ;;  %v147_v32 = vld [vmem:[#allocation5 + $0xd8] sm:$0xff]  ;;  %v5308_v34 = vcombine.high %v139_v28, %v143_v29  ;;  %v5307_v39 = vcombine.low %v139_v28, %v143_v29  ;;  %v170_v44 = vld [vmem:[#allocation5 + $0x190] sm:$0xff]  ;;  %v754_v5 = vld [vmem:[#allocation8 + $0x60] sm:$0xff]  ;;  %v5350_v6 = vcombine.high %v742_v59, %v746_v60 }
  0x92   :  { %v151_v33 = vld [vmem:[#allocation5 + $0xf8] sm:$0xff]  ;;  %v747_v10 = vld [vmem:[#allocation8 + $0x28] sm:$0xff]  ;;  %v762_v14 = vld [vmem:[#allocation8 + $0xa0] sm:$0xff] }
  0x93   :  { %v159_v41 = vld [vmem:[#allocation5 + $0x138] sm:$0xff]  ;;  %v5316_v42 = vcombine.high %v147_v32, %v151_v33  ;;  %v5315_v46 = vcombine.low %v147_v32, %v151_v33  ;;  %v755_v18 = vld [vmem:[#allocation8 + $0x68] sm:$0xff]  ;;  %v766_v21 = vld [vmem:[#allocation8 + $0xc0] sm:$0xff] }
  0x94   :  { %555 = vmatpush1.bf16.msra.mxu0 %v5317_v37  ;;  %598 = vmatpush1.bf16.msra.mxu1 %v5319_v51  ;;  %v166_v37 = vld [vmem:[#allocation5 + $0x170] sm:$0xff]  ;;  %v163_v47 = vld [vmem:[#allocation5 + $0x158] sm:$0xff]  ;;  %v770_v22 = vld [vmem:[#allocation8 + $0xe0] sm:$0xff] }
  0x95   :  { %556 = vmatprep.subr.bf16.mxu0 %v5326_v40  ;;  %599 = vmatprep.subr.bf16.mxu1 %v5328_v52  ;;  %v155_v40 = vld [vmem:[#allocation5 + $0x118] sm:$0xff]  ;;  %v5329_v50 = vcombine.low %v162_v36, %v166_v37  ;;  %v178_v51 = vld [vmem:[#allocation5 + $0x1d0] sm:$0xff]  ;;  %v774_v29 = vld [vmem:[#allocation8 + $0x100] sm:$0xff] }
  0x96   :  { %v5324_v49 = vcombine.high %v155_v40, %v159_v41  ;;  %v182_v52 = vld [vmem:[#allocation5 + $0x1f0] sm:$0xff]  ;;  %v5323_v54 = vcombine.low %v155_v40, %v159_v41  ;;  %v171_v55 = vld [vmem:[#allocation5 + $0x198] sm:$0xff] }
  0x97   :  { %v179_v63 = vld [vmem:[#allocation5 + $0x1d8] sm:$0xff]  ;;  %v763_v26 = vld [vmem:[#allocation8 + $0xa8] sm:$0xff] }
  0x98   :  { %557 = vmatpush1.bf16.msra.mxu0 %v5325_v45  ;;  %600 = vmatpush1.bf16.msra.mxu1 %v5327_v57  ;;  %v174_v45 = vld [vmem:[#allocation5 + $0x1b0] sm:$0xff]  ;;  %v183_v1 = vld [vmem:[#allocation5 + $0x1f8] sm:$0xff] }
  0x99   :  { %558 = vmatprep.subr.bf16.mxu0 %v5334_v48  ;;  %601 = vmatprep.subr.bf16.mxu1 %v5336_v61  ;;  %v167_v48 = vld [vmem:[#allocation5 + $0x178] sm:$0xff]  ;;  %v5337_v58 = vcombine.low %v170_v44, %v174_v45  ;;  %v5346_v61 = vcombine.high %v178_v51, %v182_v52  ;;  %v5348_v11 = vcombine.high %v179_v63, %v183_v1  ;;  %v767_v33 = vld [vmem:[#allocation8 + $0xc8] sm:$0xff] }
  0x9a   :  { %v5332_v57 = vcombine.high %v163_v47, %v167_v48  ;;  %v775_v41 = vld [vmem:[#allocation8 + $0x108] sm:$0xff] }
  0x9c   :  { %559 = vmatpush1.bf16.msra.mxu0 %v5333_v53  ;;  %602 = vmatpush1.bf16.msra.mxu1 %v5335_v4  ;;  %v5338_v53 = vcombine.high %v170_v44, %v174_v45  ;;  %v750_v4 = vld [vmem:[#allocation8 + $0x40] sm:$0xff] }
  0x9d   :  { %560 = vmatprep.subr.bf16.mxu0 %v5342_v56  ;;  %603 = vmatprep.subr.bf16.mxu1 %v5344_v8  ;;  %v175_v56 = vld [vmem:[#allocation5 + $0x1b8] sm:$0xff]  ;;  %v5358_v15 = vcombine.high %v750_v4, %v754_v5  ;;  %v790_v44 = vld [vmem:[#allocation8 + $0x180] sm:$0xff] }
  0x9e   :  { %v5340_v2 = vcombine.high %v171_v55, %v175_v56  ;;  %v5339_v8 = vcombine.low %v171_v55, %v175_v56  ;;  %v794_v45 = vld [vmem:[#allocation8 + $0x1a0] sm:$0xff] }
  0x9f   :  { %v5397_v56 = vcombine.low %v790_v44, %v794_v45 }
  0xa0   :  { %561 = vmatpush1.bf16.msra.mxu0 %v5341_v62  ;;  %604 = vmatpush1.bf16.msra.mxu1 %v5343_v13  ;;  %v5331_v62 = vcombine.low %v163_v47, %v167_v48  ;;  %v758_v13 = vld [vmem:[#allocation8 + $0x80] sm:$0xff] }
  0xa1   :  { %632 = vmatprep.subr.bf16.mxu0 %v5290_v3  ;;  %675 = vmatprep.subr.bf16.mxu1 %v5292_v16  ;;  %v5345_v3 = vcombine.low %v178_v51, %v182_v52  ;;  %v5347_v16 = vcombine.low %v179_v63, %v183_v1  ;;  %v5365_v28 = vcombine.low %v758_v13, %v762_v14 }
  0xa2   :  { %v5398_v51 = vcombine.high %v790_v44, %v794_v45 }
  0xa3   :  { %579 = vmatmul.mubr.bf16.vlgmr.msra.gmra.mrb[0].mxu0 %v6497_v7  ;;  %622 = vmatmul.mubr.bf16.vlgmr.msra.gmra.mrb[0].mxu1 %v6497_v7 }
  0xa4   :  { %633 = vmatpush1.bf16.msra.mxu0 %v5289_v9  ;;  %664 = vmatprep.mubr.bf16.mxu0 %v6366_v0  ;;  %v743_v9 = vld [vmem:[#allocation8 + $0x8] sm:$0xff] }
  0xa5   :  { %634 = vmatprep.subr.bf16.mxu0 %v5298_v12  ;;  %676 = vmatpush1.bf16.msra.mxu1 %v5291_v23  ;;  %v5349_v12 = vcombine.low %v742_v59, %v746_v60  ;;  %v5352_v19 = vcombine.high %v743_v9, %v747_v10  ;;  %v5366_v23 = vcombine.high %v758_v13, %v762_v14 }
  0xa6   :  { %707 = vmatprep.mubr.bf16.mxu1 %v6366_v0  ;;  %677 = vmatprep.subr.bf16.mxu1 %v5300_v24  ;;  %v5330_v0 = vcombine.high %v162_v36, %v166_v37  ;;  %v5351_v24 = vcombine.low %v743_v9, %v747_v10  ;;  %v5373_v36 = vcombine.low %v766_v21, %v770_v22  ;;  %v782_v37 = vld [vmem:[#allocation8 + $0x140] sm:$0xff] }
  0xa8   :  { %635 = vmatpush1.bf16.msra.mxu0 %v5297_v17  ;;  %v751_v17 = vld [vmem:[#allocation8 + $0x48] sm:$0xff] }
  0xa9   :  { %636 = vmatprep.subr.bf16.mxu0 %v5306_v20  ;;  %678 = vmatpush1.bf16.msra.mxu1 %v5299_v31  ;;  %v5357_v20 = vcombine.low %v750_v4, %v754_v5  ;;  %v5360_v27 = vcombine.high %v751_v17, %v755_v18  ;;  %v5374_v31 = vcombine.high %v766_v21, %v770_v22 }
  0xaa   :  { %679 = vmatprep.subr.bf16.mxu1 %v5308_v34  ;;  %v5359_v32 = vcombine.low %v751_v17, %v755_v18  ;;  %v771_v34 = vld [vmem:[#allocation8 + $0xe8] sm:$0xff] }
  0xac   :  { %637 = vmatpush1.bf16.msra.mxu0 %v5305_v25  ;;  %v759_v25 = vld [vmem:[#allocation8 + $0x88] sm:$0xff] }
  0xad   :  { %638 = vmatprep.subr.bf16.mxu0 %v5314_v30  ;;  %680 = vmatpush1.bf16.msra.mxu1 %v5307_v39  ;;  %v778_v30 = vld [vmem:[#allocation8 + $0x120] sm:$0xff]  ;;  %v5367_v40 = vcombine.low %v759_v25, %v763_v26 }
  0xae   :  { %681 = vmatprep.subr.bf16.mxu1 %v5316_v42  ;;  %v5382_v39 = vcombine.high %v774_v29, %v778_v30  ;;  %v779_v42 = vld [vmem:[#allocation8 + $0x128] sm:$0xff] }
  0xaf   :  { %v5384_v47 = vcombine.high %v775_v41, %v779_v42  ;;  %v5383_v52 = vcombine.low %v775_v41, %v779_v42 }
  0xb0   :  { %639 = vmatpush1.bf16.msra.mxu0 %v5313_v35  ;;  %v5368_v35 = vcombine.high %v759_v25, %v763_v26 }
  0xb1   :  { %640 = vmatprep.subr.bf16.mxu0 %v5322_v38  ;;  %682 = vmatpush1.bf16.msra.mxu1 %v5315_v46  ;;  %v786_v38 = vld [vmem:[#allocation8 + $0x160] sm:$0xff]  ;;  %v5375_v46 = vcombine.low %v767_v33, %v771_v34 }
  0xb2   :  { %683 = vmatprep.subr.bf16.mxu1 %v5324_v49  ;;  %v5389_v48 = vcombine.low %v782_v37, %v786_v38  ;;  %v783_v49 = vld [vmem:[#allocation8 + $0x148] sm:$0xff] }
  0xb4   :  { %641 = vmatpush1.bf16.msra.mxu0 %v5321_v43  ;;  %v5381_v43 = vcombine.low %v774_v29, %v778_v30 }
  0xb5   :  { %642 = vmatprep.subr.bf16.mxu0 %v5330_v0  ;;  %684 = vmatpush1.bf16.msra.mxu1 %v5323_v54  ;;  %v5390_v0 = vcombine.high %v782_v37, %v786_v38  ;;  %v802_v54 = vld [vmem:[#allocation8 + $0x1e0] sm:$0xff] }
  0xb6   :  { %685 = vmatprep.subr.bf16.mxu1 %v5332_v57  ;;  %v791_v57 = vld [vmem:[#allocation8 + $0x188] sm:$0xff] }
  0xb8   :  { %643 = vmatpush1.bf16.msra.mxu0 %v5329_v50  ;;  %v787_v50 = vld [vmem:[#allocation8 + $0x168] sm:$0xff] }
  0xb9   :  { %644 = vmatprep.subr.bf16.mxu0 %v5338_v53  ;;  %686 = vmatpush1.bf16.msra.mxu1 %v5331_v62  ;;  %v798_v53 = vld [vmem:[#allocation8 + $0x1c0] sm:$0xff]  ;;  %v5392_v55 = vcombine.high %v783_v49, %v787_v50  ;;  %v5391_v60 = vcombine.low %v783_v49, %v787_v50 }
  0xba   :  { %687 = vmatprep.subr.bf16.mxu1 %v5340_v2  ;;  %v5406_v59 = vcombine.high %v798_v53, %v802_v54  ;;  %v810_v62 = vld [vmem:[#allocation8 + $0x220] sm:$0xff]  ;;  %v5405_v1 = vcombine.low %v798_v53, %v802_v54  ;;  %v799_v2 = vld [vmem:[#allocation8 + $0x1c8] sm:$0xff] }
  0xbb   :  { %v854_v49 = vld [vmem:[#allocation8 + $0x380] sm:$0xff] }
  0xbc   :  { %645 = vmatpush1.bf16.msra.mxu0 %v5337_v58  ;;  %v795_v58 = vld [vmem:[#allocation8 + $0x1a8] sm:$0xff]  ;;  %v858_v50 = vld [vmem:[#allocation8 + $0x3a0] sm:$0xff] }
  0xbd   :  { %646 = vmatprep.subr.bf16.mxu0 %v5346_v61  ;;  %688 = vmatpush1.bf16.msra.mxu1 %v5339_v8  ;;  %v806_v61 = vld [vmem:[#allocation8 + $0x200] sm:$0xff]  ;;  %v5400_v63 = vcombine.high %v791_v57, %v795_v58  ;;  %v5399_v5 = vcombine.low %v791_v57, %v795_v58  ;;  %v5461_v54 = vcombine.low %v854_v49, %v858_v50 }
  0xbe   :  { %689 = vmatprep.subr.bf16.mxu1 %v5348_v11  ;;  %v5414_v4 = vcombine.high %v806_v61, %v810_v62  ;;  %v818_v8 = vld [vmem:[#allocation8 + $0x260] sm:$0xff]  ;;  %v5413_v10 = vcombine.low %v806_v61, %v810_v62  ;;  %v807_v11 = vld [vmem:[#allocation8 + $0x208] sm:$0xff] }
  0xbf   :  { %v862_v57 = vld [vmem:[#allocation8 + $0x3c0] sm:$0xff] }
  0xc0   :  { %647 = vmatpush1.bf16.msra.mxu0 %v5345_v3  ;;  %v803_v3 = vld [vmem:[#allocation8 + $0x1e8] sm:$0xff]  ;;  %v866_v58 = vld [vmem:[#allocation8 + $0x3e0] sm:$0xff] }
  0xc1   :  { %3856 = vmatprep.subr.bf16.mxu0 %v5350_v6  ;;  %690 = vmatpush1.bf16.msra.mxu1 %v5347_v16  ;;  %v814_v6 = vld [vmem:[#allocation8 + $0x240] sm:$0xff]  ;;  %v5408_v9 = vcombine.high %v799_v2, %v803_v3  ;;  %v5407_v14 = vcombine.low %v799_v2, %v803_v3  ;;  %v5469_v62 = vcombine.low %v862_v57, %v866_v58 }
  0xc2   :  { %4028 = vmatprep.subr.bf16.mxu1 %v5352_v19  ;;  %v5422_v13 = vcombine.high %v814_v6, %v818_v8  ;;  %v826_v16 = vld [vmem:[#allocation8 + $0x2a0] sm:$0xff]  ;;  %v5421_v18 = vcombine.low %v814_v6, %v818_v8  ;;  %v815_v19 = vld [vmem:[#allocation8 + $0x248] sm:$0xff] }
  0xc3   :  { %665 = vmatmul.mubr.bf16.vlgmr.msra.gmra.mrb[4].mxu0 %v6497_v7  ;;  %v6505_v2 = vld [vmem:[#allocation8 + $0x400] sm:$0xff]  ;;  %v6513_v8 = vld [vmem:[#allocation8 + $0x428] sm:$0xff] }
  0xc4   :  { %3857 = vmatpush1.bf16.msra.mxu0 %v5349_v12  ;;  %708 = vmatmul.mubr.bf16.vlgmr.msra.gmra.mrb[4].mxu1 %v6497_v7  ;;  %v5376_v7 = vcombine.high %v767_v33, %v771_v34  ;;  %v811_v12 = vld [vmem:[#allocation8 + $0x228] sm:$0xff]  ;;  %v6507_v3 = vld [vmem:[#allocation8 + $0x420] sm:$0xff] }
  0xc5   :  { %3858 = vmatprep.subr.bf16.mxu0 %v5358_v15  ;;  %4029 = vmatpush1.bf16.msra.mxu1 %v5351_v24  ;;  %v822_v15 = vld [vmem:[#allocation8 + $0x280] sm:$0xff]  ;;  %v5416_v17 = vcombine.high %v807_v11, %v811_v12  ;;  %v5415_v22 = vcombine.low %v807_v11, %v811_v12  ;;  %v5478_v6 = vcombine.high %v6505_v2, %v6507_v3 }
  0xc6   :  { %4030 = vmatprep.subr.bf16.mxu1 %v5360_v27  ;;  %v5430_v21 = vcombine.high %v822_v15, %v826_v16  ;;  %v834_v24 = vld [vmem:[#allocation8 + $0x2e0] sm:$0xff]  ;;  %v5429_v26 = vcombine.low %v822_v15, %v826_v16  ;;  %v823_v27 = vld [vmem:[#allocation8 + $0x288] sm:$0xff] }
  0xc8   :  { %3859 = vmatpush1.bf16.msra.mxu0 %v5357_v20  ;;  %v819_v20 = vld [vmem:[#allocation8 + $0x268] sm:$0xff] }
  0xc9   :  { %3860 = vmatprep.subr.bf16.mxu0 %v5366_v23  ;;  %4031 = vmatpush1.bf16.msra.mxu1 %v5359_v32  ;;  %v830_v23 = vld [vmem:[#allocation8 + $0x2c0] sm:$0xff]  ;;  %v5424_v25 = vcombine.high %v815_v19, %v819_v20  ;;  %v5423_v30 = vcombine.low %v815_v19, %v819_v20 }
  0xca   :  { %4032 = vmatprep.subr.bf16.mxu1 %v5368_v35  ;;  %v5438_v29 = vcombine.high %v830_v23, %v834_v24  ;;  %v842_v32 = vld [vmem:[#allocation8 + $0x320] sm:$0xff]  ;;  %v5437_v34 = vcombine.low %v830_v23, %v834_v24  ;;  %v831_v35 = vld [vmem:[#allocation8 + $0x2c8] sm:$0xff] }
  0xcc   :  { %3861 = vmatpush1.bf16.msra.mxu0 %v5365_v28  ;;  %v827_v28 = vld [vmem:[#allocation8 + $0x2a8] sm:$0xff] }
  0xcd   :  { %3862 = vmatprep.subr.bf16.mxu0 %v5374_v31  ;;  %4033 = vmatpush1.bf16.msra.mxu1 %v5367_v40  ;;  %v838_v31 = vld [vmem:[#allocation8 + $0x300] sm:$0xff]  ;;  %v5432_v33 = vcombine.high %v823_v27, %v827_v28  ;;  %v5431_v38 = vcombine.low %v823_v27, %v827_v28 }
  0xce   :  { %4034 = vmatprep.subr.bf16.mxu1 %v5376_v7  ;;  %v5446_v37 = vcombine.high %v838_v31, %v842_v32  ;;  %v850_v40 = vld [vmem:[#allocation8 + $0x360] sm:$0xff]  ;;  %v5445_v42 = vcombine.low %v838_v31, %v842_v32  ;;  %v839_v7 = vld [vmem:[#allocation8 + $0x308] sm:$0xff] }
  0xd0   :  { %3863 = vmatpush1.bf16.msra.mxu0 %v5373_v36  ;;  %v835_v36 = vld [vmem:[#allocation8 + $0x2e8] sm:$0xff] }
  0xd1   :  { %3864 = vmatprep.subr.bf16.mxu0 %v5382_v39  ;;  %4035 = vmatpush1.bf16.msra.mxu1 %v5375_v46  ;;  %v846_v39 = vld [vmem:[#allocation8 + $0x340] sm:$0xff]  ;;  %v5440_v41 = vcombine.high %v831_v35, %v835_v36  ;;  %v5439_v45 = vcombine.low %v831_v35, %v835_v36 }
  0xd2   :  { %4036 = vmatprep.subr.bf16.mxu1 %v5384_v47  ;;  %v5454_v44 = vcombine.high %v846_v39, %v850_v40  ;;  %v5453_v46 = vcombine.low %v846_v39, %v850_v40  ;;  %v847_v47 = vld [vmem:[#allocation8 + $0x348] sm:$0xff]  ;;  %v878_v35 = vld [vmem:[#allocation8 + $0x440] sm:$0xff] }
  0xd3   :  { %v879_v39 = vld [vmem:[#allocation8 + $0x448] sm:$0xff] }
  0xd4   :  { %3865 = vmatpush1.bf16.msra.mxu0 %v5381_v43  ;;  %v843_v43 = vld [vmem:[#allocation8 + $0x328] sm:$0xff] }
  0xd5   :  { %3866 = vmatprep.subr.bf16.mxu0 %v5390_v0  ;;  %4037 = vmatpush1.bf16.msra.mxu1 %v5383_v52  ;;  %v5448_v0 = vcombine.high %v839_v7, %v843_v43  ;;  %v5462_v52 = vcombine.high %v854_v49, %v858_v50  ;;  %v883_v40 = vld [vmem:[#allocation8 + $0x468] sm:$0xff] }
  0xd6   :  { %4038 = vmatprep.subr.bf16.mxu1 %v5392_v55  ;;  %v855_v55 = vld [vmem:[#allocation8 + $0x388] sm:$0xff] }
  0xd8   :  { %3867 = vmatpush1.bf16.msra.mxu0 %v5389_v48  ;;  %v851_v48 = vld [vmem:[#allocation8 + $0x368] sm:$0xff] }
  0xd9   :  { %3868 = vmatprep.subr.bf16.mxu0 %v5398_v51  ;;  %4039 = vmatpush1.bf16.msra.mxu1 %v5391_v60  ;;  %v5447_v51 = vcombine.low %v839_v7, %v843_v43  ;;  %v5456_v53 = vcombine.high %v847_v47, %v851_v48  ;;  %v5470_v60 = vcombine.high %v862_v57, %v866_v58 }
  0xda   :  { %4040 = vmatprep.subr.bf16.mxu1 %v5400_v63  ;;  %v863_v63 = vld [vmem:[#allocation8 + $0x3c8] sm:$0xff] }
  0xdc   :  { %3869 = vmatpush1.bf16.msra.mxu0 %v5397_v56  ;;  %v859_v56 = vld [vmem:[#allocation8 + $0x3a8] sm:$0xff] }
  0xdd   :  { %3870 = vmatprep.subr.bf16.mxu0 %v5406_v59  ;;  %4041 = vmatpush1.bf16.msra.mxu1 %v5399_v5  ;;  %v5455_v59 = vcombine.low %v847_v47, %v851_v48  ;;  %v5464_v61 = vcombine.high %v855_v55, %v859_v56  ;;  %v5463_v5 = vcombine.low %v855_v55, %v859_v56  ;;  %v886_v48 = vld [vmem:[#allocation8 + $0x480] sm:$0xff] }
  0xde   :  { %4042 = vmatprep.subr.bf16.mxu1 %v5408_v9  ;;  %v5488_v47 = vcombine.high %v879_v39, %v883_v40 }
  0xe0   :  { %3871 = vmatpush1.bf16.msra.mxu0 %v5405_v1  ;;  %v867_v1 = vld [vmem:[#allocation8 + $0x3e8] sm:$0xff] }
  0xe1   :  { %3872 = vmatprep.subr.bf16.mxu0 %v5414_v4  ;;  %4043 = vmatpush1.bf16.msra.mxu1 %v5407_v14  ;;  %v6509_v4 = vld [vmem:[#allocation8 + $0x408] sm:$0xff]  ;;  %v5472_v9 = vcombine.high %v863_v63, %v867_v1  ;;  %v5471_v12 = vcombine.low %v863_v63, %v867_v1  ;;  %v186_v14 = vlaneseq  ;;  %v894_v63 = vld [vmem:[#allocation8 + $0x4c0] sm:$0xff] }
  0xe2   :  { %4044 = vmatprep.subr.bf16.mxu1 %v5416_v17  ;;  %v5479_v11 = vcombine.low %v6509_v4, %v6513_v8  ;;  %v6524_v17 = vld [vmem:[#allocation7] sm:$0xff] }
  0xe3   :  { %v6521_v15 = vshrl.u32 %v186_v14, 7  ;;  %v907_v14 = vld [vmem:[#allocation8 + $0x528] sm:$0xff] }
  0xe4   :  { %3873 = vmatpush1.bf16.msra.mxu0 %v5413_v10  ;;  %v5477_v10 = vcombine.low %v6505_v2, %v6507_v3  ;;  %v898_v2 = vld [vmem:[#allocation8 + $0x4e0] sm:$0xff]  ;;  %v895_v3 = vld [vmem:[#allocation8 + $0x4c8] sm:$0xff] }
  0xe5   :  { %3874 = vmatprep.subr.bf16.mxu0 %v5422_v13  ;;  %4045 = vmatpush1.bf16.msra.mxu1 %v5415_v22  ;;  %v5480_v13 = vcombine.high %v6509_v4, %v6513_v8  ;;  %v188_v16 = vsub.s32 0, %v6521_v15  ;;  %v200_v23 = vsub.s32 3, %v6521_v15  ;;  %v899_v4 = vld [vmem:[#allocation8 + $0x4e8] sm:$0xff] }
  0xe6   :  { %4046 = vmatprep.subr.bf16.mxu1 %v5424_v25 }
  0xe7   :  { %v189_v19 = vrot.slane %v6524_v17, %v188_v16  ;;  %v201_v32 = vrot.slane %v6524_v17, %v200_v23 }
  0xe8   :  { %3875 = vmatpush1.bf16.msra.mxu0 %v5421_v18  ;;  %v192_v18 = vsub.s32 1, %v6521_v15 }
  0xe9   :  { %3876 = vmatprep.subr.bf16.mxu0 %v5430_v21  ;;  %4047 = vmatpush1.bf16.msra.mxu1 %v5423_v30  ;;  %v196_v21 = vsub.s32 2, %v6521_v15 }
  0xea   :  { %4048 = vmatprep.subr.bf16.mxu1 %v5432_v33  ;;  %v193_v20 = vrot.slane %v6524_v17, %v192_v18 }
  0xeb   :  { %v197_v30 = vrot.slane %v6524_v17, %v196_v21 }
  0xec   :  { %3877 = vmatpush1.bf16.msra.mxu0 %v5429_v26 }
  0xed   :  { %3878 = vmatprep.subr.bf16.mxu0 %v5438_v29  ;;  %4049 = vmatpush1.bf16.msra.mxu1 %v5431_v38  ;;  %v882_v38 = vld [vmem:[#allocation8 + $0x460] sm:$0xff] }
  0xee   :  { %4050 = vmatprep.subr.bf16.mxu1 %v5440_v41  ;;  %v5485_v58 = vcombine.low %v878_v35, %v882_v38 }
  0xf0   :  { %3879 = vmatpush1.bf16.msra.mxu0 %v5437_v34 }
  0xf1   :  { %3880 = vmatprep.subr.bf16.mxu0 %v5446_v37  ;;  %4051 = vmatpush1.bf16.msra.mxu1 %v5439_v45 }
  0xf2   :  { %4052 = vmatprep.subr.bf16.mxu1 %v5448_v0 }
  0xf4   :  { %3881 = vmatpush1.bf16.msra.mxu0 %v5445_v42 }
  0xf5   :  { %3882 = vmatprep.subr.bf16.mxu0 %v5454_v44  ;;  %4053 = vmatpush1.bf16.msra.mxu1 %v5447_v51 }
  0xf6   :  { %4054 = vmatprep.subr.bf16.mxu1 %v5456_v53  ;;  %v887_v53 = vld [vmem:[#allocation8 + $0x488] sm:$0xff] }
  0xf8   :  { %3883 = vmatpush1.bf16.msra.mxu0 %v5453_v46  ;;  %v5486_v46 = vcombine.high %v878_v35, %v882_v38  ;;  %v922_v35 = vld [vmem:[#allocation8 + $0x5a0] sm:$0xff]  ;;  %v208_v38 = vsub.s32 5, %v6521_v15 }
  0xf9   :  { %3884 = vmatprep.subr.bf16.mxu0 %v5462_v52  ;;  %4055 = vmatpush1.bf16.msra.mxu1 %v5455_v59  ;;  %v890_v52 = vld [vmem:[#allocation8 + $0x4a0] sm:$0xff]  ;;  %v5487_v59 = vcombine.low %v879_v39, %v883_v40 }
  0xfa   :  { %4056 = vmatprep.subr.bf16.mxu1 %v5464_v61  ;;  %v5494_v61 = vcombine.high %v886_v48, %v890_v52 }
  0xfc   :  { %3885 = vmatpush1.bf16.msra.mxu0 %v5461_v54  ;;  %v891_v54 = vld [vmem:[#allocation8 + $0x4a8] sm:$0xff] }
  0xfd   :  { %3886 = vmatprep.subr.bf16.mxu0 %v5470_v60  ;;  %4057 = vmatpush1.bf16.msra.mxu1 %v5463_v5  ;;  %v5495_v8 = vcombine.low %v887_v53, %v891_v54 }
  0xfe   :  { %4058 = vmatprep.subr.bf16.mxu1 %v5472_v9  ;;  %v5502_v9 = vcombine.high %v894_v63, %v898_v2 }
 0x100   :  { %3887 = vmatpush1.bf16.msra.mxu0 %v5469_v62  ;;  %v5496_v62 = vcombine.high %v887_v53, %v891_v54  ;;  %v216_v53 = vsub.s32 7, %v6521_v15 }
 0x101   :  { %3899 = vmatprep.subr.bf16.mxu0 %v5478_v6  ;;  %4059 = vmatpush1.bf16.msra.mxu1 %v5471_v12  ;;  %v5493_v6 = vcombine.low %v886_v48, %v890_v52  ;;  %v906_v12 = vld [vmem:[#allocation8 + $0x520] sm:$0xff]  ;;  %v209_v48 = vrot.slane %v6524_v17, %v208_v38 }
 0x102   :  { %4071 = vmatprep.subr.bf16.mxu1 %v5480_v13  ;;  %v903_v13 = vld [vmem:[#allocation8 + $0x508] sm:$0xff] }
 0x176   :  { %v580_v22 = vpop.f32.mrb[0].mxu0  ;;  %v623_v41 = vpop.f32.mrb[0].mxu1 }
 0x177   :  { %v581_v24 = vadd.f32 %v580_v22, %v189_v19  ;;  %v582_v25 = vpop.f32.mrb[1].mxu0  ;;  %v624_v7 = vadd.f32 %v623_v41, %v197_v30  ;;  %v625_v43 = vpop.f32.mrb[1].mxu1 }
 0x178   :  { %v583_v26 = vadd.f32 %v582_v25, %v193_v20  ;;  %v584_v27 = vpop.f32.mrb[2].mxu0  ;;  %v626_v45 = vadd.f32 %v625_v43, %v201_v32  ;;  %v627_v0 = vpop.f32.mrb[2].mxu1  ;;  %v910_v25 = vld [vmem:[#allocation8 + $0x540] sm:$0xff] }
 0x179   :  { %v585_v28 = vadd.f32 %v584_v27, %v189_v19  ;;  %v586_v29 = vpop.f32.mrb[3].mxu0  ;;  %v718_v33 = vmax.f32 %v581_v24, 0.0  ;;  %v720_v49 = vmax.f32 %v624_v7, 0.0  ;;  %v628_v50 = vadd.f32 %v627_v0, %v197_v30  ;;  %v629_v51 = vpop.f32.mrb[3].mxu1  ;;  %v911_v27 = vld [vmem:[#allocation8 + $0x548] sm:$0xff]  ;;  %v926_v43 = vld [vmem:[#allocation8 + $0x5c0] sm:$0xff] }
 0x17a   :  { %v587_v31 = vadd.f32 %v586_v29, %v193_v20  ;;  %v719_v36 = vmax.f32 %v583_v26, 0.0  ;;  %v721_v55 = vmax.f32 %v626_v45, 0.0  ;;  %v630_v56 = vadd.f32 %v629_v51, %v201_v32  ;;  %v914_v26 = vld [vmem:[#allocation8 + $0x560] sm:$0xff] }
 0x17b   :  { %v726_v34 = vmax.f32 %v585_v28, 0.0  ;;  %v728_v57 = vmax.f32 %v628_v50, 0.0  ;;  %v5501_v19 = vcombine.low %v894_v63, %v898_v2  ;;  %v5503_v20 = vcombine.low %v895_v3, %v899_v4  ;;  %v915_v28 = vld [vmem:[#allocation8 + $0x568] sm:$0xff]  ;;  %v930_v0 = vld [vmem:[#allocation8 + $0x5e0] sm:$0xff] }
 0x17c   :  { %v727_v37 = vmax.f32 %v587_v31, 0.0  ;;  %v729_v60 = vmax.f32 %v630_v56, 0.0  ;;  %v5512_v24 = vcombine.high %v903_v13, %v907_v14  ;;  %v5511_v30 = vcombine.low %v903_v13, %v907_v14  ;;  %v934_v56 = vld [vmem:[#allocation8 + $0x600] sm:$0xff] }
 0x17d   :  { %v6541_v42 = vpack.c.bf16 %v726_v34, %v718_v33  ;;  %v6549_v1 = vpack.c.bf16 %v728_v57, %v720_v49  ;;  %v5518_v31 = vcombine.high %v910_v25, %v914_v26  ;;  %v5520_v32 = vcombine.high %v911_v27, %v915_v28  ;;  %v918_v33 = vld [vmem:[#allocation8 + $0x580] sm:$0xff] }
 0x17e   :  { %v6543_v44 = vpack.c.bf16 %v727_v37, %v719_v36  ;;  %v6551_v5 = vpack.c.bf16 %v729_v60, %v721_v55  ;;  %v204_v34 = vsub.s32 4, %v6521_v15  ;;  %v919_v36 = vld [vmem:[#allocation8 + $0x588] sm:$0xff]  ;;  %v5517_v39 = vcombine.low %v910_v25, %v914_v26 }
 0x17f   :  { %v923_v37 = vld [vmem:[#allocation8 + $0x5a8] sm:$0xff]  ;;  %v5519_v40 = vcombine.low %v911_v27, %v915_v28  ;;  %v5526_v41 = vcombine.high %v918_v33, %v922_v35  ;;  %v212_v49 = vsub.s32 6, %v6521_v15  ;;  %v5525_v50 = vcombine.low %v918_v33, %v922_v35 }
 0x180   :  { %3888 = vmatprep.mubr.bf16.mxu0 %v6543_v44  ;;  %4060 = vmatprep.mubr.bf16.mxu1 %v6543_v44  ;;  %v5528_v7 = vcombine.high %v919_v36, %v923_v37  ;;  %v205_v45 = vrot.slane %v6524_v17, %v204_v34  ;;  %v5527_v51 = vcombine.low %v919_v36, %v923_v37  ;;  %v935_v60 = vld [vmem:[#allocation8 + $0x608] sm:$0xff] }
 0x181   :  { %3889 = vmatmul.mubr.bf16.vlgmr.msra.gmra.mrb[8].mxu0 %v6541_v42  ;;  %4061 = vmatmul.mubr.bf16.vlgmr.msra.gmra.mrb[8].mxu1 %v6541_v42  ;;  %v5534_v54 = vcombine.high %v926_v43, %v930_v0  ;;  %v5533_v2 = vcombine.low %v926_v43, %v930_v0  ;;  %v947_v25 = vld [vmem:[#allocation8 + $0x668] sm:$0xff]  ;;  %v954_v43 = vld [vmem:[#allocation8 + $0x6a0] sm:$0xff] }
 0x182   :  { %3900 = vmatpush1.bf16.msra.mxu0 %v5477_v10  ;;  %4072 = vmatpush1.bf16.msra.mxu1 %v5479_v11  ;;  %v5504_v10 = vcombine.high %v895_v3, %v899_v4  ;;  %v902_v11 = vld [vmem:[#allocation8 + $0x500] sm:$0xff]  ;;  %v955_v0 = vld [vmem:[#allocation8 + $0x6a8] sm:$0xff] }
 0x183   :  { %3901 = vmatprep.subr.bf16.mxu0 %v5486_v46  ;;  %4073 = vmatprep.subr.bf16.mxu1 %v5488_v47  ;;  %v5510_v22 = vcombine.high %v902_v11, %v906_v12  ;;  %v5509_v29 = vcombine.low %v902_v11, %v906_v12  ;;  %v927_v46 = vld [vmem:[#allocation8 + $0x5c8] sm:$0xff]  ;;  %v217_v12 = vrot.slane %v6524_v17, %v216_v53 }
 0x184   :  { %3931 = vmatprep.mubr.bf16.mxu0 %v6551_v5  ;;  %4103 = vmatprep.mubr.bf16.mxu1 %v6551_v5  ;;  %v931_v47 = vld [vmem:[#allocation8 + $0x5e8] sm:$0xff] }
 0x185   :  { %v5536_v55 = vcombine.high %v927_v46, %v931_v47 }
 0x186   :  { %3902 = vmatpush1.bf16.msra.mxu0 %v5485_v58  ;;  %4074 = vmatpush1.bf16.msra.mxu1 %v5487_v59  ;;  %v938_v59 = vld [vmem:[#allocation8 + $0x620] sm:$0xff] }
 0x187   :  { %3903 = vmatprep.subr.bf16.mxu0 %v5494_v61  ;;  %4075 = vmatprep.subr.bf16.mxu1 %v5496_v62  ;;  %v939_v61 = vld [vmem:[#allocation8 + $0x628] sm:$0xff]  ;;  %v5542_v13 = vcombine.high %v934_v56, %v938_v59  ;;  %v5541_v28 = vcombine.low %v934_v56, %v938_v59  ;;  %v958_v56 = vld [vmem:[#allocation8 + $0x6c0] sm:$0xff] }
 0x188   :  { %v5544_v14 = vcombine.high %v935_v60, %v939_v61  ;;  %v959_v59 = vld [vmem:[#allocation8 + $0x6c8] sm:$0xff] }
 0x18a   :  { %3904 = vmatpush1.bf16.msra.mxu0 %v5493_v6  ;;  %4076 = vmatpush1.bf16.msra.mxu1 %v5495_v8  ;;  %v213_v8 = vrot.slane %v6524_v17, %v212_v49 }
 0x18b   :  { %3905 = vmatprep.subr.bf16.mxu0 %v5502_v9  ;;  %4077 = vmatprep.subr.bf16.mxu1 %v5504_v10  ;;  %v5535_v9 = vcombine.low %v927_v46, %v931_v47 }
 0x18e   :  { %3906 = vmatpush1.bf16.msra.mxu0 %v5501_v19  ;;  %4078 = vmatpush1.bf16.msra.mxu1 %v5503_v20  ;;  %v942_v19 = vld [vmem:[#allocation8 + $0x640] sm:$0xff] }
 0x18f   :  { %3907 = vmatprep.subr.bf16.mxu0 %v5510_v22  ;;  %4079 = vmatprep.subr.bf16.mxu1 %v5512_v24  ;;  %v946_v22 = vld [vmem:[#allocation8 + $0x660] sm:$0xff]  ;;  %v943_v24 = vld [vmem:[#allocation8 + $0x648] sm:$0xff] }
 0x190   :  { %v5550_v36 = vcombine.high %v942_v19, %v946_v22  ;;  %v5552_v37 = vcombine.high %v943_v24, %v947_v25 }
 0x192   :  { %3908 = vmatpush1.bf16.msra.mxu0 %v5509_v29  ;;  %4080 = vmatpush1.bf16.msra.mxu1 %v5511_v30 }
 0x193   :  { %3909 = vmatprep.subr.bf16.mxu0 %v5518_v31  ;;  %4081 = vmatprep.subr.bf16.mxu1 %v5520_v32  ;;  %v5543_v32 = vcombine.low %v935_v60, %v939_v61  ;;  %v963_v60 = vld [vmem:[#allocation8 + $0x6e8] sm:$0xff] }
 0x196   :  { %3910 = vmatpush1.bf16.msra.mxu0 %v5517_v39  ;;  %4082 = vmatpush1.bf16.msra.mxu1 %v5519_v40  ;;  %v666_v52 = vpop.f32.mrb[4].mxu0  ;;  %v950_v39 = vld [vmem:[#allocation8 + $0x680] sm:$0xff] }
 0x197   :  { %3911 = vmatprep.subr.bf16.mxu0 %v5526_v41  ;;  %4083 = vmatprep.subr.bf16.mxu1 %v5528_v7  ;;  %v667_v57 = vadd.f32 %v666_v52, %v205_v45  ;;  %v668_v58 = vpop.f32.mrb[5].mxu0  ;;  %v709_v27 = vpop.f32.mrb[4].mxu1 }
 0x198   :  { %v669_v62 = vadd.f32 %v668_v58, %v209_v48  ;;  %v670_v63 = vpop.f32.mrb[6].mxu0  ;;  %v710_v30 = vadd.f32 %v709_v27, %v213_v8  ;;  %v711_v31 = vpop.f32.mrb[5].mxu1  ;;  %v962_v58 = vld [vmem:[#allocation8 + $0x6e0] sm:$0xff] }
 0x199   :  { %v722_v3 = vmax.f32 %v667_v57, 0.0  ;;  %v671_v4 = vadd.f32 %v670_v63, %v205_v45  ;;  %v672_v6 = vpop.f32.mrb[7].mxu0  ;;  %v712_v33 = vadd.f32 %v711_v31, %v217_v12  ;;  %v713_v35 = vpop.f32.mrb[6].mxu1  ;;  %v951_v45 = vld [vmem:[#allocation8 + $0x688] sm:$0xff] }
 0x19a   :  { %3912 = vmatpush1.bf16.msra.mxu0 %v5525_v50  ;;  %4084 = vmatpush1.bf16.msra.mxu1 %v5527_v51  ;;  %v723_v10 = vmax.f32 %v669_v62, 0.0  ;;  %v673_v11 = vadd.f32 %v672_v6, %v209_v48  ;;  %v724_v40 = vmax.f32 %v710_v30, 0.0  ;;  %v714_v41 = vadd.f32 %v713_v35, %v213_v8  ;;  %v715_v7 = vpop.f32.mrb[7].mxu1  ;;  %v970_v6 = vld [vmem:[#allocation8 + $0x720] sm:$0xff]  ;;  %v967_v8 = vld [vmem:[#allocation8 + $0x708] sm:$0xff] }
 0x19b   :  { %3913 = vmatprep.subr.bf16.mxu0 %v5534_v54  ;;  %4085 = vmatprep.subr.bf16.mxu1 %v5536_v55  ;;  %v730_v20 = vmax.f32 %v671_v4, 0.0  ;;  %v725_v46 = vmax.f32 %v712_v33, 0.0  ;;  %v716_v47 = vadd.f32 %v715_v7, %v217_v12  ;;  %v5549_v50 = vcombine.low %v942_v19, %v946_v22  ;;  %v966_v4 = vld [vmem:[#allocation8 + $0x700] sm:$0xff]  ;;  %v979_v22 = vld [vmem:[#allocation8 + $0x768] sm:$0xff] }
 0x19c   :  { %v731_v26 = vmax.f32 %v673_v11, 0.0  ;;  %v732_v48 = vmax.f32 %v714_v41, 0.0  ;;  %v5551_v51 = vcombine.low %v943_v24, %v947_v25  ;;  %v5558_v54 = vcombine.high %v950_v39, %v954_v43  ;;  %v978_v19 = vld [vmem:[#allocation8 + $0x760] sm:$0xff]  ;;  %v983_v31 = vld [vmem:[#allocation8 + $0x788] sm:$0xff] }
 0x19d   :  { %v6571_v29 = vpack.c.bf16 %v730_v20, %v722_v3  ;;  %v733_v52 = vmax.f32 %v716_v47, 0.0  ;;  %v5560_v55 = vcombine.high %v951_v45, %v955_v0  ;;  %v5557_v62 = vcombine.low %v950_v39, %v954_v43  ;;  %v975_v20 = vld [vmem:[#allocation8 + $0x748] sm:$0xff]  ;;  %v986_v30 = vld [vmem:[#allocation8 + $0x7a0] sm:$0xff] }
 0x19e   :  { %3914 = vmatpush1.bf16.msra.mxu0 %v5533_v2  ;;  %4086 = vmatpush1.bf16.msra.mxu1 %v5535_v9  ;;  %v6573_v17 = vpack.c.bf16 %v731_v26, %v723_v10  ;;  %v6575_v57 = vpack.c.bf16 %v732_v48, %v724_v40  ;;  %v5559_v63 = vcombine.low %v951_v45, %v955_v0  ;;  %v971_v9 = vld [vmem:[#allocation8 + $0x728] sm:$0xff]  ;;  %v990_v39 = vld [vmem:[#allocation8 + $0x7c0] sm:$0xff] }
 0x19f   :  { %3915 = vmatprep.subr.bf16.mxu0 %v5542_v13  ;;  %4087 = vmatprep.subr.bf16.mxu1 %v5544_v14  ;;  %v6577_v61 = vpack.c.bf16 %v733_v52, %v725_v46  ;;  %v5566_v2 = vcombine.high %v958_v56, %v962_v58  ;;  %v5568_v3 = vcombine.high %v959_v59, %v963_v60  ;;  %v974_v14 = vld [vmem:[#allocation8 + $0x740] sm:$0xff]  ;;  %v991_v41 = vld [vmem:[#allocation8 + $0x7c8] sm:$0xff] }
 0x1a0   :  { %v5565_v10 = vcombine.low %v958_v56, %v962_v58  ;;  %v5567_v11 = vcombine.low %v959_v59, %v963_v60  ;;  %v5574_v12 = vcombine.high %v966_v4, %v970_v6  ;;  %v5576_v13 = vcombine.high %v967_v8, %v971_v9  ;;  %v994_v40 = vld [vmem:[#allocation8 + $0x7e0] sm:$0xff]  ;;  %v995_v7 = vld [vmem:[#allocation8 + $0x7e8] sm:$0xff] }
 0x1a1   :  { %v5573_v24 = vcombine.low %v966_v4, %v970_v6  ;;  %v5575_v25 = vcombine.low %v967_v8, %v971_v9  ;;  %v5582_v26 = vcombine.high %v974_v14, %v978_v19  ;;  %v5584_v27 = vcombine.high %v975_v20, %v979_v22  ;;  %v998_v47 = vld [vmem:[#allocation8 + $0x800] sm:$0xff]  ;;  %v1007_v60 = vld [vmem:[#allocation8 + $0x848] sm:$0xff] }
 0x1a2   :  { %3916 = vmatpush1.bf16.msra.mxu0 %v5541_v28  ;;  %4088 = vmatpush1.bf16.msra.mxu1 %v5543_v32  ;;  %v982_v28 = vld [vmem:[#allocation8 + $0x780] sm:$0xff]  ;;  %v987_v32 = vld [vmem:[#allocation8 + $0x7a8] sm:$0xff]  ;;  %v5581_v33 = vcombine.low %v974_v14, %v978_v19  ;;  %v5583_v35 = vcombine.low %v975_v20, %v979_v22  ;;  %v5598_v0 = vcombine.high %v990_v39, %v994_v40 }
 0x1a3   :  { %3917 = vmatprep.subr.bf16.mxu0 %v5550_v36  ;;  %4089 = vmatprep.subr.bf16.mxu1 %v5552_v37  ;;  %v5590_v36 = vcombine.high %v982_v28, %v986_v30  ;;  %v5592_v37 = vcombine.high %v983_v31, %v987_v32  ;;  %v5589_v43 = vcombine.low %v982_v28, %v986_v30  ;;  %v1002_v48 = vld [vmem:[#allocation8 + $0x820] sm:$0xff]  ;;  %v1015_v9 = vld [vmem:[#allocation8 + $0x888] sm:$0xff] }
 0x1a4   :  { %v5591_v45 = vcombine.low %v983_v31, %v987_v32  ;;  %v5600_v46 = vcombine.high %v991_v41, %v995_v7  ;;  %v5597_v52 = vcombine.low %v990_v39, %v994_v40  ;;  %v1006_v58 = vld [vmem:[#allocation8 + $0x840] sm:$0xff]  ;;  %v1023_v22 = vld [vmem:[#allocation8 + $0x8c8] sm:$0xff] }
 0x1a5   :  { %v1010_v59 = vld [vmem:[#allocation8 + $0x860] sm:$0xff]  ;;  %v1031_v32 = vld [vmem:[#allocation8 + $0x908] sm:$0xff] }
 0x1a6   :  { %3918 = vmatpush1.bf16.msra.mxu0 %v5549_v50  ;;  %4090 = vmatpush1.bf16.msra.mxu1 %v5551_v51  ;;  %v999_v50 = vld [vmem:[#allocation8 + $0x808] sm:$0xff]  ;;  %v1014_v6 = vld [vmem:[#allocation8 + $0x880] sm:$0xff] }
 0x1a7   :  { %3919 = vmatprep.subr.bf16.mxu0 %v5558_v54  ;;  %4091 = vmatprep.subr.bf16.mxu1 %v5560_v55  ;;  %v1003_v51 = vld [vmem:[#allocation8 + $0x828] sm:$0xff]  ;;  %v5599_v54 = vcombine.low %v991_v41, %v995_v7  ;;  %v5606_v55 = vcombine.high %v998_v47, %v1002_v48  ;;  %v1018_v8 = vld [vmem:[#allocation8 + $0x8a0] sm:$0xff] }
 0x1a8   :  { %v5608_v56 = vcombine.high %v999_v50, %v1003_v51  ;;  %v1022_v19 = vld [vmem:[#allocation8 + $0x8c0] sm:$0xff]  ;;  %v1039_v7 = vld [vmem:[#allocation8 + $0x948] sm:$0xff] }
 0x1a9   :  { %v1026_v20 = vld [vmem:[#allocation8 + $0x8e0] sm:$0xff] }
 0x1aa   :  { %3920 = vmatpush1.bf16.msra.mxu0 %v5557_v62  ;;  %4092 = vmatpush1.bf16.msra.mxu1 %v5559_v63  ;;  %v1011_v62 = vld [vmem:[#allocation8 + $0x868] sm:$0xff]  ;;  %v5605_v63 = vcombine.low %v998_v47, %v1002_v48  ;;  %v1030_v30 = vld [vmem:[#allocation8 + $0x900] sm:$0xff] }
 0x1ab   :  { %3921 = vmatprep.subr.bf16.mxu0 %v5566_v2  ;;  %4093 = vmatprep.subr.bf16.mxu1 %v5568_v3  ;;  %v5607_v2 = vcombine.low %v999_v50, %v1003_v51  ;;  %v5614_v3 = vcombine.high %v1006_v58, %v1010_v59  ;;  %v5616_v4 = vcombine.high %v1007_v60, %v1011_v62  ;;  %v1034_v31 = vld [vmem:[#allocation8 + $0x920] sm:$0xff]  ;;  %v1047_v51 = vld [vmem:[#allocation8 + $0x988] sm:$0xff] }
 0x1ac   :  { %v1038_v40 = vld [vmem:[#allocation8 + $0x940] sm:$0xff] }
 0x1ad   :  { %v1042_v41 = vld [vmem:[#allocation8 + $0x960] sm:$0xff] }
 0x1ae   :  { %3922 = vmatpush1.bf16.msra.mxu0 %v5565_v10  ;;  %4094 = vmatpush1.bf16.msra.mxu1 %v5567_v11  ;;  %v1019_v10 = vld [vmem:[#allocation8 + $0x8a8] sm:$0xff]  ;;  %v5613_v11 = vcombine.low %v1006_v58, %v1010_v59  ;;  %v1046_v48 = vld [vmem:[#allocation8 + $0x980] sm:$0xff] }
 0x1af   :  { %3923 = vmatprep.subr.bf16.mxu0 %v5574_v12  ;;  %4095 = vmatprep.subr.bf16.mxu1 %v5576_v13  ;;  %v5615_v12 = vcombine.low %v1007_v60, %v1011_v62  ;;  %v5622_v13 = vcombine.high %v1014_v6, %v1018_v8  ;;  %v5624_v14 = vcombine.high %v1015_v9, %v1019_v10  ;;  %v1050_v50 = vld [vmem:[#allocation8 + $0x9a0] sm:$0xff]  ;;  %v1055_v62 = vld [vmem:[#allocation8 + $0x9c8] sm:$0xff] }
 0x1b0   :  { %v1054_v59 = vld [vmem:[#allocation8 + $0x9c0] sm:$0xff] }
 0x1b1   :  { %v1058_v60 = vld [vmem:[#allocation8 + $0x9e0] sm:$0xff] }
 0x1b2   :  { %3924 = vmatpush1.bf16.msra.mxu0 %v5573_v24  ;;  %4096 = vmatpush1.bf16.msra.mxu1 %v5575_v25  ;;  %v1027_v24 = vld [vmem:[#allocation8 + $0x8e8] sm:$0xff]  ;;  %v5621_v25 = vcombine.low %v1014_v6, %v1018_v8  ;;  %v1062_v8 = vld [vmem:[#allocation8 + $0xa00] sm:$0xff] }
 0x1b3   :  { %3925 = vmatprep.subr.bf16.mxu0 %v5582_v26  ;;  %4097 = vmatprep.subr.bf16.mxu1 %v5584_v27  ;;  %v5623_v26 = vcombine.low %v1015_v9, %v1019_v10  ;;  %v5630_v27 = vcombine.high %v1022_v19, %v1026_v20  ;;  %v5632_v28 = vcombine.high %v1023_v22, %v1027_v24  ;;  %v1066_v9 = vld [vmem:[#allocation8 + $0xa20] sm:$0xff]  ;;  %v1063_v10 = vld [vmem:[#allocation8 + $0xa08] sm:$0xff] }
 0x1b6   :  { %3926 = vmatpush1.bf16.msra.mxu0 %v5581_v33  ;;  %4098 = vmatpush1.bf16.msra.mxu1 %v5583_v35  ;;  %v1035_v33 = vld [vmem:[#allocation8 + $0x928] sm:$0xff]  ;;  %v5629_v35 = vcombine.low %v1022_v19, %v1026_v20  ;;  %v1070_v20 = vld [vmem:[#allocation8 + $0xa40] sm:$0xff] }
 0x1b7   :  { %3927 = vmatprep.subr.bf16.mxu0 %v5590_v36  ;;  %4099 = vmatprep.subr.bf16.mxu1 %v5592_v37  ;;  %v5631_v36 = vcombine.low %v1023_v22, %v1027_v24  ;;  %v5638_v37 = vcombine.high %v1030_v30, %v1034_v31  ;;  %v5640_v39 = vcombine.high %v1031_v32, %v1035_v33  ;;  %v1074_v22 = vld [vmem:[#allocation8 + $0xa60] sm:$0xff]  ;;  %v1071_v24 = vld [vmem:[#allocation8 + $0xa48] sm:$0xff] }
 0x1ba   :  { %3928 = vmatpush1.bf16.msra.mxu0 %v5589_v43  ;;  %4100 = vmatpush1.bf16.msra.mxu1 %v5591_v45  ;;  %v1043_v43 = vld [vmem:[#allocation8 + $0x968] sm:$0xff]  ;;  %v5637_v45 = vcombine.low %v1030_v30, %v1034_v31  ;;  %v1078_v31 = vld [vmem:[#allocation8 + $0xa80] sm:$0xff] }
 0x1bb   :  { %3929 = vmatprep.subr.bf16.mxu0 %v5598_v0  ;;  %4101 = vmatprep.subr.bf16.mxu1 %v5600_v46  ;;  %v5639_v0 = vcombine.low %v1031_v32, %v1035_v33  ;;  %v5646_v46 = vcombine.high %v1038_v40, %v1042_v41  ;;  %v5648_v47 = vcombine.high %v1039_v7, %v1043_v43  ;;  %v1082_v32 = vld [vmem:[#allocation8 + $0xaa0] sm:$0xff]  ;;  %v1079_v33 = vld [vmem:[#allocation8 + $0xa88] sm:$0xff] }
 0x1be   :  { %3930 = vmatpush1.bf16.msra.mxu0 %v5597_v52  ;;  %4102 = vmatpush1.bf16.msra.mxu1 %v5599_v54  ;;  %v1051_v52 = vld [vmem:[#allocation8 + $0x9a8] sm:$0xff]  ;;  %v5645_v54 = vcombine.low %v1038_v40, %v1042_v41  ;;  %v1086_v41 = vld [vmem:[#allocation8 + $0xac0] sm:$0xff] }
 0x1bf   :  { %3942 = vmatprep.subr.bf16.mxu0 %v5606_v55  ;;  %4114 = vmatprep.subr.bf16.mxu1 %v5608_v56  ;;  %v5647_v55 = vcombine.low %v1039_v7, %v1043_v43  ;;  %v5654_v56 = vcombine.high %v1046_v48, %v1050_v50  ;;  %v5656_v58 = vcombine.high %v1047_v51, %v1051_v52  ;;  %v1090_v7 = vld [vmem:[#allocation8 + $0xae0] sm:$0xff]  ;;  %v1087_v43 = vld [vmem:[#allocation8 + $0xac8] sm:$0xff] }
 0x1c1   :  { %3932 = vmatmul.mubr.bf16.vlgmr.msra.gmra.mrb[8].mxu0 %v6549_v1  ;;  %4104 = vmatmul.mubr.bf16.vlgmr.msra.gmra.mrb[8].mxu1 %v6549_v1 }
 0x1c2   :  { %3943 = vmatpush1.bf16.msra.mxu0 %v5605_v63  ;;  %4115 = vmatpush1.bf16.msra.mxu1 %v5607_v2  ;;  %v1059_v63 = vld [vmem:[#allocation8 + $0x9e8] sm:$0xff]  ;;  %v5653_v2 = vcombine.low %v1046_v48, %v1050_v50  ;;  %v1094_v50 = vld [vmem:[#allocation8 + $0xb00] sm:$0xff] }
 0x1c3   :  { %3944 = vmatprep.subr.bf16.mxu0 %v5614_v3  ;;  %4116 = vmatprep.subr.bf16.mxu1 %v5616_v4  ;;  %v5655_v3 = vcombine.low %v1047_v51, %v1051_v52  ;;  %v5662_v4 = vcombine.high %v1054_v59, %v1058_v60  ;;  %v5664_v6 = vcombine.high %v1055_v62, %v1059_v63  ;;  %v1098_v51 = vld [vmem:[#allocation8 + $0xb20] sm:$0xff]  ;;  %v1095_v52 = vld [vmem:[#allocation8 + $0xb08] sm:$0xff] }
 0x1c4   :  { %3974 = vmatprep.mubr.bf16.mxu0 %v6573_v17  ;;  %4146 = vmatprep.mubr.bf16.mxu1 %v6573_v17 }
 0x1c6   :  { %3945 = vmatpush1.bf16.msra.mxu0 %v5613_v11  ;;  %4117 = vmatpush1.bf16.msra.mxu1 %v5615_v12  ;;  %v1067_v11 = vld [vmem:[#allocation8 + $0xa28] sm:$0xff]  ;;  %v5661_v12 = vcombine.low %v1054_v59, %v1058_v60  ;;  %v1102_v60 = vld [vmem:[#allocation8 + $0xb40] sm:$0xff] }
 0x1c7   :  { %3946 = vmatprep.subr.bf16.mxu0 %v5622_v13  ;;  %4118 = vmatprep.subr.bf16.mxu1 %v5624_v14  ;;  %v5663_v13 = vcombine.low %v1055_v62, %v1059_v63  ;;  %v5670_v14 = vcombine.high %v1062_v8, %v1066_v9  ;;  %v5672_v19 = vcombine.high %v1063_v10, %v1067_v11  ;;  %v1106_v62 = vld [vmem:[#allocation8 + $0xb60] sm:$0xff]  ;;  %v1103_v63 = vld [vmem:[#allocation8 + $0xb48] sm:$0xff] }
 0x1ca   :  { %3947 = vmatpush1.bf16.msra.mxu0 %v5621_v25  ;;  %4119 = vmatpush1.bf16.msra.mxu1 %v5623_v26  ;;  %v1075_v25 = vld [vmem:[#allocation8 + $0xa68] sm:$0xff]  ;;  %v5669_v26 = vcombine.low %v1062_v8, %v1066_v9  ;;  %v1110_v9 = vld [vmem:[#allocation8 + $0xb80] sm:$0xff] }
 0x1cb   :  { %3948 = vmatprep.subr.bf16.mxu0 %v5630_v27  ;;  %4120 = vmatprep.subr.bf16.mxu1 %v5632_v28  ;;  %v5671_v27 = vcombine.low %v1063_v10, %v1067_v11  ;;  %v5678_v28 = vcombine.high %v1070_v20, %v1074_v22  ;;  %v5680_v30 = vcombine.high %v1071_v24, %v1075_v25  ;;  %v1114_v10 = vld [vmem:[#allocation8 + $0xba0] sm:$0xff]  ;;  %v1111_v11 = vld [vmem:[#allocation8 + $0xb88] sm:$0xff] }
 0x1ce   :  { %3949 = vmatpush1.bf16.msra.mxu0 %v5629_v35  ;;  %4121 = vmatpush1.bf16.msra.mxu1 %v5631_v36  ;;  %v1083_v35 = vld [vmem:[#allocation8 + $0xaa8] sm:$0xff]  ;;  %v5677_v36 = vcombine.low %v1070_v20, %v1074_v22  ;;  %v1118_v22 = vld [vmem:[#allocation8 + $0xbc0] sm:$0xff] }
 0x1cf   :  { %3950 = vmatprep.subr.bf16.mxu0 %v5638_v37  ;;  %4122 = vmatprep.subr.bf16.mxu1 %v5640_v39  ;;  %v5679_v37 = vcombine.low %v1071_v24, %v1075_v25  ;;  %v5686_v39 = vcombine.high %v1078_v31, %v1082_v32  ;;  %v5688_v40 = vcombine.high %v1079_v33, %v1083_v35  ;;  %v1122_v24 = vld [vmem:[#allocation8 + $0xbe0] sm:$0xff]  ;;  %v1119_v25 = vld [vmem:[#allocation8 + $0xbc8] sm:$0xff] }
 0x1d2   :  { %3951 = vmatpush1.bf16.msra.mxu0 %v5637_v45  ;;  %4123 = vmatpush1.bf16.msra.mxu1 %v5639_v0  ;;  %v1091_v45 = vld [vmem:[#allocation8 + $0xae8] sm:$0xff]  ;;  %v5685_v0 = vcombine.low %v1078_v31, %v1082_v32  ;;  %v1126_v32 = vld [vmem:[#allocation8 + $0xc00] sm:$0xff] }
 0x1d3   :  { %3952 = vmatprep.subr.bf16.mxu0 %v5646_v46  ;;  %4124 = vmatprep.subr.bf16.mxu1 %v5648_v47  ;;  %v5687_v46 = vcombine.low %v1079_v33, %v1083_v35  ;;  %v5694_v47 = vcombine.high %v1086_v41, %v1090_v7  ;;  %v5696_v48 = vcombine.high %v1087_v43, %v1091_v45  ;;  %v1130_v33 = vld [vmem:[#allocation8 + $0xc20] sm:$0xff]  ;;  %v1127_v35 = vld [vmem:[#allocation8 + $0xc08] sm:$0xff] }
 0x1d6   :  { %3953 = vmatpush1.bf16.msra.mxu0 %v5645_v54  ;;  %4125 = vmatpush1.bf16.msra.mxu1 %v5647_v55  ;;  %v1099_v54 = vld [vmem:[#allocation8 + $0xb28] sm:$0xff]  ;;  %v5693_v55 = vcombine.low %v1086_v41, %v1090_v7  ;;  %v1134_v7 = vld [vmem:[#allocation8 + $0xc40] sm:$0xff] }
 0x1d7   :  { %3954 = vmatprep.subr.bf16.mxu0 %v5654_v56  ;;  %4126 = vmatprep.subr.bf16.mxu1 %v5656_v58  ;;  %v5695_v56 = vcombine.low %v1087_v43, %v1091_v45  ;;  %v5702_v58 = vcombine.high %v1094_v50, %v1098_v51  ;;  %v5704_v59 = vcombine.high %v1095_v52, %v1099_v54  ;;  %v1138_v43 = vld [vmem:[#allocation8 + $0xc60] sm:$0xff]  ;;  %v1135_v45 = vld [vmem:[#allocation8 + $0xc48] sm:$0xff] }
 0x1da   :  { %3955 = vmatpush1.bf16.msra.mxu0 %v5653_v2  ;;  %4127 = vmatpush1.bf16.msra.mxu1 %v5655_v3  ;;  %v1107_v2 = vld [vmem:[#allocation8 + $0xb68] sm:$0xff]  ;;  %v5701_v3 = vcombine.low %v1094_v50, %v1098_v51  ;;  %v1142_v51 = vld [vmem:[#allocation8 + $0xc80] sm:$0xff] }
 0x1db   :  { %3956 = vmatprep.subr.bf16.mxu0 %v5662_v4  ;;  %4128 = vmatprep.subr.bf16.mxu1 %v5664_v6  ;;  %v5703_v4 = vcombine.low %v1095_v52, %v1099_v54  ;;  %v5710_v6 = vcombine.high %v1102_v60, %v1106_v62  ;;  %v5712_v8 = vcombine.high %v1103_v63, %v1107_v2  ;;  %v1146_v52 = vld [vmem:[#allocation8 + $0xca0] sm:$0xff]  ;;  %v1143_v54 = vld [vmem:[#allocation8 + $0xc88] sm:$0xff] }
 0x1de   :  { %3957 = vmatpush1.bf16.msra.mxu0 %v5661_v12  ;;  %4129 = vmatpush1.bf16.msra.mxu1 %v5663_v13  ;;  %v1115_v12 = vld [vmem:[#allocation8 + $0xba8] sm:$0xff]  ;;  %v5709_v13 = vcombine.low %v1102_v60, %v1106_v62  ;;  %v1150_v62 = vld [vmem:[#allocation8 + $0xcc0] sm:$0xff] }
 0x1df   :  { %3958 = vmatprep.subr.bf16.mxu0 %v5670_v14  ;;  %4130 = vmatprep.subr.bf16.mxu1 %v5672_v19  ;;  %v5711_v14 = vcombine.low %v1103_v63, %v1107_v2  ;;  %v5718_v19 = vcombine.high %v1110_v9, %v1114_v10  ;;  %v5720_v20 = vcombine.high %v1111_v11, %v1115_v12  ;;  %v1154_v63 = vld [vmem:[#allocation8 + $0xce0] sm:$0xff]  ;;  %v1151_v2 = vld [vmem:[#allocation8 + $0xcc8] sm:$0xff] }
 0x1e2   :  { %3959 = vmatpush1.bf16.msra.mxu0 %v5669_v26  ;;  %4131 = vmatpush1.bf16.msra.mxu1 %v5671_v27  ;;  %v1123_v26 = vld [vmem:[#allocation8 + $0xbe8] sm:$0xff]  ;;  %v5717_v27 = vcombine.low %v1110_v9, %v1114_v10  ;;  %v1158_v10 = vld [vmem:[#allocation8 + $0xd00] sm:$0xff] }
 0x1e3   :  { %3960 = vmatprep.subr.bf16.mxu0 %v5678_v28  ;;  %4132 = vmatprep.subr.bf16.mxu1 %v5680_v30  ;;  %v5719_v28 = vcombine.low %v1111_v11, %v1115_v12  ;;  %v5726_v30 = vcombine.high %v1118_v22, %v1122_v24  ;;  %v5728_v31 = vcombine.high %v1119_v25, %v1123_v26  ;;  %v1162_v11 = vld [vmem:[#allocation8 + $0xd20] sm:$0xff]  ;;  %v1159_v12 = vld [vmem:[#allocation8 + $0xd08] sm:$0xff] }
 0x1e6   :  { %3961 = vmatpush1.bf16.msra.mxu0 %v5677_v36  ;;  %4133 = vmatpush1.bf16.msra.mxu1 %v5679_v37  ;;  %v1131_v36 = vld [vmem:[#allocation8 + $0xc28] sm:$0xff]  ;;  %v5725_v37 = vcombine.low %v1118_v22, %v1122_v24  ;;  %v1166_v24 = vld [vmem:[#allocation8 + $0xd40] sm:$0xff] }
 0x1e7   :  { %3962 = vmatprep.subr.bf16.mxu0 %v5686_v39  ;;  %4134 = vmatprep.subr.bf16.mxu1 %v5688_v40  ;;  %v5727_v39 = vcombine.low %v1119_v25, %v1123_v26  ;;  %v5734_v40 = vcombine.high %v1126_v32, %v1130_v33  ;;  %v5736_v41 = vcombine.high %v1127_v35, %v1131_v36  ;;  %v1170_v25 = vld [vmem:[#allocation8 + $0xd60] sm:$0xff]  ;;  %v1167_v26 = vld [vmem:[#allocation8 + $0xd48] sm:$0xff] }
 0x1ea   :  { %3963 = vmatpush1.bf16.msra.mxu0 %v5685_v0  ;;  %4135 = vmatpush1.bf16.msra.mxu1 %v5687_v46  ;;  %v1139_v0 = vld [vmem:[#allocation8 + $0xc68] sm:$0xff]  ;;  %v5733_v46 = vcombine.low %v1126_v32, %v1130_v33  ;;  %v1174_v33 = vld [vmem:[#allocation8 + $0xd80] sm:$0xff] }
 0x1eb   :  { %3964 = vmatprep.subr.bf16.mxu0 %v5694_v47  ;;  %4136 = vmatprep.subr.bf16.mxu1 %v5696_v48  ;;  %v5735_v47 = vcombine.low %v1127_v35, %v1131_v36  ;;  %v5742_v48 = vcombine.high %v1134_v7, %v1138_v43  ;;  %v5744_v50 = vcombine.high %v1135_v45, %v1139_v0  ;;  %v1178_v35 = vld [vmem:[#allocation8 + $0xda0] sm:$0xff]  ;;  %v1175_v36 = vld [vmem:[#allocation8 + $0xd88] sm:$0xff] }
 0x1ee   :  { %3965 = vmatpush1.bf16.msra.mxu0 %v5693_v55  ;;  %4137 = vmatpush1.bf16.msra.mxu1 %v5695_v56  ;;  %v1147_v55 = vld [vmem:[#allocation8 + $0xca8] sm:$0xff]  ;;  %v5741_v56 = vcombine.low %v1134_v7, %v1138_v43  ;;  %v1182_v43 = vld [vmem:[#allocation8 + $0xdc0] sm:$0xff] }
 0x1ef   :  { %3966 = vmatprep.subr.bf16.mxu0 %v5702_v58  ;;  %4138 = vmatprep.subr.bf16.mxu1 %v5704_v59  ;;  %v5743_v58 = vcombine.low %v1135_v45, %v1139_v0  ;;  %v5750_v59 = vcombine.high %v1142_v51, %v1146_v52  ;;  %v5752_v60 = vcombine.high %v1143_v54, %v1147_v55  ;;  %v1186_v45 = vld [vmem:[#allocation8 + $0xde0] sm:$0xff]  ;;  %v1183_v0 = vld [vmem:[#allocation8 + $0xdc8] sm:$0xff] }
 0x1f2   :  { %3967 = vmatpush1.bf16.msra.mxu0 %v5701_v3  ;;  %4139 = vmatpush1.bf16.msra.mxu1 %v5703_v4  ;;  %v1155_v3 = vld [vmem:[#allocation8 + $0xce8] sm:$0xff]  ;;  %v5749_v4 = vcombine.low %v1142_v51, %v1146_v52  ;;  %v1190_v52 = vld [vmem:[#allocation8 + $0xe00] sm:$0xff] }
 0x1f3   :  { %3968 = vmatprep.subr.bf16.mxu0 %v5710_v6  ;;  %4140 = vmatprep.subr.bf16.mxu1 %v5712_v8  ;;  %v5751_v6 = vcombine.low %v1143_v54, %v1147_v55  ;;  %v5758_v8 = vcombine.high %v1150_v62, %v1154_v63  ;;  %v5760_v9 = vcombine.high %v1151_v2, %v1155_v3  ;;  %v1194_v54 = vld [vmem:[#allocation8 + $0xe20] sm:$0xff]  ;;  %v1191_v55 = vld [vmem:[#allocation8 + $0xe08] sm:$0xff] }
 0x1f6   :  { %3969 = vmatpush1.bf16.msra.mxu0 %v5709_v13  ;;  %4141 = vmatpush1.bf16.msra.mxu1 %v5711_v14  ;;  %v1163_v13 = vld [vmem:[#allocation8 + $0xd28] sm:$0xff]  ;;  %v5757_v14 = vcombine.low %v1150_v62, %v1154_v63  ;;  %v1198_v63 = vld [vmem:[#allocation8 + $0xe40] sm:$0xff] }
 0x1f7   :  { %3970 = vmatprep.subr.bf16.mxu0 %v5718_v19  ;;  %4142 = vmatprep.subr.bf16.mxu1 %v5720_v20  ;;  %v5759_v19 = vcombine.low %v1151_v2, %v1155_v3  ;;  %v5766_v20 = vcombine.high %v1158_v10, %v1162_v11  ;;  %v5768_v22 = vcombine.high %v1159_v12, %v1163_v13  ;;  %v1202_v2 = vld [vmem:[#allocation8 + $0xe60] sm:$0xff]  ;;  %v1199_v3 = vld [vmem:[#allocation8 + $0xe48] sm:$0xff] }
 0x1fa   :  { %3971 = vmatpush1.bf16.msra.mxu0 %v5717_v27  ;;  %4143 = vmatpush1.bf16.msra.mxu1 %v5719_v28  ;;  %v1171_v27 = vld [vmem:[#allocation8 + $0xd68] sm:$0xff]  ;;  %v5765_v28 = vcombine.low %v1158_v10, %v1162_v11  ;;  %v1206_v11 = vld [vmem:[#allocation8 + $0xe80] sm:$0xff] }
 0x1fb   :  { %3972 = vmatprep.subr.bf16.mxu0 %v5726_v30  ;;  %4144 = vmatprep.subr.bf16.mxu1 %v5728_v31  ;;  %v5767_v30 = vcombine.low %v1159_v12, %v1163_v13  ;;  %v5774_v31 = vcombine.high %v1166_v24, %v1170_v25  ;;  %v5776_v32 = vcombine.high %v1167_v26, %v1171_v27  ;;  %v1210_v12 = vld [vmem:[#allocation8 + $0xea0] sm:$0xff]  ;;  %v1207_v13 = vld [vmem:[#allocation8 + $0xe88] sm:$0xff] }
 0x1fe   :  { %3973 = vmatpush1.bf16.msra.mxu0 %v5725_v37  ;;  %4145 = vmatpush1.bf16.msra.mxu1 %v5727_v39  ;;  %v1179_v37 = vld [vmem:[#allocation8 + $0xda8] sm:$0xff]  ;;  %v5773_v39 = vcombine.low %v1166_v24, %v1170_v25  ;;  %v1214_v25 = vld [vmem:[#allocation8 + $0xec0] sm:$0xff] }
 0x1ff   :  { %3985 = vmatprep.subr.bf16.mxu0 %v5734_v40  ;;  %4157 = vmatprep.subr.bf16.mxu1 %v5736_v41  ;;  %v5775_v40 = vcombine.low %v1167_v26, %v1171_v27  ;;  %v5782_v41 = vcombine.high %v1174_v33, %v1178_v35  ;;  %v5784_v7 = vcombine.high %v1175_v36, %v1179_v37  ;;  %v1218_v26 = vld [vmem:[#allocation8 + $0xee0] sm:$0xff]  ;;  %v1215_v27 = vld [vmem:[#allocation8 + $0xec8] sm:$0xff] }
 0x201   :  { %3975 = vmatmul.mubr.bf16.vlgmr.msra.gmra.mrb[8].mxu0 %v6571_v29  ;;  %4147 = vmatmul.mubr.bf16.vlgmr.msra.gmra.mrb[8].mxu1 %v6571_v29 }
 0x202   :  { %3986 = vmatpush1.bf16.msra.mxu0 %v5733_v46  ;;  %4158 = vmatpush1.bf16.msra.mxu1 %v5735_v47  ;;  %v1187_v46 = vld [vmem:[#allocation8 + $0xde8] sm:$0xff]  ;;  %v5781_v47 = vcombine.low %v1174_v33, %v1178_v35  ;;  %v1222_v35 = vld [vmem:[#allocation8 + $0xf00] sm:$0xff] }
 0x203   :  { %3987 = vmatprep.subr.bf16.mxu0 %v5742_v48  ;;  %4159 = vmatprep.subr.bf16.mxu1 %v5744_v50  ;;  %v5783_v48 = vcombine.low %v1175_v36, %v1179_v37  ;;  %v5790_v50 = vcombine.high %v1182_v43, %v1186_v45  ;;  %v5792_v51 = vcombine.high %v1183_v0, %v1187_v46  ;;  %v1226_v36 = vld [vmem:[#allocation8 + $0xf20] sm:$0xff]  ;;  %v1223_v37 = vld [vmem:[#allocation8 + $0xf08] sm:$0xff] }
 0x204   :  { %4017 = vmatprep.mubr.bf16.mxu0 %v6577_v61  ;;  %4189 = vmatprep.mubr.bf16.mxu1 %v6577_v61 }
 0x206   :  { %3988 = vmatpush1.bf16.msra.mxu0 %v5741_v56  ;;  %4160 = vmatpush1.bf16.msra.mxu1 %v5743_v58  ;;  %v1195_v56 = vld [vmem:[#allocation8 + $0xe28] sm:$0xff]  ;;  %v5789_v58 = vcombine.low %v1182_v43, %v1186_v45  ;;  %v1230_v45 = vld [vmem:[#allocation8 + $0xf40] sm:$0xff] }
 0x207   :  { %3989 = vmatprep.subr.bf16.mxu0 %v5750_v59  ;;  %4161 = vmatprep.subr.bf16.mxu1 %v5752_v60  ;;  %v5791_v59 = vcombine.low %v1183_v0, %v1187_v46  ;;  %v5798_v60 = vcombine.high %v1190_v52, %v1194_v54  ;;  %v5800_v62 = vcombine.high %v1191_v55, %v1195_v56  ;;  %v1234_v0 = vld [vmem:[#allocation8 + $0xf60] sm:$0xff]  ;;  %v1231_v46 = vld [vmem:[#allocation8 + $0xf48] sm:$0xff] }
 0x20a   :  { %3990 = vmatpush1.bf16.msra.mxu0 %v5749_v4  ;;  %4162 = vmatpush1.bf16.msra.mxu1 %v5751_v6  ;;  %v1203_v4 = vld [vmem:[#allocation8 + $0xe68] sm:$0xff]  ;;  %v5797_v6 = vcombine.low %v1190_v52, %v1194_v54  ;;  %v1238_v54 = vld [vmem:[#allocation8 + $0xf80] sm:$0xff] }
 0x20b   :  { %3991 = vmatprep.subr.bf16.mxu0 %v5758_v8  ;;  %4163 = vmatprep.subr.bf16.mxu1 %v5760_v9  ;;  %v5799_v8 = vcombine.low %v1191_v55, %v1195_v56  ;;  %v5806_v9 = vcombine.high %v1198_v63, %v1202_v2  ;;  %v5808_v10 = vcombine.high %v1199_v3, %v1203_v4  ;;  %v1242_v55 = vld [vmem:[#allocation8 + $0xfa0] sm:$0xff]  ;;  %v1239_v56 = vld [vmem:[#allocation8 + $0xf88] sm:$0xff] }
 0x20e   :  { %3992 = vmatpush1.bf16.msra.mxu0 %v5757_v14  ;;  %4164 = vmatpush1.bf16.msra.mxu1 %v5759_v19  ;;  %v1211_v14 = vld [vmem:[#allocation8 + $0xea8] sm:$0xff]  ;;  %v5805_v19 = vcombine.low %v1198_v63, %v1202_v2  ;;  %v1246_v2 = vld [vmem:[#allocation8 + $0xfc0] sm:$0xff] }
 0x20f   :  { %3993 = vmatprep.subr.bf16.mxu0 %v5766_v20  ;;  %4165 = vmatprep.subr.bf16.mxu1 %v5768_v22  ;;  %v5807_v20 = vcombine.low %v1199_v3, %v1203_v4  ;;  %v5814_v22 = vcombine.high %v1206_v11, %v1210_v12  ;;  %v5816_v24 = vcombine.high %v1207_v13, %v1211_v14  ;;  %v1250_v3 = vld [vmem:[#allocation8 + $0xfe0] sm:$0xff]  ;;  %v1247_v4 = vld [vmem:[#allocation8 + $0xfc8] sm:$0xff] }
 0x212   :  { %3994 = vmatpush1.bf16.msra.mxu0 %v5765_v28  ;;  %4166 = vmatpush1.bf16.msra.mxu1 %v5767_v30  ;;  %v1219_v28 = vld [vmem:[#allocation8 + $0xee8] sm:$0xff]  ;;  %v5813_v30 = vcombine.low %v1206_v11, %v1210_v12  ;;  %v744_v12 = vld [vmem:[#allocation8 + $0x10] sm:$0xff] }
 0x213   :  { %3995 = vmatprep.subr.bf16.mxu0 %v5774_v31  ;;  %4167 = vmatprep.subr.bf16.mxu1 %v5776_v32  ;;  %v5815_v31 = vcombine.low %v1207_v13, %v1211_v14  ;;  %v5822_v32 = vcombine.high %v1214_v25, %v1218_v26  ;;  %v5824_v33 = vcombine.high %v1215_v27, %v1219_v28  ;;  %v748_v13 = vld [vmem:[#allocation8 + $0x30] sm:$0xff]  ;;  %v745_v14 = vld [vmem:[#allocation8 + $0x18] sm:$0xff] }
 0x216   :  { %3996 = vmatpush1.bf16.msra.mxu0 %v5773_v39  ;;  %4168 = vmatpush1.bf16.msra.mxu1 %v5775_v40  ;;  %v1227_v39 = vld [vmem:[#allocation8 + $0xf28] sm:$0xff]  ;;  %v5821_v40 = vcombine.low %v1214_v25, %v1218_v26  ;;  %v752_v26 = vld [vmem:[#allocation8 + $0x50] sm:$0xff] }
 0x217   :  { %3997 = vmatprep.subr.bf16.mxu0 %v5782_v41  ;;  %4169 = vmatprep.subr.bf16.mxu1 %v5784_v7  ;;  %v5823_v41 = vcombine.low %v1215_v27, %v1219_v28  ;;  %v5830_v7 = vcombine.high %v1222_v35, %v1226_v36  ;;  %v5832_v43 = vcombine.high %v1223_v37, %v1227_v39  ;;  %v756_v27 = vld [vmem:[#allocation8 + $0x70] sm:$0xff]  ;;  %v753_v28 = vld [vmem:[#allocation8 + $0x58] sm:$0xff] }
 0x21a   :  { %3998 = vmatpush1.bf16.msra.mxu0 %v5781_v47  ;;  %4170 = vmatpush1.bf16.msra.mxu1 %v5783_v48  ;;  %v1235_v47 = vld [vmem:[#allocation8 + $0xf68] sm:$0xff]  ;;  %v5829_v48 = vcombine.low %v1222_v35, %v1226_v36  ;;  %v760_v36 = vld [vmem:[#allocation8 + $0x90] sm:$0xff] }
 0x21b   :  { %3999 = vmatprep.subr.bf16.mxu0 %v5790_v50  ;;  %4171 = vmatprep.subr.bf16.mxu1 %v5792_v51  ;;  %v5831_v50 = vcombine.low %v1223_v37, %v1227_v39  ;;  %v5838_v51 = vcombine.high %v1230_v45, %v1234_v0  ;;  %v5840_v52 = vcombine.high %v1231_v46, %v1235_v47  ;;  %v764_v37 = vld [vmem:[#allocation8 + $0xb0] sm:$0xff]  ;;  %v761_v39 = vld [vmem:[#allocation8 + $0x98] sm:$0xff] }
 0x21e   :  { %4000 = vmatpush1.bf16.msra.mxu0 %v5789_v58  ;;  %4172 = vmatpush1.bf16.msra.mxu1 %v5791_v59  ;;  %v1243_v58 = vld [vmem:[#allocation8 + $0xfa8] sm:$0xff]  ;;  %v5837_v59 = vcombine.low %v1230_v45, %v1234_v0  ;;  %v768_v0 = vld [vmem:[#allocation8 + $0xd0] sm:$0xff] }
 0x21f   :  { %4001 = vmatprep.subr.bf16.mxu0 %v5798_v60  ;;  %4173 = vmatprep.subr.bf16.mxu1 %v5800_v62  ;;  %v5839_v60 = vcombine.low %v1231_v46, %v1235_v47  ;;  %v5846_v62 = vcombine.high %v1238_v54, %v1242_v55  ;;  %v5848_v63 = vcombine.high %v1239_v56, %v1243_v58  ;;  %v772_v46 = vld [vmem:[#allocation8 + $0xf0] sm:$0xff]  ;;  %v769_v47 = vld [vmem:[#allocation8 + $0xd8] sm:$0xff] }
 0x222   :  { %4002 = vmatpush1.bf16.msra.mxu0 %v5797_v6  ;;  %4174 = vmatpush1.bf16.msra.mxu1 %v5799_v8  ;;  %v1251_v6 = vld [vmem:[#allocation8 + $0xfe8] sm:$0xff]  ;;  %v5845_v8 = vcombine.low %v1238_v54, %v1242_v55  ;;  %v776_v55 = vld [vmem:[#allocation8 + $0x110] sm:$0xff] }
 0x223   :  { %4003 = vmatprep.subr.bf16.mxu0 %v5806_v9  ;;  %4175 = vmatprep.subr.bf16.mxu1 %v5808_v10  ;;  %v5847_v9 = vcombine.low %v1239_v56, %v1243_v58  ;;  %v5854_v10 = vcombine.high %v1246_v2, %v1250_v3  ;;  %v5856_v11 = vcombine.high %v1247_v4, %v1251_v6  ;;  %v780_v56 = vld [vmem:[#allocation8 + $0x130] sm:$0xff]  ;;  %v781_v58 = vld [vmem:[#allocation8 + $0x138] sm:$0xff] }
 0x226   :  { %4004 = vmatpush1.bf16.msra.mxu0 %v5805_v19  ;;  %4176 = vmatpush1.bf16.msra.mxu1 %v5807_v20  ;;  %v749_v19 = vld [vmem:[#allocation8 + $0x38] sm:$0xff]  ;;  %v5853_v20 = vcombine.low %v1246_v2, %v1250_v3  ;;  %v784_v2 = vld [vmem:[#allocation8 + $0x150] sm:$0xff] }
 0x227   :  { %4005 = vmatprep.subr.bf16.mxu0 %v5814_v22  ;;  %4177 = vmatprep.subr.bf16.mxu1 %v5816_v24  ;;  %v5855_v22 = vcombine.low %v1247_v4, %v1251_v6  ;;  %v5354_v24 = vcombine.high %v744_v12, %v748_v13  ;;  %v5356_v25 = vcombine.high %v745_v14, %v749_v19  ;;  %v788_v3 = vld [vmem:[#allocation8 + $0x170] sm:$0xff]  ;;  %v785_v4 = vld [vmem:[#allocation8 + $0x158] sm:$0xff] }
 0x228   :  { %v789_v6 = vld [vmem:[#allocation8 + $0x178] sm:$0xff] }
 0x22a   :  { %4006 = vmatpush1.bf16.msra.mxu0 %v5813_v30  ;;  %4178 = vmatpush1.bf16.msra.mxu1 %v5815_v31  ;;  %v757_v30 = vld [vmem:[#allocation8 + $0x78] sm:$0xff]  ;;  %v5353_v31 = vcombine.low %v744_v12, %v748_v13  ;;  %v792_v12 = vld [vmem:[#allocation8 + $0x190] sm:$0xff] }
 0x22b   :  { %4007 = vmatprep.subr.bf16.mxu0 %v5822_v32  ;;  %4179 = vmatprep.subr.bf16.mxu1 %v5824_v33  ;;  %v5355_v32 = vcombine.low %v745_v14, %v749_v19  ;;  %v5362_v33 = vcombine.high %v752_v26, %v756_v27  ;;  %v5364_v35 = vcombine.high %v753_v28, %v757_v30  ;;  %v796_v13 = vld [vmem:[#allocation8 + $0x1b0] sm:$0xff]  ;;  %v793_v14 = vld [vmem:[#allocation8 + $0x198] sm:$0xff] }
 0x22c   :  { %v797_v19 = vld [vmem:[#allocation8 + $0x1b8] sm:$0xff] }
 0x22e   :  { %4008 = vmatpush1.bf16.msra.mxu0 %v5821_v40  ;;  %4180 = vmatpush1.bf16.msra.mxu1 %v5823_v41  ;;  %v765_v40 = vld [vmem:[#allocation8 + $0xb8] sm:$0xff]  ;;  %v5361_v41 = vcombine.low %v752_v26, %v756_v27  ;;  %v800_v26 = vld [vmem:[#allocation8 + $0x1d0] sm:$0xff] }
 0x22f   :  { %4009 = vmatprep.subr.bf16.mxu0 %v5830_v7  ;;  %4181 = vmatprep.subr.bf16.mxu1 %v5832_v43  ;;  %v5363_v7 = vcombine.low %v753_v28, %v757_v30  ;;  %v5370_v43 = vcombine.high %v760_v36, %v764_v37  ;;  %v5372_v45 = vcombine.high %v761_v39, %v765_v40  ;;  %v804_v27 = vld [vmem:[#allocation8 + $0x1f0] sm:$0xff]  ;;  %v801_v28 = vld [vmem:[#allocation8 + $0x1d8] sm:$0xff] }
 0x230   :  { %v805_v30 = vld [vmem:[#allocation8 + $0x1f8] sm:$0xff] }
 0x232   :  { %4010 = vmatpush1.bf16.msra.mxu0 %v5829_v48  ;;  %4182 = vmatpush1.bf16.msra.mxu1 %v5831_v50  ;;  %v773_v48 = vld [vmem:[#allocation8 + $0xf8] sm:$0xff]  ;;  %v5369_v50 = vcombine.low %v760_v36, %v764_v37  ;;  %v808_v36 = vld [vmem:[#allocation8 + $0x210] sm:$0xff] }
 0x233   :  { %4011 = vmatprep.subr.bf16.mxu0 %v5838_v51  ;;  %4183 = vmatprep.subr.bf16.mxu1 %v5840_v52  ;;  %v5371_v51 = vcombine.low %v761_v39, %v765_v40  ;;  %v5378_v52 = vcombine.high %v768_v0, %v772_v46  ;;  %v5380_v54 = vcombine.high %v769_v47, %v773_v48  ;;  %v812_v37 = vld [vmem:[#allocation8 + $0x230] sm:$0xff]  ;;  %v809_v39 = vld [vmem:[#allocation8 + $0x218] sm:$0xff] }
 0x234   :  { %v813_v40 = vld [vmem:[#allocation8 + $0x238] sm:$0xff] }
 0x236   :  { %4012 = vmatpush1.bf16.msra.mxu0 %v5837_v59  ;;  %4184 = vmatpush1.bf16.msra.mxu1 %v5839_v60  ;;  %v5377_v59 = vcombine.low %v768_v0, %v772_v46  ;;  %v5379_v60 = vcombine.low %v769_v47, %v773_v48  ;;  %v816_v0 = vld [vmem:[#allocation8 + $0x250] sm:$0xff]  ;;  %v817_v47 = vld [vmem:[#allocation8 + $0x258] sm:$0xff] }
 0x237   :  { %4013 = vmatprep.subr.bf16.mxu0 %v5846_v62  ;;  %4185 = vmatprep.subr.bf16.mxu1 %v5848_v63  ;;  %v5386_v62 = vcombine.high %v776_v55, %v780_v56  ;;  %v820_v46 = vld [vmem:[#allocation8 + $0x270] sm:$0xff]  ;;  %v821_v48 = vld [vmem:[#allocation8 + $0x278] sm:$0xff] }
 0x23a   :  { %4014 = vmatpush1.bf16.msra.mxu0 %v5845_v8  ;;  %4186 = vmatpush1.bf16.msra.mxu1 %v5847_v9  ;;  %v5385_v8 = vcombine.low %v776_v55, %v780_v56  ;;  %v824_v55 = vld [vmem:[#allocation8 + $0x290] sm:$0xff] }
 0x23b   :  { %4015 = vmatprep.subr.bf16.mxu0 %v5854_v10  ;;  %4187 = vmatprep.subr.bf16.mxu1 %v5856_v11  ;;  %v5394_v10 = vcombine.high %v784_v2, %v788_v3  ;;  %v5396_v11 = vcombine.high %v785_v4, %v789_v6  ;;  %v828_v56 = vld [vmem:[#allocation8 + $0x2b0] sm:$0xff] }
 0x23e   :  { %4016 = vmatpush1.bf16.msra.mxu0 %v5853_v20  ;;  %4188 = vmatpush1.bf16.msra.mxu1 %v5855_v22  ;;  %v5393_v20 = vcombine.low %v784_v2, %v788_v3  ;;  %v5395_v22 = vcombine.low %v785_v4, %v789_v6  ;;  %v832_v2 = vld [vmem:[#allocation8 + $0x2d0] sm:$0xff]  ;;  %v833_v4 = vld [vmem:[#allocation8 + $0x2d8] sm:$0xff] }
 0x23f   :  { %4200 = vmatprep.subr.bf16.mxu0 %v5354_v24  ;;  %4372 = vmatprep.subr.bf16.mxu1 %v5356_v25  ;;  %v5402_v24 = vcombine.high %v792_v12, %v796_v13  ;;  %v5404_v25 = vcombine.high %v793_v14, %v797_v19  ;;  %v836_v3 = vld [vmem:[#allocation8 + $0x2f0] sm:$0xff]  ;;  %v837_v6 = vld [vmem:[#allocation8 + $0x2f8] sm:$0xff] }
 0x241   :  { %4018 = vmatmul.mubr.bf16.vlgmr.msra.gmra.mrb[8].mxu0 %v6575_v57  ;;  %4190 = vmatmul.mubr.bf16.vlgmr.msra.gmra.mrb[8].mxu1 %v6575_v57 }
 0x242   :  { %4201 = vmatpush1.bf16.msra.mxu0 %v5353_v31  ;;  %4232 = vmatprep.mubr.bf16.mxu0 %v6543_v44  ;;  %v5401_v31 = vcombine.low %v792_v12, %v796_v13  ;;  %v840_v12 = vld [vmem:[#allocation8 + $0x310] sm:$0xff] }
 0x243   :  { %4373 = vmatpush1.bf16.msra.mxu1 %v5355_v32  ;;  %4404 = vmatprep.mubr.bf16.mxu1 %v6543_v44  ;;  %v777_v44 = vld [vmem:[#allocation8 + $0x118] sm:$0xff]  ;;  %v5403_v32 = vcombine.low %v793_v14, %v797_v19  ;;  %v844_v13 = vld [vmem:[#allocation8 + $0x330] sm:$0xff] }
 0x244   :  { %4202 = vmatprep.subr.bf16.mxu0 %v5362_v33  ;;  %4374 = vmatprep.subr.bf16.mxu1 %v5364_v35  ;;  %v5388_v63 = vcombine.high %v777_v44, %v781_v58  ;;  %v5387_v9 = vcombine.low %v777_v44, %v781_v58  ;;  %v5410_v33 = vcombine.high %v800_v26, %v804_v27  ;;  %v825_v44 = vld [vmem:[#allocation8 + $0x298] sm:$0xff] }
 0x245   :  { %v5412_v35 = vcombine.high %v801_v28, %v805_v30  ;;  %v829_v58 = vld [vmem:[#allocation8 + $0x2b8] sm:$0xff] }
 0x246   :  { %4203 = vmatpush1.bf16.msra.mxu0 %v5361_v41  ;;  %v5409_v41 = vcombine.low %v800_v26, %v804_v27  ;;  %v841_v14 = vld [vmem:[#allocation8 + $0x318] sm:$0xff]  ;;  %v848_v26 = vld [vmem:[#allocation8 + $0x350] sm:$0xff] }
 0x247   :  { %4375 = vmatpush1.bf16.msra.mxu1 %v5363_v7  ;;  %4204 = vmatprep.subr.bf16.mxu0 %v5370_v43  ;;  %v5411_v7 = vcombine.low %v801_v28, %v805_v30  ;;  %v5418_v43 = vcombine.high %v808_v36, %v812_v37  ;;  %v845_v19 = vld [vmem:[#allocation8 + $0x338] sm:$0xff]  ;;  %v852_v27 = vld [vmem:[#allocation8 + $0x370] sm:$0xff] }
 0x248   :  { %4376 = vmatprep.subr.bf16.mxu1 %v5372_v45  ;;  %v5420_v45 = vcombine.high %v809_v39, %v813_v40  ;;  %v849_v28 = vld [vmem:[#allocation8 + $0x358] sm:$0xff] }
 0x249   :  { %v853_v30 = vld [vmem:[#allocation8 + $0x378] sm:$0xff] }
 0x24a   :  { %4205 = vmatpush1.bf16.msra.mxu0 %v5369_v50  ;;  %v5417_v50 = vcombine.low %v808_v36, %v812_v37  ;;  %v856_v36 = vld [vmem:[#allocation8 + $0x390] sm:$0xff] }
 0x24b   :  { %4377 = vmatpush1.bf16.msra.mxu1 %v5371_v51  ;;  %4206 = vmatprep.subr.bf16.mxu0 %v5378_v52  ;;  %v5419_v51 = vcombine.low %v809_v39, %v813_v40  ;;  %v5426_v52 = vcombine.high %v816_v0, %v820_v46  ;;  %v860_v37 = vld [vmem:[#allocation8 + $0x3b0] sm:$0xff]  ;;  %v857_v39 = vld [vmem:[#allocation8 + $0x398] sm:$0xff] }
 0x24c   :  { %4378 = vmatprep.subr.bf16.mxu1 %v5380_v54  ;;  %v5428_v54 = vcombine.high %v817_v47, %v821_v48  ;;  %v861_v40 = vld [vmem:[#allocation8 + $0x3b8] sm:$0xff] }
 0x24e   :  { %4207 = vmatpush1.bf16.msra.mxu0 %v5377_v59  ;;  %v5425_v59 = vcombine.low %v816_v0, %v820_v46  ;;  %v864_v0 = vld [vmem:[#allocation8 + $0x3d0] sm:$0xff] }
 0x24f   :  { %4379 = vmatpush1.bf16.msra.mxu1 %v5379_v60  ;;  %4208 = vmatprep.subr.bf16.mxu0 %v5386_v62  ;;  %v5427_v60 = vcombine.low %v817_v47, %v821_v48  ;;  %v5434_v62 = vcombine.high %v824_v55, %v828_v56  ;;  %v868_v46 = vld [vmem:[#allocation8 + $0x3f0] sm:$0xff]  ;;  %v865_v47 = vld [vmem:[#allocation8 + $0x3d8] sm:$0xff] }
 0x250   :  { %4380 = vmatprep.subr.bf16.mxu1 %v5388_v63  ;;  %v5436_v63 = vcombine.high %v825_v44, %v829_v58  ;;  %v869_v48 = vld [vmem:[#allocation8 + $0x3f8] sm:$0xff] }
 0x252   :  { %4209 = vmatpush1.bf16.msra.mxu0 %v5385_v8  ;;  %v5433_v8 = vcombine.low %v824_v55, %v828_v56  ;;  %v872_v55 = vld [vmem:[#allocation8 + $0x410] sm:$0xff] }
 0x253   :  { %4381 = vmatpush1.bf16.msra.mxu1 %v5387_v9  ;;  %4210 = vmatprep.subr.bf16.mxu0 %v5394_v10  ;;  %v5435_v9 = vcombine.low %v825_v44, %v829_v58  ;;  %v5442_v10 = vcombine.high %v832_v2, %v836_v3  ;;  %v876_v56 = vld [vmem:[#allocation8 + $0x430] sm:$0xff]  ;;  %v873_v44 = vld [vmem:[#allocation8 + $0x418] sm:$0xff] }
 0x254   :  { %4382 = vmatprep.subr.bf16.mxu1 %v5396_v11  ;;  %v5444_v11 = vcombine.high %v833_v4, %v837_v6  ;;  %v877_v58 = vld [vmem:[#allocation8 + $0x438] sm:$0xff] }
 0x256   :  { %4211 = vmatpush1.bf16.msra.mxu0 %v5393_v20  ;;  %v5441_v20 = vcombine.low %v832_v2, %v836_v3  ;;  %v880_v2 = vld [vmem:[#allocation8 + $0x450] sm:$0xff] }
 0x257   :  { %4383 = vmatpush1.bf16.msra.mxu1 %v5395_v22  ;;  %4212 = vmatprep.subr.bf16.mxu0 %v5402_v24  ;;  %v5443_v22 = vcombine.low %v833_v4, %v837_v6  ;;  %v5450_v24 = vcombine.high %v840_v12, %v844_v13  ;;  %v884_v3 = vld [vmem:[#allocation8 + $0x470] sm:$0xff]  ;;  %v5481_v4 = vcombine.low %v872_v55, %v876_v56  ;;  %v881_v6 = vld [vmem:[#allocation8 + $0x458] sm:$0xff] }
 0x258   :  { %4384 = vmatprep.subr.bf16.mxu1 %v5404_v25  ;;  %v5452_v25 = vcombine.high %v841_v14, %v845_v19 }
 0x25a   :  { %4213 = vmatpush1.bf16.msra.mxu0 %v5401_v31  ;;  %v5449_v31 = vcombine.low %v840_v12, %v844_v13  ;;  %v892_v12 = vld [vmem:[#allocation8 + $0x4b0] sm:$0xff] }
 0x25b   :  { %4385 = vmatpush1.bf16.msra.mxu1 %v5403_v32  ;;  %4214 = vmatprep.subr.bf16.mxu0 %v5410_v33  ;;  %v5451_v32 = vcombine.low %v841_v14, %v845_v19  ;;  %v5458_v33 = vcombine.high %v848_v26, %v852_v27  ;;  %v889_v14 = vld [vmem:[#allocation8 + $0x498] sm:$0xff] }
 0x25c   :  { %4386 = vmatprep.subr.bf16.mxu1 %v5412_v35  ;;  %v5460_v35 = vcombine.high %v849_v28, %v853_v30  ;;  %v893_v19 = vld [vmem:[#allocation8 + $0x4b8] sm:$0xff] }
 0x25e   :  { %4215 = vmatpush1.bf16.msra.mxu0 %v5409_v41  ;;  %v5457_v41 = vcombine.low %v848_v26, %v852_v27  ;;  %v896_v26 = vld [vmem:[#allocation8 + $0x4d0] sm:$0xff] }
 0x25f   :  { %4387 = vmatpush1.bf16.msra.mxu1 %v5411_v7  ;;  %4216 = vmatprep.subr.bf16.mxu0 %v5418_v43  ;;  %v5459_v7 = vcombine.low %v849_v28, %v853_v30  ;;  %v5466_v43 = vcombine.high %v856_v36, %v860_v37  ;;  %v900_v27 = vld [vmem:[#allocation8 + $0x4f0] sm:$0xff]  ;;  %v897_v28 = vld [vmem:[#allocation8 + $0x4d8] sm:$0xff] }
 0x260   :  { %4388 = vmatprep.subr.bf16.mxu1 %v5420_v45  ;;  %v5468_v45 = vcombine.high %v857_v39, %v861_v40  ;;  %v901_v30 = vld [vmem:[#allocation8 + $0x4f8] sm:$0xff] }
 0x262   :  { %4217 = vmatpush1.bf16.msra.mxu0 %v5417_v50  ;;  %v5465_v50 = vcombine.low %v856_v36, %v860_v37  ;;  %v908_v36 = vld [vmem:[#allocation8 + $0x530] sm:$0xff]  ;;  %v905_v37 = vld [vmem:[#allocation8 + $0x518] sm:$0xff] }
 0x263   :  { %4389 = vmatpush1.bf16.msra.mxu1 %v5419_v51  ;;  %4218 = vmatprep.subr.bf16.mxu0 %v5426_v52  ;;  %v5467_v51 = vcombine.low %v857_v39, %v861_v40  ;;  %v5474_v52 = vcombine.high %v864_v0, %v868_v46  ;;  %v909_v39 = vld [vmem:[#allocation8 + $0x538] sm:$0xff]  ;;  %v5507_v40 = vcombine.low %v897_v28, %v901_v30 }
 0x264   :  { %4390 = vmatprep.subr.bf16.mxu1 %v5428_v54  ;;  %v5476_v54 = vcombine.high %v865_v47, %v869_v48 }
 0x266   :  { %4219 = vmatpush1.bf16.msra.mxu0 %v5425_v59  ;;  %v5473_v59 = vcombine.low %v864_v0, %v868_v46  ;;  %v913_v0 = vld [vmem:[#allocation8 + $0x558] sm:$0xff] }
 0x267   :  { %4391 = vmatpush1.bf16.msra.mxu1 %v5427_v60  ;;  %4220 = vmatprep.subr.bf16.mxu0 %v5434_v62  ;;  %v5475_v60 = vcombine.low %v865_v47, %v869_v48  ;;  %v5482_v62 = vcombine.high %v872_v55, %v876_v56  ;;  %v917_v46 = vld [vmem:[#allocation8 + $0x578] sm:$0xff]  ;;  %v5515_v48 = vcombine.low %v905_v37, %v909_v39 }
 0x268   :  { %4392 = vmatprep.subr.bf16.mxu1 %v5436_v63  ;;  %v5484_v63 = vcombine.high %v873_v44, %v877_v58  ;;  %v921_v55 = vld [vmem:[#allocation8 + $0x598] sm:$0xff] }
 0x269   :  { %v925_v56 = vld [vmem:[#allocation8 + $0x5b8] sm:$0xff] }
 0x26a   :  { %4221 = vmatpush1.bf16.msra.mxu0 %v5433_v8  ;;  %v885_v8 = vld [vmem:[#allocation8 + $0x478] sm:$0xff] }
 0x26b   :  { %4393 = vmatpush1.bf16.msra.mxu1 %v5435_v9  ;;  %4222 = vmatprep.subr.bf16.mxu0 %v5442_v10  ;;  %v5483_v9 = vcombine.low %v873_v44, %v877_v58  ;;  %v5490_v10 = vcombine.high %v880_v2, %v884_v3  ;;  %v5492_v13 = vcombine.high %v881_v6, %v885_v8 }
 0x26c   :  { %4394 = vmatprep.subr.bf16.mxu1 %v5444_v11  ;;  %v888_v11 = vld [vmem:[#allocation8 + $0x490] sm:$0xff]  ;;  %v5523_v58 = vcombine.low %v913_v0, %v917_v46 }
 0x26e   :  { %4223 = vmatpush1.bf16.msra.mxu0 %v5441_v20  ;;  %v5489_v20 = vcombine.low %v880_v2, %v884_v3  ;;  %v929_v2 = vld [vmem:[#allocation8 + $0x5d8] sm:$0xff] }
 0x26f   :  { %4395 = vmatpush1.bf16.msra.mxu1 %v5443_v22  ;;  %4224 = vmatprep.subr.bf16.mxu0 %v5450_v24  ;;  %v5491_v22 = vcombine.low %v881_v6, %v885_v8  ;;  %v5498_v24 = vcombine.high %v888_v11, %v892_v12  ;;  %v933_v3 = vld [vmem:[#allocation8 + $0x5f8] sm:$0xff]  ;;  %v5531_v6 = vcombine.low %v921_v55, %v925_v56 }
 0x270   :  { %4396 = vmatprep.subr.bf16.mxu1 %v5452_v25  ;;  %v5500_v25 = vcombine.high %v889_v14, %v893_v19 }
 0x272   :  { %4225 = vmatpush1.bf16.msra.mxu0 %v5449_v31  ;;  %v5497_v31 = vcombine.low %v888_v11, %v892_v12  ;;  %v940_v11 = vld [vmem:[#allocation8 + $0x630] sm:$0xff]  ;;  %v937_v12 = vld [vmem:[#allocation8 + $0x618] sm:$0xff] }
 0x273   :  { %4397 = vmatpush1.bf16.msra.mxu1 %v5451_v32  ;;  %4226 = vmatprep.subr.bf16.mxu0 %v5458_v33  ;;  %v5506_v32 = vcombine.high %v896_v26, %v900_v27  ;;  %v5508_v33 = vcombine.high %v897_v28, %v901_v30 }
 0x274   :  { %4398 = vmatprep.subr.bf16.mxu1 %v5460_v35  ;;  %v904_v35 = vld [vmem:[#allocation8 + $0x510] sm:$0xff] }
 0x275   :  { %v5513_v47 = vcombine.low %v904_v35, %v908_v36 }
 0x276   :  { %4227 = vmatpush1.bf16.msra.mxu0 %v5457_v41  ;;  %v5514_v41 = vcombine.high %v904_v35, %v908_v36  ;;  %v953_v35 = vld [vmem:[#allocation8 + $0x698] sm:$0xff] }
 0x277   :  { %4399 = vmatpush1.bf16.msra.mxu1 %v5459_v7  ;;  %4228 = vmatprep.subr.bf16.mxu0 %v5466_v43  ;;  %v5516_v7 = vcombine.high %v905_v37, %v909_v39  ;;  %v912_v43 = vld [vmem:[#allocation8 + $0x550] sm:$0xff]  ;;  %v957_v36 = vld [vmem:[#allocation8 + $0x6b8] sm:$0xff] }
 0x278   :  { %4400 = vmatprep.subr.bf16.mxu1 %v5468_v45  ;;  %v916_v45 = vld [vmem:[#allocation8 + $0x570] sm:$0xff] }
 0x279   :  { %v5521_v44 = vcombine.low %v912_v43, %v916_v45 }
 0x27a   :  { %4229 = vmatpush1.bf16.msra.mxu0 %v5465_v50  ;;  %v5522_v50 = vcombine.high %v912_v43, %v916_v45  ;;  %v961_v43 = vld [vmem:[#allocation8 + $0x6d8] sm:$0xff] }
 0x27b   :  { %4401 = vmatpush1.bf16.msra.mxu1 %v5467_v51  ;;  %4230 = vmatprep.subr.bf16.mxu0 %v5474_v52  ;;  %v5524_v51 = vcombine.high %v913_v0, %v917_v46  ;;  %v920_v52 = vld [vmem:[#allocation8 + $0x590] sm:$0xff]  ;;  %v965_v45 = vld [vmem:[#allocation8 + $0x6f8] sm:$0xff]  ;;  %v5563_v46 = vcombine.low %v953_v35, %v957_v36 }
 0x27c   :  { %4402 = vmatprep.subr.bf16.mxu1 %v5476_v54  ;;  %v924_v54 = vld [vmem:[#allocation8 + $0x5b0] sm:$0xff] }
 0x27e   :  { %4231 = vmatpush1.bf16.msra.mxu0 %v5473_v59  ;;  %v5530_v59 = vcombine.high %v920_v52, %v924_v54 }
 0x27f   :  { %4403 = vmatpush1.bf16.msra.mxu1 %v5475_v60  ;;  %4243 = vmatprep.subr.bf16.mxu0 %v5482_v62  ;;  %v5532_v60 = vcombine.high %v921_v55, %v925_v56  ;;  %v928_v62 = vld [vmem:[#allocation8 + $0x5d0] sm:$0xff]  ;;  %v5571_v56 = vcombine.low %v961_v43, %v965_v45 }
 0x280   :  { %4415 = vmatprep.subr.bf16.mxu1 %v5484_v63  ;;  %v932_v63 = vld [vmem:[#allocation8 + $0x5f0] sm:$0xff] }
 0x281   :  { %4233 = vmatmul.mubr.bf16.vlgmr.msra.gmra.mrb[12].mxu0 %v6541_v42  ;;  %v5538_v8 = vcombine.high %v928_v62, %v932_v63 }
 0x282   :  { %4405 = vmatmul.mubr.bf16.vlgmr.msra.gmra.mrb[12].mxu1 %v6541_v42  ;;  %4244 = vmatpush1.bf16.msra.mxu0 %v5481_v4  ;;  %v5499_v42 = vcombine.low %v889_v14, %v893_v19  ;;  %v5529_v4 = vcombine.low %v920_v52, %v924_v54  ;;  %v5537_v14 = vcombine.low %v928_v62, %v932_v63  ;;  %v969_v52 = vld [vmem:[#allocation8 + $0x718] sm:$0xff] }
 0x283   :  { %4275 = vmatprep.mubr.bf16.mxu0 %v6551_v5  ;;  %4416 = vmatpush1.bf16.msra.mxu1 %v5483_v9  ;;  %v5540_v9 = vcombine.high %v929_v2, %v933_v3  ;;  %v5539_v19 = vcombine.low %v929_v2, %v933_v3  ;;  %v973_v54 = vld [vmem:[#allocation8 + $0x738] sm:$0xff] }
 0x284   :  { %4447 = vmatprep.mubr.bf16.mxu1 %v6551_v5  ;;  %4245 = vmatprep.subr.bf16.mxu0 %v5490_v10  ;;  %v5505_v5 = vcombine.low %v896_v26, %v900_v27  ;;  %v936_v10 = vld [vmem:[#allocation8 + $0x610] sm:$0xff]  ;;  %v945_v26 = vld [vmem:[#allocation8 + $0x658] sm:$0xff]  ;;  %v5579_v3 = vcombine.low %v969_v52, %v973_v54 }
 0x285   :  { %4417 = vmatprep.subr.bf16.mxu1 %v5492_v13  ;;  %v941_v13 = vld [vmem:[#allocation8 + $0x638] sm:$0xff]  ;;  %v5545_v28 = vcombine.low %v936_v10, %v940_v11 }
 0x286   :  { %4246 = vmatpush1.bf16.msra.mxu0 %v5489_v20  ;;  %v5546_v20 = vcombine.high %v936_v10, %v940_v11  ;;  %v949_v27 = vld [vmem:[#allocation8 + $0x678] sm:$0xff]  ;;  %v5547_v30 = vcombine.low %v937_v12, %v941_v13 }
 0x287   :  { %4418 = vmatpush1.bf16.msra.mxu1 %v5491_v22  ;;  %4247 = vmatprep.subr.bf16.mxu0 %v5498_v24  ;;  %v5548_v22 = vcombine.high %v937_v12, %v941_v13  ;;  %v944_v24 = vld [vmem:[#allocation8 + $0x650] sm:$0xff]  ;;  %v5555_v39 = vcombine.low %v945_v26, %v949_v27  ;;  %v977_v62 = vld [vmem:[#allocation8 + $0x758] sm:$0xff] }
 0x288   :  { %4419 = vmatprep.subr.bf16.mxu1 %v5500_v25  ;;  %v948_v25 = vld [vmem:[#allocation8 + $0x670] sm:$0xff]  ;;  %v981_v63 = vld [vmem:[#allocation8 + $0x778] sm:$0xff] }
 0x289   :  { %v5553_v37 = vcombine.low %v944_v24, %v948_v25  ;;  %v985_v10 = vld [vmem:[#allocation8 + $0x798] sm:$0xff]  ;;  %v5587_v13 = vcombine.low %v977_v62, %v981_v63 }
 0x28a   :  { %4248 = vmatpush1.bf16.msra.mxu0 %v5497_v31  ;;  %v5554_v31 = vcombine.high %v944_v24, %v948_v25  ;;  %v989_v11 = vld [vmem:[#allocation8 + $0x7b8] sm:$0xff] }
 0x28b   :  { %4420 = vmatpush1.bf16.msra.mxu1 %v5499_v42  ;;  %4249 = vmatprep.subr.bf16.mxu0 %v5506_v32  ;;  %v5556_v42 = vcombine.high %v945_v26, %v949_v27  ;;  %v952_v32 = vld [vmem:[#allocation8 + $0x690] sm:$0xff]  ;;  %v993_v24 = vld [vmem:[#allocation8 + $0x7d8] sm:$0xff]  ;;  %v5595_v27 = vcombine.low %v985_v10, %v989_v11 }
 0x28c   :  { %4421 = vmatprep.subr.bf16.mxu1 %v5508_v33  ;;  %v956_v33 = vld [vmem:[#allocation8 + $0x6b0] sm:$0xff]  ;;  %v997_v25 = vld [vmem:[#allocation8 + $0x7f8] sm:$0xff] }
 0x28d   :  { %v5561_v0 = vcombine.low %v952_v32, %v956_v33 }
 0x28e   :  { %4250 = vmatpush1.bf16.msra.mxu0 %v5505_v5  ;;  %v5562_v5 = vcombine.high %v952_v32, %v956_v33  ;;  %v1001_v32 = vld [vmem:[#allocation8 + $0x818] sm:$0xff] }
 0x28f   :  { %4422 = vmatpush1.bf16.msra.mxu1 %v5507_v40  ;;  %4251 = vmatprep.subr.bf16.mxu0 %v5514_v41  ;;  %v5564_v40 = vcombine.high %v953_v35, %v957_v36  ;;  %v960_v41 = vld [vmem:[#allocation8 + $0x6d0] sm:$0xff]  ;;  %v1005_v33 = vld [vmem:[#allocation8 + $0x838] sm:$0xff]  ;;  %v5603_v36 = vcombine.low %v993_v24, %v997_v25 }
 0x290   :  { %4423 = vmatprep.subr.bf16.mxu1 %v5516_v7  ;;  %v964_v7 = vld [vmem:[#allocation8 + $0x6f0] sm:$0xff] }
 0x291   :  { %v5569_v55 = vcombine.low %v960_v41, %v964_v7 }
 0x292   :  { %4252 = vmatpush1.bf16.msra.mxu0 %v5513_v47  ;;  %v5570_v47 = vcombine.high %v960_v41, %v964_v7  ;;  %v1009_v7 = vld [vmem:[#allocation8 + $0x858] sm:$0xff] }
 0x293   :  { %4424 = vmatpush1.bf16.msra.mxu1 %v5515_v48  ;;  %4253 = vmatprep.subr.bf16.mxu0 %v5522_v50  ;;  %v5572_v48 = vcombine.high %v961_v43, %v965_v45  ;;  %v968_v50 = vld [vmem:[#allocation8 + $0x710] sm:$0xff]  ;;  %v1013_v43 = vld [vmem:[#allocation8 + $0x878] sm:$0xff]  ;;  %v5611_v45 = vcombine.low %v1001_v32, %v1005_v33 }
 0x294   :  { %4425 = vmatprep.subr.bf16.mxu1 %v5524_v51  ;;  %v972_v51 = vld [vmem:[#allocation8 + $0x730] sm:$0xff] }
 0x295   :  { %v5577_v2 = vcombine.low %v968_v50, %v972_v51 }
 0x296   :  { %4254 = vmatpush1.bf16.msra.mxu0 %v5521_v44  ;;  %v5578_v44 = vcombine.high %v968_v50, %v972_v51  ;;  %v1017_v50 = vld [vmem:[#allocation8 + $0x898] sm:$0xff] }
 0x297   :  { %4426 = vmatpush1.bf16.msra.mxu1 %v5523_v58  ;;  %4255 = vmatprep.subr.bf16.mxu0 %v5530_v59  ;;  %v5580_v58 = vcombine.high %v969_v52, %v973_v54  ;;  %v976_v59 = vld [vmem:[#allocation8 + $0x750] sm:$0xff]  ;;  %v1021_v51 = vld [vmem:[#allocation8 + $0x8b8] sm:$0xff]  ;;  %v5619_v54 = vcombine.low %v1009_v7, %v1013_v43 }
 0x298   :  { %4427 = vmatprep.subr.bf16.mxu1 %v5532_v60  ;;  %v980_v60 = vld [vmem:[#allocation8 + $0x770] sm:$0xff] }
 0x299   :  { %v5585_v12 = vcombine.low %v976_v59, %v980_v60 }
 0x29a   :  { %4256 = vmatpush1.bf16.msra.mxu0 %v5529_v4  ;;  %v5586_v4 = vcombine.high %v976_v59, %v980_v60  ;;  %v1025_v59 = vld [vmem:[#allocation8 + $0x8d8] sm:$0xff] }
 0x29b   :  { %4428 = vmatpush1.bf16.msra.mxu1 %v5531_v6  ;;  %4257 = vmatprep.subr.bf16.mxu0 %v5538_v8  ;;  %v5588_v6 = vcombine.high %v977_v62, %v981_v63  ;;  %v984_v8 = vld [vmem:[#allocation8 + $0x790] sm:$0xff]  ;;  %v1029_v60 = vld [vmem:[#allocation8 + $0x8f8] sm:$0xff] }
 0x29c   :  { %4429 = vmatprep.subr.bf16.mxu1 %v5540_v9  ;;  %v988_v9 = vld [vmem:[#allocation8 + $0x7b0] sm:$0xff] }
 0x29d   :  { %v5593_v26 = vcombine.low %v984_v8, %v988_v9 }
 0x29e   :  { %4258 = vmatpush1.bf16.msra.mxu0 %v5537_v14  ;;  %v5594_v14 = vcombine.high %v984_v8, %v988_v9  ;;  %v1037_v8 = vld [vmem:[#allocation8 + $0x938] sm:$0xff]  ;;  %v5635_v9 = vcombine.low %v1025_v59, %v1029_v60 }
 0x29f   :  { %4430 = vmatpush1.bf16.msra.mxu1 %v5539_v19  ;;  %4259 = vmatprep.subr.bf16.mxu0 %v5546_v20  ;;  %v5596_v19 = vcombine.high %v985_v10, %v989_v11  ;;  %v992_v20 = vld [vmem:[#allocation8 + $0x7d0] sm:$0xff] }
 0x2a0   :  { %4431 = vmatprep.subr.bf16.mxu1 %v5548_v22  ;;  %v996_v22 = vld [vmem:[#allocation8 + $0x7f0] sm:$0xff] }
 0x2a1   :  { %v5601_v35 = vcombine.low %v992_v20, %v996_v22 }
 0x2a2   :  { %4260 = vmatpush1.bf16.msra.mxu0 %v5545_v28  ;;  %v5602_v28 = vcombine.high %v992_v20, %v996_v22 }
 0x2a3   :  { %4432 = vmatpush1.bf16.msra.mxu1 %v5547_v30  ;;  %4261 = vmatprep.subr.bf16.mxu0 %v5554_v31  ;;  %v5604_v30 = vcombine.high %v993_v24, %v997_v25  ;;  %v1000_v31 = vld [vmem:[#allocation8 + $0x810] sm:$0xff] }
 0x2a4   :  { %4433 = vmatprep.subr.bf16.mxu1 %v5556_v42  ;;  %v1004_v42 = vld [vmem:[#allocation8 + $0x830] sm:$0xff] }
 0x2a5   :  { %v5609_v41 = vcombine.low %v1000_v31, %v1004_v42 }
 0x2a6   :  { %4262 = vmatpush1.bf16.msra.mxu0 %v5553_v37  ;;  %v5610_v37 = vcombine.high %v1000_v31, %v1004_v42 }
 0x2a7   :  { %4434 = vmatpush1.bf16.msra.mxu1 %v5555_v39  ;;  %4263 = vmatprep.subr.bf16.mxu0 %v5562_v5  ;;  %v5612_v39 = vcombine.high %v1001_v32, %v1005_v33  ;;  %v1008_v5 = vld [vmem:[#allocation8 + $0x850] sm:$0xff] }
 0x2a8   :  { %4435 = vmatprep.subr.bf16.mxu1 %v5564_v40  ;;  %v1012_v40 = vld [vmem:[#allocation8 + $0x870] sm:$0xff] }
 0x2a9   :  { %v5617_v52 = vcombine.low %v1008_v5, %v1012_v40 }
 0x2aa   :  { %4264 = vmatpush1.bf16.msra.mxu0 %v5561_v0  ;;  %v5618_v0 = vcombine.high %v1008_v5, %v1012_v40 }
 0x2ab   :  { %4436 = vmatpush1.bf16.msra.mxu1 %v5563_v46  ;;  %4265 = vmatprep.subr.bf16.mxu0 %v5570_v47  ;;  %v1016_v46 = vld [vmem:[#allocation8 + $0x890] sm:$0xff] }
 0x2ac   :  { %4437 = vmatprep.subr.bf16.mxu1 %v5572_v48  ;;  %v1020_v47 = vld [vmem:[#allocation8 + $0x8b0] sm:$0xff]  ;;  %v5620_v48 = vcombine.high %v1009_v7, %v1013_v43 }
 0x2ad   :  { %v5625_v62 = vcombine.low %v1016_v46, %v1020_v47  ;;  %v1064_v43 = vld [vmem:[#allocation8 + $0xa10] sm:$0xff] }
 0x2ae   :  { %4266 = vmatpush1.bf16.msra.mxu0 %v5569_v55  ;;  %v5626_v55 = vcombine.high %v1016_v46, %v1020_v47  ;;  %v1069_v46 = vld [vmem:[#allocation8 + $0xa38] sm:$0xff] }
 0x2af   :  { %4438 = vmatpush1.bf16.msra.mxu1 %v5571_v56  ;;  %4267 = vmatprep.subr.bf16.mxu0 %v5578_v44  ;;  %v5628_v56 = vcombine.high %v1017_v50, %v1021_v51  ;;  %v1024_v44 = vld [vmem:[#allocation8 + $0x8d0] sm:$0xff] }
 0x2b0   :  { %4439 = vmatprep.subr.bf16.mxu1 %v5580_v58  ;;  %v1028_v58 = vld [vmem:[#allocation8 + $0x8f0] sm:$0xff] }
 0x2b1   :  { %v5634_v63 = vcombine.high %v1024_v44, %v1028_v58 }
 0x2b2   :  { %4268 = vmatpush1.bf16.msra.mxu0 %v5577_v2  ;;  %v5636_v2 = vcombine.high %v1025_v59, %v1029_v60 }
 0x2b3   :  { %4440 = vmatpush1.bf16.msra.mxu1 %v5579_v3  ;;  %4269 = vmatprep.subr.bf16.mxu0 %v5586_v4  ;;  %v1032_v3 = vld [vmem:[#allocation8 + $0x910] sm:$0xff] }
 0x2b4   :  { %4441 = vmatprep.subr.bf16.mxu1 %v5588_v6  ;;  %v1036_v4 = vld [vmem:[#allocation8 + $0x930] sm:$0xff]  ;;  %v1033_v6 = vld [vmem:[#allocation8 + $0x918] sm:$0xff] }
 0x2b5   :  { %v5642_v10 = vcombine.high %v1032_v3, %v1036_v4  ;;  %v5644_v11 = vcombine.high %v1033_v6, %v1037_v8  ;;  %v5641_v20 = vcombine.low %v1032_v3, %v1036_v4  ;;  %v5643_v22 = vcombine.low %v1033_v6, %v1037_v8 }
 0x2b6   :  { %4270 = vmatpush1.bf16.msra.mxu0 %v5585_v12  ;;  %v1040_v12 = vld [vmem:[#allocation8 + $0x950] sm:$0xff] }
 0x2b7   :  { %4442 = vmatpush1.bf16.msra.mxu1 %v5587_v13  ;;  %4271 = vmatprep.subr.bf16.mxu0 %v5594_v14  ;;  %v1044_v13 = vld [vmem:[#allocation8 + $0x970] sm:$0xff]  ;;  %v1041_v14 = vld [vmem:[#allocation8 + $0x958] sm:$0xff] }
 0x2b8   :  { %4443 = vmatprep.subr.bf16.mxu1 %v5596_v19  ;;  %v1045_v19 = vld [vmem:[#allocation8 + $0x978] sm:$0xff]  ;;  %v5650_v24 = vcombine.high %v1040_v12, %v1044_v13  ;;  %v5649_v31 = vcombine.low %v1040_v12, %v1044_v13 }
 0x2b9   :  { %v5652_v25 = vcombine.high %v1041_v14, %v1045_v19  ;;  %v5651_v42 = vcombine.low %v1041_v14, %v1045_v19 }
 0x2ba   :  { %4272 = vmatpush1.bf16.msra.mxu0 %v5593_v26  ;;  %v1048_v26 = vld [vmem:[#allocation8 + $0x990] sm:$0xff] }
 0x2bb   :  { %4444 = vmatpush1.bf16.msra.mxu1 %v5595_v27  ;;  %4273 = vmatprep.subr.bf16.mxu0 %v5602_v28  ;;  %v1052_v27 = vld [vmem:[#allocation8 + $0x9b0] sm:$0xff]  ;;  %v1049_v28 = vld [vmem:[#allocation8 + $0x998] sm:$0xff] }
 0x2bc   :  { %4445 = vmatprep.subr.bf16.mxu1 %v5604_v30  ;;  %v1053_v30 = vld [vmem:[#allocation8 + $0x9b8] sm:$0xff]  ;;  %v5658_v32 = vcombine.high %v1048_v26, %v1052_v27  ;;  %v5657_v5 = vcombine.low %v1048_v26, %v1052_v27 }
 0x2bd   :  { %v5660_v33 = vcombine.high %v1049_v28, %v1053_v30  ;;  %v5659_v40 = vcombine.low %v1049_v28, %v1053_v30 }
 0x2be   :  { %4274 = vmatpush1.bf16.msra.mxu0 %v5601_v35  ;;  %v1056_v35 = vld [vmem:[#allocation8 + $0x9d0] sm:$0xff] }
 0x2bf   :  { %4446 = vmatpush1.bf16.msra.mxu1 %v5603_v36  ;;  %4286 = vmatprep.subr.bf16.mxu0 %v5610_v37  ;;  %v1060_v36 = vld [vmem:[#allocation8 + $0x9f0] sm:$0xff]  ;;  %v1057_v37 = vld [vmem:[#allocation8 + $0x9d8] sm:$0xff] }
 0x2c0   :  { %4458 = vmatprep.subr.bf16.mxu1 %v5612_v39  ;;  %v1061_v39 = vld [vmem:[#allocation8 + $0x9f8] sm:$0xff]  ;;  %v5665_v47 = vcombine.low %v1056_v35, %v1060_v36 }
 0x2c1   :  { %4276 = vmatmul.mubr.bf16.vlgmr.msra.gmra.mrb[12].mxu0 %v6549_v1  ;;  %v5668_v7 = vcombine.high %v1057_v37, %v1061_v39 }
 0x2c2   :  { %4448 = vmatmul.mubr.bf16.vlgmr.msra.gmra.mrb[12].mxu1 %v6549_v1  ;;  %4287 = vmatpush1.bf16.msra.mxu0 %v5609_v41  ;;  %v5627_v1 = vcombine.low %v1017_v50, %v1021_v51  ;;  %v5666_v41 = vcombine.high %v1056_v35, %v1060_v36 }
 0x2c3   :  { %4318 = vmatprep.mubr.bf16.mxu0 %v6573_v17  ;;  %4459 = vmatpush1.bf16.msra.mxu1 %v5611_v45  ;;  %v1068_v45 = vld [vmem:[#allocation8 + $0xa30] sm:$0xff] }
 0x2c4   :  { %4490 = vmatprep.mubr.bf16.mxu1 %v6573_v17  ;;  %4288 = vmatprep.subr.bf16.mxu0 %v5618_v0  ;;  %v5633_v17 = vcombine.low %v1024_v44, %v1028_v58  ;;  %v1065_v0 = vld [vmem:[#allocation8 + $0xa18] sm:$0xff]  ;;  %v5674_v50 = vcombine.high %v1064_v43, %v1068_v45  ;;  %v5673_v44 = vcombine.low %v1064_v43, %v1068_v45 }
 0x2c5   :  { %4460 = vmatprep.subr.bf16.mxu1 %v5620_v48  ;;  %v5667_v48 = vcombine.low %v1057_v37, %v1061_v39  ;;  %v5676_v51 = vcombine.high %v1065_v0, %v1069_v46  ;;  %v5675_v58 = vcombine.low %v1065_v0, %v1069_v46 }
 0x2c6   :  { %4289 = vmatpush1.bf16.msra.mxu0 %v5617_v52  ;;  %v1072_v52 = vld [vmem:[#allocation8 + $0xa50] sm:$0xff] }
 0x2c7   :  { %4461 = vmatpush1.bf16.msra.mxu1 %v5619_v54  ;;  %4290 = vmatprep.subr.bf16.mxu0 %v5626_v55  ;;  %v1076_v54 = vld [vmem:[#allocation8 + $0xa70] sm:$0xff]  ;;  %v1073_v55 = vld [vmem:[#allocation8 + $0xa58] sm:$0xff] }
 0x2c8   :  { %4462 = vmatprep.subr.bf16.mxu1 %v5628_v56  ;;  %v1077_v56 = vld [vmem:[#allocation8 + $0xa78] sm:$0xff]  ;;  %v5682_v59 = vcombine.high %v1072_v52, %v1076_v54  ;;  %v5681_v3 = vcombine.low %v1072_v52, %v1076_v54 }
 0x2c9   :  { %v5684_v60 = vcombine.high %v1073_v55, %v1077_v56  ;;  %v5683_v4 = vcombine.low %v1073_v55, %v1077_v56 }
 0x2ca   :  { %4291 = vmatpush1.bf16.msra.mxu0 %v5625_v62  ;;  %v1080_v62 = vld [vmem:[#allocation8 + $0xa90] sm:$0xff] }
 0x2cb   :  { %4463 = vmatpush1.bf16.msra.mxu1 %v5627_v1  ;;  %4292 = vmatprep.subr.bf16.mxu0 %v5634_v63  ;;  %v1084_v1 = vld [vmem:[#allocation8 + $0xab0] sm:$0xff]  ;;  %v1081_v63 = vld [vmem:[#allocation8 + $0xa98] sm:$0xff] }
 0x2cc   :  { %4464 = vmatprep.subr.bf16.mxu1 %v5636_v2  ;;  %v1085_v2 = vld [vmem:[#allocation8 + $0xab8] sm:$0xff]  ;;  %v5690_v6 = vcombine.high %v1080_v62, %v1084_v1  ;;  %v5689_v12 = vcombine.low %v1080_v62, %v1084_v1 }
 0x2cd   :  { %v5692_v8 = vcombine.high %v1081_v63, %v1085_v2  ;;  %v5691_v13 = vcombine.low %v1081_v63, %v1085_v2 }
 0x2ce   :  { %4293 = vmatpush1.bf16.msra.mxu0 %v5633_v17  ;;  %v1088_v17 = vld [vmem:[#allocation8 + $0xad0] sm:$0xff] }
 0x2cf   :  { %4465 = vmatpush1.bf16.msra.mxu1 %v5635_v9  ;;  %4294 = vmatprep.subr.bf16.mxu0 %v5642_v10  ;;  %v1092_v9 = vld [vmem:[#allocation8 + $0xaf0] sm:$0xff]  ;;  %v1089_v10 = vld [vmem:[#allocation8 + $0xad8] sm:$0xff] }
 0x2d0   :  { %4466 = vmatprep.subr.bf16.mxu1 %v5644_v11  ;;  %v1093_v11 = vld [vmem:[#allocation8 + $0xaf8] sm:$0xff]  ;;  %v5698_v14 = vcombine.high %v1088_v17, %v1092_v9  ;;  %v5697_v26 = vcombine.low %v1088_v17, %v1092_v9 }
 0x2d1   :  { %v5700_v19 = vcombine.high %v1089_v10, %v1093_v11  ;;  %v5699_v27 = vcombine.low %v1089_v10, %v1093_v11  ;;  %v1141_v17 = vld [vmem:[#allocation8 + $0xc78] sm:$0xff]  ;;  %v1144_v11 = vld [vmem:[#allocation8 + $0xc90] sm:$0xff] }
 0x2d2   :  { %4295 = vmatpush1.bf16.msra.mxu0 %v5641_v20  ;;  %v1096_v20 = vld [vmem:[#allocation8 + $0xb10] sm:$0xff] }
 0x2d3   :  { %4467 = vmatpush1.bf16.msra.mxu1 %v5643_v22  ;;  %4296 = vmatprep.subr.bf16.mxu0 %v5650_v24  ;;  %v1100_v22 = vld [vmem:[#allocation8 + $0xb30] sm:$0xff]  ;;  %v1097_v24 = vld [vmem:[#allocation8 + $0xb18] sm:$0xff] }
 0x2d4   :  { %4468 = vmatprep.subr.bf16.mxu1 %v5652_v25  ;;  %v1101_v25 = vld [vmem:[#allocation8 + $0xb38] sm:$0xff]  ;;  %v5706_v28 = vcombine.high %v1096_v20, %v1100_v22  ;;  %v5705_v35 = vcombine.low %v1096_v20, %v1100_v22 }
 0x2d5   :  { %v5708_v30 = vcombine.high %v1097_v24, %v1101_v25  ;;  %v5707_v36 = vcombine.low %v1097_v24, %v1101_v25 }
 0x2d6   :  { %4297 = vmatpush1.bf16.msra.mxu0 %v5649_v31  ;;  %v1104_v31 = vld [vmem:[#allocation8 + $0xb50] sm:$0xff] }
 0x2d7   :  { %4469 = vmatpush1.bf16.msra.mxu1 %v5651_v42  ;;  %4298 = vmatprep.subr.bf16.mxu0 %v5658_v32  ;;  %v1108_v42 = vld [vmem:[#allocation8 + $0xb70] sm:$0xff]  ;;  %v1105_v32 = vld [vmem:[#allocation8 + $0xb58] sm:$0xff] }
 0x2d8   :  { %4470 = vmatprep.subr.bf16.mxu1 %v5660_v33  ;;  %v1109_v33 = vld [vmem:[#allocation8 + $0xb78] sm:$0xff]  ;;  %v5714_v37 = vcombine.high %v1104_v31, %v1108_v42  ;;  %v5713_v43 = vcombine.low %v1104_v31, %v1108_v42 }
 0x2d9   :  { %v5716_v39 = vcombine.high %v1105_v32, %v1109_v33  ;;  %v5715_v45 = vcombine.low %v1105_v32, %v1109_v33  ;;  %v1160_v33 = vld [vmem:[#allocation8 + $0xd10] sm:$0xff] }
 0x2da   :  { %4299 = vmatpush1.bf16.msra.mxu0 %v5657_v5  ;;  %v1112_v5 = vld [vmem:[#allocation8 + $0xb90] sm:$0xff] }
 0x2db   :  { %4471 = vmatpush1.bf16.msra.mxu1 %v5659_v40  ;;  %4300 = vmatprep.subr.bf16.mxu0 %v5666_v41  ;;  %v1116_v40 = vld [vmem:[#allocation8 + $0xbb0] sm:$0xff]  ;;  %v1113_v41 = vld [vmem:[#allocation8 + $0xb98] sm:$0xff] }
 0x2dc   :  { %4472 = vmatprep.subr.bf16.mxu1 %v5668_v7  ;;  %v1117_v7 = vld [vmem:[#allocation8 + $0xbb8] sm:$0xff]  ;;  %v5722_v0 = vcombine.high %v1112_v5, %v1116_v40  ;;  %v5721_v52 = vcombine.low %v1112_v5, %v1116_v40 }
 0x2dd   :  { %v5724_v46 = vcombine.high %v1113_v41, %v1117_v7  ;;  %v5723_v54 = vcombine.low %v1113_v41, %v1117_v7  ;;  %v1168_v41 = vld [vmem:[#allocation8 + $0xd50] sm:$0xff] }
 0x2de   :  { %4301 = vmatpush1.bf16.msra.mxu0 %v5665_v47  ;;  %v1120_v47 = vld [vmem:[#allocation8 + $0xbd0] sm:$0xff] }
 0x2df   :  { %4473 = vmatpush1.bf16.msra.mxu1 %v5667_v48  ;;  %4302 = vmatprep.subr.bf16.mxu0 %v5674_v50  ;;  %v1124_v48 = vld [vmem:[#allocation8 + $0xbf0] sm:$0xff]  ;;  %v1121_v50 = vld [vmem:[#allocation8 + $0xbd8] sm:$0xff] }
 0x2e0   :  { %4474 = vmatprep.subr.bf16.mxu1 %v5676_v51  ;;  %v1125_v51 = vld [vmem:[#allocation8 + $0xbf8] sm:$0xff]  ;;  %v5730_v55 = vcombine.high %v1120_v47, %v1124_v48  ;;  %v5729_v62 = vcombine.low %v1120_v47, %v1124_v48  ;;  %v1172_v7 = vld [vmem:[#allocation8 + $0xd70] sm:$0xff] }
 0x2e1   :  { %v5732_v56 = vcombine.high %v1121_v50, %v1125_v51  ;;  %v5731_v1 = vcombine.low %v1121_v50, %v1125_v51  ;;  %v5778_v48 = vcombine.high %v1168_v41, %v1172_v7  ;;  %v1176_v51 = vld [vmem:[#allocation8 + $0xd90] sm:$0xff] }
 0x2e2   :  { %4303 = vmatpush1.bf16.msra.mxu0 %v5673_v44  ;;  %v1128_v44 = vld [vmem:[#allocation8 + $0xc10] sm:$0xff] }
 0x2e3   :  { %4475 = vmatpush1.bf16.msra.mxu1 %v5675_v58  ;;  %4304 = vmatprep.subr.bf16.mxu0 %v5682_v59  ;;  %v1132_v58 = vld [vmem:[#allocation8 + $0xc30] sm:$0xff]  ;;  %v1129_v59 = vld [vmem:[#allocation8 + $0xc18] sm:$0xff] }
 0x2e4   :  { %4476 = vmatprep.subr.bf16.mxu1 %v5684_v60  ;;  %v1133_v60 = vld [vmem:[#allocation8 + $0xc38] sm:$0xff]  ;;  %v5738_v63 = vcombine.high %v1128_v44, %v1132_v58 }
 0x2e5   :  { %v5740_v2 = vcombine.high %v1129_v59, %v1133_v60  ;;  %v5739_v9 = vcombine.low %v1129_v59, %v1133_v60  ;;  %v5777_v60 = vcombine.low %v1168_v41, %v1172_v7 }
 0x2e6   :  { %4305 = vmatpush1.bf16.msra.mxu0 %v5681_v3  ;;  %v1136_v3 = vld [vmem:[#allocation8 + $0xc50] sm:$0xff] }
 0x2e7   :  { %4477 = vmatpush1.bf16.msra.mxu1 %v5683_v4  ;;  %4306 = vmatprep.subr.bf16.mxu0 %v5690_v6  ;;  %v1140_v4 = vld [vmem:[#allocation8 + $0xc70] sm:$0xff]  ;;  %v5737_v6 = vcombine.low %v1128_v44, %v1132_v58  ;;  %v1181_v44 = vld [vmem:[#allocation8 + $0xdb8] sm:$0xff] }
 0x2e8   :  { %4478 = vmatprep.subr.bf16.mxu1 %v5692_v8  ;;  %v1137_v8 = vld [vmem:[#allocation8 + $0xc58] sm:$0xff]  ;;  %v5746_v10 = vcombine.high %v1136_v3, %v1140_v4  ;;  %v5745_v20 = vcombine.low %v1136_v3, %v1140_v4 }
 0x2e9   :  { %v5747_v22 = vcombine.low %v1137_v8, %v1141_v17 }
 0x2ea   :  { %4307 = vmatpush1.bf16.msra.mxu0 %v5689_v12  ;;  %v1148_v12 = vld [vmem:[#allocation8 + $0xcb0] sm:$0xff] }
 0x2eb   :  { %4479 = vmatpush1.bf16.msra.mxu1 %v5691_v13  ;;  %4308 = vmatprep.subr.bf16.mxu0 %v5698_v14  ;;  %v5748_v13 = vcombine.high %v1137_v8, %v1141_v17  ;;  %v1145_v14 = vld [vmem:[#allocation8 + $0xc98] sm:$0xff]  ;;  %v5754_v24 = vcombine.high %v1144_v11, %v1148_v12  ;;  %v5753_v31 = vcombine.low %v1144_v11, %v1148_v12 }
 0x2ec   :  { %4480 = vmatprep.subr.bf16.mxu1 %v5700_v19  ;;  %v1149_v19 = vld [vmem:[#allocation8 + $0xcb8] sm:$0xff] }
 0x2ed   :  { %v5756_v25 = vcombine.high %v1145_v14, %v1149_v19 }
 0x2ee   :  { %4309 = vmatpush1.bf16.msra.mxu0 %v5697_v26  ;;  %v1152_v26 = vld [vmem:[#allocation8 + $0xcd0] sm:$0xff] }
 0x2ef   :  { %4481 = vmatpush1.bf16.msra.mxu1 %v5699_v27  ;;  %4310 = vmatprep.subr.bf16.mxu0 %v5706_v28  ;;  %v1156_v27 = vld [vmem:[#allocation8 + $0xcf0] sm:$0xff]  ;;  %v1153_v28 = vld [vmem:[#allocation8 + $0xcd8] sm:$0xff] }
 0x2f0   :  { %4482 = vmatprep.subr.bf16.mxu1 %v5708_v30  ;;  %v1157_v30 = vld [vmem:[#allocation8 + $0xcf8] sm:$0xff]  ;;  %v5762_v42 = vcombine.high %v1152_v26, %v1156_v27 }
 0x2f1   :  { %v5764_v32 = vcombine.high %v1153_v28, %v1157_v30 }
 0x2f2   :  { %4311 = vmatpush1.bf16.msra.mxu0 %v5705_v35  ;;  %v1164_v35 = vld [vmem:[#allocation8 + $0xd30] sm:$0xff] }
 0x2f3   :  { %4483 = vmatpush1.bf16.msra.mxu1 %v5707_v36  ;;  %4312 = vmatprep.subr.bf16.mxu0 %v5714_v37  ;;  %v1161_v36 = vld [vmem:[#allocation8 + $0xd18] sm:$0xff]  ;;  %v5770_v5 = vcombine.high %v1160_v33, %v1164_v35 }
 0x2f4   :  { %4484 = vmatprep.subr.bf16.mxu1 %v5716_v39  ;;  %v1165_v37 = vld [vmem:[#allocation8 + $0xd38] sm:$0xff]  ;;  %v5763_v39 = vcombine.low %v1153_v28, %v1157_v30 }
 0x2f5   :  { %v5772_v40 = vcombine.high %v1161_v36, %v1165_v37  ;;  %v5771_v47 = vcombine.low %v1161_v36, %v1165_v37  ;;  %v1193_v37 = vld [vmem:[#allocation8 + $0xe18] sm:$0xff] }
 0x2f6   :  { %4313 = vmatpush1.bf16.msra.mxu0 %v5713_v43  ;;  %v1169_v43 = vld [vmem:[#allocation8 + $0xd58] sm:$0xff] }
 0x2f7   :  { %4485 = vmatpush1.bf16.msra.mxu1 %v5715_v45  ;;  %4314 = vmatprep.subr.bf16.mxu0 %v5722_v0  ;;  %v1173_v45 = vld [vmem:[#allocation8 + $0xd78] sm:$0xff]  ;;  %v5769_v0 = vcombine.low %v1160_v33, %v1164_v35 }
 0x2f8   :  { %4486 = vmatprep.subr.bf16.mxu1 %v5724_v46  ;;  %v6603_v46 = vld [vmem:[#allocation10] sm:$0xff]  ;;  %v5780_v50 = vcombine.high %v1169_v43, %v1173_v45 }
 0x2f9   :  { %v1263_v58 = vrot.slane %v6603_v46, %v192_v18  ;;  %v1271_v59 = vrot.slane %v6603_v46, %v200_v23 }
 0x2fa   :  { %4315 = vmatpush1.bf16.msra.mxu0 %v5721_v52  ;;  %v1180_v52 = vld [vmem:[#allocation8 + $0xdb0] sm:$0xff] }
 0x2fb   :  { %4487 = vmatpush1.bf16.msra.mxu1 %v5723_v54  ;;  %4316 = vmatprep.subr.bf16.mxu0 %v5730_v55  ;;  %v1259_v54 = vrot.slane %v6603_v46, %v188_v16  ;;  %v1267_v55 = vrot.slane %v6603_v46, %v196_v21  ;;  %v5786_v16 = vcombine.high %v1176_v51, %v1180_v52 }
 0x2fc   :  { %4488 = vmatprep.subr.bf16.mxu1 %v5732_v56  ;;  %v1177_v56 = vld [vmem:[#allocation8 + $0xd98] sm:$0xff]  ;;  %v5785_v18 = vcombine.low %v1176_v51, %v1180_v52  ;;  %v1204_v51 = vld [vmem:[#allocation8 + $0xe70] sm:$0xff] }
 0x2fd   :  { %v5788_v3 = vcombine.high %v1177_v56, %v1181_v44  ;;  %v1201_v52 = vld [vmem:[#allocation8 + $0xe58] sm:$0xff] }
 0x2fe   :  { %4317 = vmatpush1.bf16.msra.mxu0 %v5729_v62  ;;  %v5779_v62 = vcombine.low %v1169_v43, %v1173_v45 }
 0x2ff   :  { %4489 = vmatpush1.bf16.msra.mxu1 %v5731_v1  ;;  %4329 = vmatprep.subr.bf16.mxu0 %v5738_v63  ;;  %v1184_v1 = vld [vmem:[#allocation8 + $0xdd0] sm:$0xff] }
 0x300   :  { %4501 = vmatprep.subr.bf16.mxu1 %v5740_v2  ;;  %v1188_v63 = vld [vmem:[#allocation8 + $0xdf0] sm:$0xff] }
 0x301   :  { %4319 = vmatmul.mubr.bf16.vlgmr.msra.gmra.mrb[12].mxu0 %v6571_v29 }
 0x302   :  { %4491 = vmatmul.mubr.bf16.vlgmr.msra.gmra.mrb[12].mxu1 %v6571_v29  ;;  %4330 = vmatpush1.bf16.msra.mxu0 %v5737_v6  ;;  %v5755_v29 = vcombine.low %v1145_v14, %v1149_v19  ;;  %v5787_v14 = vcombine.low %v1177_v56, %v1181_v44  ;;  %v5793_v19 = vcombine.low %v1184_v1, %v1188_v63 }
 0x303   :  { %4361 = vmatprep.mubr.bf16.mxu0 %v6577_v61  ;;  %4502 = vmatpush1.bf16.msra.mxu1 %v5739_v9  ;;  %v1185_v9 = vld [vmem:[#allocation8 + $0xdd8] sm:$0xff] }
 0x304   :  { %4533 = vmatprep.mubr.bf16.mxu1 %v6577_v61  ;;  %4331 = vmatprep.subr.bf16.mxu0 %v5746_v10  ;;  %v5761_v61 = vcombine.low %v1152_v26, %v1156_v27  ;;  %v1189_v10 = vld [vmem:[#allocation8 + $0xdf8] sm:$0xff]  ;;  %v5794_v26 = vcombine.high %v1184_v1, %v1188_v63 }
 0x305   :  { %4503 = vmatprep.subr.bf16.mxu1 %v5748_v13  ;;  %v5795_v30 = vcombine.low %v1185_v9, %v1189_v10 }
 0x306   :  { %4332 = vmatpush1.bf16.msra.mxu0 %v5745_v20 }
 0x307   :  { %4504 = vmatpush1.bf16.msra.mxu1 %v5747_v22  ;;  %4333 = vmatprep.subr.bf16.mxu0 %v5754_v24 }
 0x308   :  { %4505 = vmatprep.subr.bf16.mxu1 %v5756_v25 }
 0x30a   :  { %4334 = vmatpush1.bf16.msra.mxu0 %v5753_v31  ;;  %v5796_v31 = vcombine.high %v1185_v9, %v1189_v10 }
 0x30b   :  { %4506 = vmatpush1.bf16.msra.mxu1 %v5755_v29  ;;  %4335 = vmatprep.subr.bf16.mxu0 %v5762_v42  ;;  %v1192_v29 = vld [vmem:[#allocation8 + $0xe10] sm:$0xff] }
 0x30c   :  { %4507 = vmatprep.subr.bf16.mxu1 %v5764_v32  ;;  %v1196_v42 = vld [vmem:[#allocation8 + $0xe30] sm:$0xff] }
 0x30d   :  { %v5802_v45 = vcombine.high %v1192_v29, %v1196_v42 }
 0x30e   :  { %4336 = vmatpush1.bf16.msra.mxu0 %v5761_v61  ;;  %v1197_v61 = vld [vmem:[#allocation8 + $0xe38] sm:$0xff] }
 0x30f   :  { %4508 = vmatpush1.bf16.msra.mxu1 %v5763_v39  ;;  %4337 = vmatprep.subr.bf16.mxu0 %v5770_v5  ;;  %v5803_v56 = vcombine.low %v1193_v37, %v1197_v61 }
 0x310   :  { %4509 = vmatprep.subr.bf16.mxu1 %v5772_v40 }
 0x312   :  { %4338 = vmatpush1.bf16.msra.mxu0 %v5769_v0 }
 0x313   :  { %4510 = vmatpush1.bf16.msra.mxu1 %v5771_v47  ;;  %4339 = vmatprep.subr.bf16.mxu0 %v5778_v48  ;;  %v5804_v48 = vcombine.high %v1193_v37, %v1197_v61 }
 0x314   :  { %v4019_v2 = vpop.f32.mrb[8].mxu0  ;;  %v4191_v21 = vpop.f32.mrb[8].mxu1  ;;  %4511 = vmatprep.subr.bf16.mxu1 %v5780_v50  ;;  %v1200_v50 = vld [vmem:[#allocation8 + $0xe50] sm:$0xff] }
 0x315   :  { %v6016_v4 = vadd.f32 %v4019_v2, %v1259_v54  ;;  %v6020_v6 = vadd.f32 %v4191_v21, %v1267_v55  ;;  %v4021_v8 = vpop.f32.mrb[9].mxu0  ;;  %v4193_v17 = vpop.f32.mrb[9].mxu1  ;;  %v5810_v44 = vcombine.high %v1200_v50, %v1204_v51  ;;  %v5809_v1 = vcombine.low %v1200_v50, %v1204_v51 }
 0x316   :  { %v6017_v11 = vadd.f32 %v4021_v8, %v1263_v58  ;;  %v6021_v23 = vadd.f32 %v4193_v17, %v1271_v59  ;;  %v4023_v12 = vpop.f32.mrb[10].mxu0  ;;  %v4195_v13 = vpop.f32.mrb[10].mxu1  ;;  %4340 = vmatpush1.bf16.msra.mxu0 %v5777_v60  ;;  %v1212_v60 = vld [vmem:[#allocation8 + $0xeb0] sm:$0xff]  ;;  %v1221_v8 = vld [vmem:[#allocation8 + $0xef8] sm:$0xff] }
 0x317   :  { %v6018_v20 = vadd.f32 %v4023_v12, %v1259_v54  ;;  %v6022_v22 = vadd.f32 %v4195_v13, %v1267_v55  ;;  %4512 = vmatpush1.bf16.msra.mxu1 %v5779_v62  ;;  %v4025_v24 = vpop.f32.mrb[11].mxu0  ;;  %v4197_v25 = vpop.f32.mrb[11].mxu1  ;;  %4341 = vmatprep.subr.bf16.mxu0 %v5786_v16  ;;  %v4544_v32 = vmax.f32 %v6016_v4, 0.0  ;;  %v4546_v33 = vmax.f32 %v6020_v6, 0.0  ;;  %v1205_v54 = vld [vmem:[#allocation8 + $0xe78] sm:$0xff]  ;;  %v1220_v4 = vld [vmem:[#allocation8 + $0xef0] sm:$0xff] }
 0x318   :  { %v6019_v27 = vadd.f32 %v4025_v24, %v1263_v58  ;;  %v6023_v28 = vadd.f32 %v4197_v25, %v1271_v59  ;;  %4513 = vmatprep.subr.bf16.mxu1 %v5788_v3  ;;  %v4545_v39 = vmax.f32 %v6017_v11, 0.0  ;;  %v4547_v5 = vmax.f32 %v6021_v23, 0.0  ;;  %v1208_v59 = vld [vmem:[#allocation8 + $0xe90] sm:$0xff]  ;;  %v1209_v62 = vld [vmem:[#allocation8 + $0xe98] sm:$0xff] }
 0x319   :  { %v4552_v35 = vmax.f32 %v6018_v20, 0.0  ;;  %v4554_v36 = vmax.f32 %v6022_v22, 0.0  ;;  %v5801_v55 = vcombine.low %v1192_v29, %v1196_v42  ;;  %v5812_v58 = vcombine.high %v1201_v52, %v1205_v54  ;;  %v1213_v16 = vld [vmem:[#allocation8 + $0xeb8] sm:$0xff]  ;;  %v1216_v3 = vld [vmem:[#allocation8 + $0xed0] sm:$0xff] }
 0x31a   :  { %v4553_v40 = vmax.f32 %v6019_v27, 0.0  ;;  %v4555_v41 = vmax.f32 %v6023_v28, 0.0  ;;  %4342 = vmatpush1.bf16.msra.mxu0 %v5785_v18  ;;  %v5811_v63 = vcombine.low %v1201_v52, %v1205_v54  ;;  %v5818_v2 = vcombine.high %v1208_v59, %v1212_v60  ;;  %v1217_v6 = vld [vmem:[#allocation8 + $0xed8] sm:$0xff]  ;;  %v1224_v11 = vld [vmem:[#allocation8 + $0xf10] sm:$0xff] }
 0x31b   :  { %v6617_v7 = vpack.c.bf16 %v4552_v35, %v4544_v32  ;;  %v6619_v43 = vpack.c.bf16 %v4554_v36, %v4546_v33  ;;  %4514 = vmatpush1.bf16.msra.mxu1 %v5787_v14  ;;  %4343 = vmatprep.subr.bf16.mxu0 %v5794_v26  ;;  %v5820_v21 = vcombine.high %v1209_v62, %v1213_v16  ;;  %v1228_v23 = vld [vmem:[#allocation8 + $0xf30] sm:$0xff]  ;;  %v1225_v12 = vld [vmem:[#allocation8 + $0xf18] sm:$0xff] }
 0x31c   :  { %v6621_v0 = vpack.c.bf16 %v4553_v40, %v4545_v39  ;;  %v6623_v47 = vpack.c.bf16 %v4555_v41, %v4547_v5  ;;  %4515 = vmatprep.subr.bf16.mxu1 %v5796_v31  ;;  %v5817_v17 = vcombine.low %v1208_v59, %v1212_v60  ;;  %v5819_v18 = vcombine.low %v1209_v62, %v1213_v16  ;;  %v1229_v13 = vld [vmem:[#allocation8 + $0xf38] sm:$0xff]  ;;  %v1232_v24 = vld [vmem:[#allocation8 + $0xf50] sm:$0xff]  ;;  %v6098_v59 = vld [vmem:[#allocation11 + $0x80] sm:$0xff]  }
 0x31d   :  { %v5826_v9 = vcombine.high %v1216_v3, %v1220_v4  ;;  %v5828_v10 = vcombine.high %v1217_v6, %v1221_v8  ;;  %v5825_v14 = vcombine.low %v1216_v3, %v1220_v4  ;;  %v5834_v20 = vcombine.high %v1224_v11, %v1228_v23  ;;  %v1236_v25 = vld [vmem:[#allocation8 + $0xf70] sm:$0xff]  ;;  %v1233_v26 = vld [vmem:[#allocation8 + $0xf58] sm:$0xff]  ;;  %v6107_v4 = vld [vmem:[#allocation11 + $0x58] sm:$0xff]  }
 0x31e   :  { %4344 = vmatpush1.bf16.msra.mxu0 %v5793_v19  ;;  %v5827_v19 = vcombine.low %v1217_v6, %v1221_v8  ;;  %v5836_v22 = vcombine.high %v1225_v12, %v1229_v13  ;;  %v1237_v27 = vld [vmem:[#allocation8 + $0xf78] sm:$0xff]  ;;  %v5833_v28 = vcombine.low %v1224_v11, %v1228_v23  ;;  %v5842_v31 = vcombine.high %v1232_v24, %v1236_v25  ;;  %v1240_v42 = vld [vmem:[#allocation8 + $0xf90] sm:$0xff]  ;;  %v6109_v6 = vld [vmem:[#allocation11 + $0x18] sm:$0xff]  }
 0x31f   :  { %4516 = vmatpush1.bf16.msra.mxu1 %v5795_v30  ;;  %4345 = vmatprep.subr.bf16.mxu0 %v5802_v45  ;;  %v5835_v30 = vcombine.low %v1225_v12, %v1229_v13  ;;  %v5844_v29 = vcombine.high %v1233_v26, %v1237_v27  ;;  %v1244_v32 = vld [vmem:[#allocation8 + $0xfb0] sm:$0xff]  ;;  %v1241_v33 = vld [vmem:[#allocation8 + $0xf98] sm:$0xff]  ;;  %v5841_v36 = vcombine.low %v1232_v24, %v1236_v25  ;;  %v6111_v8 = vld [vmem:[#allocation11 + $0x60] sm:$0xff]  }
 0x320   :  { %4517 = vmatprep.subr.bf16.mxu1 %v5804_v48  ;;  %v1245_v35 = vld [vmem:[#allocation8 + $0xfb8] sm:$0xff]  ;;  %v5843_v37 = vcombine.low %v1233_v26, %v1237_v27  ;;  %v5850_v61 = vcombine.high %v1240_v42, %v1244_v32  ;;  %v1248_v5 = vld [vmem:[#allocation8 + $0xfd0] sm:$0xff]  ;;  %v5849_v48 = vcombine.low %v1240_v42, %v1244_v32  ;;  %v6125_v24 = vld [vmem:[#allocation11 + $0x38] sm:$0xff]  }
 0x321   :  { %v5852_v39 = vcombine.high %v1241_v33, %v1245_v35  ;;  %v1252_v40 = vld [vmem:[#allocation8 + $0xff0] sm:$0xff]  ;;  %v1249_v41 = vld [vmem:[#allocation8 + $0xfd8] sm:$0xff]  ;;  %v5851_v50 = vcombine.low %v1241_v33, %v1245_v35  ;;  %v6126_v25 = vld [vmem:[#allocation11 + $0xb8] sm:$0xff]  }
 0x322   :  { %4346 = vmatpush1.bf16.msra.mxu0 %v5801_v55  ;;  %v1253_v45 = vld [vmem:[#allocation8 + $0xff8] sm:$0xff]  ;;  %v5858_v51 = vcombine.high %v1248_v5, %v1252_v40  ;;  %v5857_v54 = vcombine.low %v1248_v5, %v1252_v40  ;;  %v6099_v60 = vld [vmem:[#allocation11 + $0x48] sm:$0xff]   ;;  %v6127_v26 = vld [vmem:[#allocation11 + $0x140] sm:$0xff]  }
 0x323   :  { %4518 = vmatpush1.bf16.msra.mxu1 %v5803_v56  ;;  %4347 = vmatprep.subr.bf16.mxu0 %v5810_v44  ;;  %v5860_v52 = vcombine.high %v1249_v41, %v1253_v45  ;;  %v5859_v55 = vcombine.low %v1249_v41, %v1253_v45  ;;  %v6095_v56 = vld [vmem:[#allocation11 + $0x40] sm:$0xff]   ;;  %v6100_v62 = vld [vmem:[#allocation11 + $0xc8] sm:$0xff]   ;;  %v6106_v3 = vld [vmem:[#allocation11 + $0x90] sm:$0xff]  }
 0x324   :  { %4519 = vmatprep.subr.bf16.mxu1 %v5812_v58  ;;  %v6096_v44 = vld [vmem:[#allocation11 + $0xc0] sm:$0xff]   ;;  %v6101_v16 = vld [vmem:[#allocation11 + $0x8] sm:$0xff]   ;;  %v6119_v12 = vld [vmem:[#allocation11 + $0x70] sm:$0xff]  }
 0x325   :  { %v6097_v58 = vld [vmem:[#allocation11] sm:$0xff]   ;;  %v6117_v11 = vld [vmem:[#allocation11 + $0x28] sm:$0xff]   ;;  %v6120_v13 = vld [vmem:[#allocation11 + $0xf0] sm:$0xff]  }
 0x326   :  { %4348 = vmatpush1.bf16.msra.mxu0 %v5809_v1  ;;  %v6102_v1 = vld [vmem:[#allocation11 + $0x88] sm:$0xff]   ;;  %v6128_v27 = vld [vmem:[#allocation11 + $0x1c0] sm:$0xff]   ;;  %v6135_v33 = vld [vmem:[#allocation11 + $0x150] sm:$0xff]  }
 0x327   :  { %4520 = vmatpush1.bf16.msra.mxu1 %v5811_v63  ;;  %4349 = vmatprep.subr.bf16.mxu0 %v5818_v2  ;;  %v6103_v63 = vld [vmem:[#allocation11 + $0x50] sm:$0xff]   ;;  %v6118_v23 = vld [vmem:[#allocation11 + $0xa8] sm:$0xff]   ;;  %v6143_v5 = vld [vmem:[#allocation11 + $0x160] sm:$0xff]  }
 0x328   :  { %4521 = vmatprep.subr.bf16.mxu1 %v5820_v21  ;;  %v6104_v2 = vld [vmem:[#allocation11 + $0xd0] sm:$0xff]   ;;  %v6133_v42 = vld [vmem:[#allocation11 + $0x108] sm:$0xff]   ;;  %v6144_v40 = vld [vmem:[#allocation11 + $0x1e0] sm:$0xff]  }
 0x329   :  { %v6105_v21 = vld [vmem:[#allocation11 + $0x10] sm:$0xff]   ;;  %v6134_v32 = vld [vmem:[#allocation11 + $0x188] sm:$0xff]   ;;  %v6145_v41 = vld [vmem:[#allocation11 + $0x120] sm:$0xff]  }
 0x32a   :  { %4350 = vmatpush1.bf16.msra.mxu0 %v5817_v17  ;;  %v6112_v17 = vld [vmem:[#allocation11 + $0xe0] sm:$0xff]   ;;  %v6136_v35 = vld [vmem:[#allocation11 + $0x1d0] sm:$0xff]  }
 0x32b   :  { %4522 = vmatpush1.bf16.msra.mxu1 %v5819_v18  ;;  %4351 = vmatprep.subr.bf16.mxu0 %v5826_v9  ;;  %v6114_v18 = vld [vmem:[#allocation11 + $0xa0] sm:$0xff]   ;;  %v6115_v9 = vld [vmem:[#allocation11 + $0x68] sm:$0xff]  }
 0x32c   :  { %4523 = vmatprep.subr.bf16.mxu1 %v5828_v10  ;;  %v6116_v10 = vld [vmem:[#allocation11 + $0xe8] sm:$0xff]   ;;  %v6146_v45 = vld [vmem:[#allocation11 + $0x1a0] sm:$0xff]  }
 0x32e   :  { %4352 = vmatpush1.bf16.msra.mxu0 %v5825_v14  ;;  %v6121_v14 = vld [vmem:[#allocation11 + $0x30] sm:$0xff]  }
 0x32f   :  { %4524 = vmatpush1.bf16.msra.mxu1 %v5827_v19  ;;  %4353 = vmatprep.subr.bf16.mxu0 %v5834_v20  ;;  %v6122_v19 = vld [vmem:[#allocation11 + $0xb0] sm:$0xff]   ;;  %v6123_v20 = vld [vmem:[#allocation11 + $0x78] sm:$0xff]  }
 0x330   :  { %4525 = vmatprep.subr.bf16.mxu1 %v5836_v22  ;;  %v6124_v22 = vld [vmem:[#allocation11 + $0xf8] sm:$0xff]  }
 0x332   :  { %4354 = vmatpush1.bf16.msra.mxu0 %v5833_v28  ;;  %v6129_v28 = vld [vmem:[#allocation11 + $0x100] sm:$0xff]  }
 0x333   :  { %4526 = vmatpush1.bf16.msra.mxu1 %v5835_v30  ;;  %4355 = vmatprep.subr.bf16.mxu0 %v5842_v31  ;;  %v6130_v30 = vld [vmem:[#allocation11 + $0x180] sm:$0xff]   ;;  %v6131_v31 = vld [vmem:[#allocation11 + $0x148] sm:$0xff]  }
 0x334   :  { %4527 = vmatprep.subr.bf16.mxu1 %v5844_v29  ;;  %v6132_v29 = vld [vmem:[#allocation11 + $0x1c8] sm:$0xff]  }
 0x336   :  { %4356 = vmatpush1.bf16.msra.mxu0 %v5841_v36  ;;  %v6137_v36 = vld [vmem:[#allocation11 + $0x110] sm:$0xff]  }
 0x337   :  { %4528 = vmatpush1.bf16.msra.mxu1 %v5843_v37  ;;  %4357 = vmatprep.subr.bf16.mxu0 %v5850_v61  ;;  %v6138_v37 = vld [vmem:[#allocation11 + $0x190] sm:$0xff]   ;;  %v6139_v61 = vld [vmem:[#allocation11 + $0x158] sm:$0xff]  }
 0x338   :  { %4529 = vmatprep.subr.bf16.mxu1 %v5852_v39  ;;  %v6140_v39 = vld [vmem:[#allocation11 + $0x1d8] sm:$0xff]  }
 0x33a   :  { %4358 = vmatpush1.bf16.msra.mxu0 %v5849_v48  ;;  %v6147_v48 = vld [vmem:[#allocation11 + $0x168] sm:$0xff]  }
 0x33b   :  { %4530 = vmatpush1.bf16.msra.mxu1 %v5851_v50  ;;  %4359 = vmatprep.subr.bf16.mxu0 %v5858_v51  ;;  %v6148_v50 = vld [vmem:[#allocation11 + $0x1e8] sm:$0xff]  }
 0x33c   :  { %4531 = vmatprep.subr.bf16.mxu1 %v5860_v52  ;;  %v6149_v51 = vld [vmem:[#allocation11 + $0x128] sm:$0xff]  }
 0x33d   :  { %v6150_v52 = vld [vmem:[#allocation11 + $0x1a8] sm:$0xff]  }
 0x33e   :  { %4360 = vmatpush1.bf16.msra.mxu0 %v5857_v54  ;;  %v6151_v54 = vld [vmem:[#allocation11 + $0x170] sm:$0xff]  }
 0x33f   :  { %4532 = vmatpush1.bf16.msra.mxu1 %v5859_v55  ;;  %5928 = vmatprep.subr.bf16.mxu0 %v6095_v56  ;;  %v6152_v55 = vld [vmem:[#allocation11 + $0x1f0] sm:$0xff]  }
 0x340   :  { %5950 = vmatprep.subr.bf16.mxu1 %v6096_v44  ;;  %v6153_v56 = vld [vmem:[#allocation11 + $0x130] sm:$0xff]  }
 0x341   :  { %4362 = vmatmul.mubr.bf16.vlgmr.msra.gmra.mrb[12].mxu0 %v6575_v57  ;;  %v6154_v44 = vld [vmem:[#allocation11 + $0x1b0] sm:$0xff]  }
 0x342   :  { %4534 = vmatmul.mubr.bf16.vlgmr.msra.gmra.mrb[12].mxu1 %v6575_v57  ;;  %5929 = vmatpush3.bf16.msra.mxu0 %v6097_v58  ;;  %v6108_v57 = vld [vmem:[#allocation11 + $0xd8] sm:$0xff]  }
 0x343   :  { %5119 = vmatprep.mubr.bf16.mxu0 %v6621_v0  ;;  %5951 = vmatpush3.bf16.msra.mxu1 %v6098_v59  ;;  %v6110_v0 = vld [vmem:[#allocation11 + $0x98] sm:$0xff]  }
 0x344   :  { %5160 = vmatprep.mubr.bf16.mxu1 %v6623_v47  ;;  %5930 = vmatprep.subr.bf16.mxu0 %v6099_v60  ;;  %v6113_v47 = vld [vmem:[#allocation11 + $0x20] sm:$0xff]   ;;  %v6155_v58 = vld [vmem:[#allocation11 + $0x178] sm:$0xff]  }
 0x345   :  { %5952 = vmatprep.subr.bf16.mxu1 %v6100_v62  ;;  %v6156_v59 = vld [vmem:[#allocation11 + $0x1f8] sm:$0xff]  }
 0x346   :  { %5931 = vmatpush3.bf16.msra.mxu0 %v6101_v16  ;;  %v6157_v60 = vld [vmem:[#allocation11 + $0x138] sm:$0xff]   ;;  %v1275_v16 = vrot.slane %v6603_v46, %v204_v34 }
 0x347   :  { %5953 = vmatpush3.bf16.msra.mxu1 %v6102_v1  ;;  %5932 = vmatprep.subr.bf16.mxu0 %v6103_v63  ;;  %v6158_v62 = vld [vmem:[#allocation11 + $0x1b8] sm:$0xff]   ;;  %v1283_v1 = vrot.slane %v6603_v46, %v212_v49  ;;  %v1279_v63 = vrot.slane %v6603_v46, %v208_v38 }
 0x348   :  { %5954 = vmatprep.subr.bf16.mxu1 %v6104_v2  ;;  %v1287_v2 = vrot.slane %v6603_v46, %v216_v53 }
 0x34a   :  { %5933 = vmatpush3.bf16.msra.mxu0 %v6105_v21 }
 0x34b   :  { %5955 = vmatpush3.bf16.msra.mxu1 %v6106_v3  ;;  %5934 = vmatprep.subr.bf16.mxu0 %v6107_v4 }
 0x34c   :  { %5956 = vmatprep.subr.bf16.mxu1 %v6108_v57 }
 0x34e   :  { %5935 = vmatpush3.bf16.msra.mxu0 %v6109_v6 }
 0x34f   :  { %5957 = vmatpush3.bf16.msra.mxu1 %v6110_v0  ;;  %5936 = vmatprep.subr.bf16.mxu0 %v6111_v8 }
 0x350   :  { %5958 = vmatprep.subr.bf16.mxu1 %v6112_v17 }
 0x352   :  { %5937 = vmatpush3.bf16.msra.mxu0 %v6113_v47 }
 0x353   :  { %5959 = vmatpush3.bf16.msra.mxu1 %v6114_v18  ;;  %5938 = vmatprep.subr.bf16.mxu0 %v6115_v9 }
 0x354   :  { %5960 = vmatprep.subr.bf16.mxu1 %v6116_v10 }
 0x356   :  { %5939 = vmatpush3.bf16.msra.mxu0 %v6117_v11 }
 0x357   :  { %5961 = vmatpush3.bf16.msra.mxu1 %v6118_v23  ;;  %5940 = vmatprep.subr.bf16.mxu0 %v6119_v12 }
 0x358   :  { %5962 = vmatprep.subr.bf16.mxu1 %v6120_v13 }
 0x35a   :  { %5941 = vmatpush3.bf16.msra.mxu0 %v6121_v14 }
 0x35b   :  { %5963 = vmatpush3.bf16.msra.mxu1 %v6122_v19  ;;  %5942 = vmatprep.subr.bf16.mxu0 %v6123_v20 }
 0x35c   :  { %5964 = vmatprep.subr.bf16.mxu1 %v6124_v22 }
 0x35e   :  { %5943 = vmatpush3.bf16.msra.mxu0 %v6125_v24 }
 0x35f   :  { %5965 = vmatpush3.bf16.msra.mxu1 %v6126_v25  ;;  %5972 = vmatprep.subr.bf16.mxu0 %v6127_v26 }
 0x360   :  { %5994 = vmatprep.subr.bf16.mxu1 %v6128_v27 }
 0x361   :  { %5120 = vmatmul.mubr.bf16.vlgmr.msra.gmra.mrb[16].mxu0 %v6617_v7  ;;  %v6141_v7 = vld [vmem:[#allocation11 + $0x118] sm:$0xff]  }
 0x362   :  { %5161 = vmatmul.mubr.bf16.vlgmr.msra.gmra.mrb[16].mxu1 %v6619_v43  ;;  %5973 = vmatpush3.bf16.msra.mxu0 %v6129_v28  ;;  %v6142_v43 = vld [vmem:[#allocation11 + $0x198] sm:$0xff]   ;;  %v5861_v28 = vld [vmem:[#allocation13] ss:$0 sm:$0xff] }
 0x363   :  { %5995 = vmatpush3.bf16.msra.mxu1 %v6130_v30  ;;  %5974 = vmatprep.subr.bf16.mxu0 %v6131_v31 }
 0x364   :  { %5996 = vmatprep.subr.bf16.mxu1 %v6132_v29 }
 0x366   :  { %5975 = vmatpush3.bf16.msra.mxu0 %v6133_v42 }
 0x367   :  { %5997 = vmatpush3.bf16.msra.mxu1 %v6134_v32  ;;  %5976 = vmatprep.subr.bf16.mxu0 %v6135_v33 }
 0x368   :  { %5998 = vmatprep.subr.bf16.mxu1 %v6136_v35 }
 0x36a   :  { %5977 = vmatpush3.bf16.msra.mxu0 %v6137_v36 }
 0x36b   :  { %5999 = vmatpush3.bf16.msra.mxu1 %v6138_v37  ;;  %5978 = vmatprep.subr.bf16.mxu0 %v6139_v61 }
 0x36c   :  { %6000 = vmatprep.subr.bf16.mxu1 %v6140_v39 }
 0x36e   :  { %5979 = vmatpush3.bf16.msra.mxu0 %v6141_v7 }
 0x36f   :  { %6001 = vmatpush3.bf16.msra.mxu1 %v6142_v43  ;;  %5980 = vmatprep.subr.bf16.mxu0 %v6143_v5 }
 0x370   :  { %6002 = vmatprep.subr.bf16.mxu1 %v6144_v40 }
 0x372   :  { %5981 = vmatpush3.bf16.msra.mxu0 %v6145_v41 }
 0x373   :  { %6003 = vmatpush3.bf16.msra.mxu1 %v6146_v45  ;;  %5982 = vmatprep.subr.bf16.mxu0 %v6147_v48 }
 0x374   :  { %6004 = vmatprep.subr.bf16.mxu1 %v6148_v50 }
 0x376   :  { %5983 = vmatpush3.bf16.msra.mxu0 %v6149_v51 }
 0x377   :  { %6005 = vmatpush3.bf16.msra.mxu1 %v6150_v52  ;;  %5984 = vmatprep.subr.bf16.mxu0 %v6151_v54 }
 0x378   :  { %6006 = vmatprep.subr.bf16.mxu1 %v6152_v55 }
 0x37a   :  { %5985 = vmatpush3.bf16.msra.mxu0 %v6153_v56 }
 0x37b   :  { %6007 = vmatpush3.bf16.msra.mxu1 %v6154_v44  ;;  %5986 = vmatprep.subr.bf16.mxu0 %v6155_v58 }
 0x37c   :  { %6008 = vmatprep.subr.bf16.mxu1 %v6156_v59 }
 0x37e   :  { %5987 = vmatpush3.bf16.msra.mxu0 %v6157_v60 }
 0x37f   :  { %6009 = vmatpush3.bf16.msra.mxu1 %v6158_v62 }
 0x414   :  { %v4363_v21 = vpop.f32.mrb[12].mxu0 }
 0x415   :  { %v6024_v3 = vadd.f32 %v4363_v21, %v1275_v16  ;;  %v4535_v4 = vpop.f32.mrb[12].mxu1  ;;  %v4365_v57 = vpop.f32.mrb[13].mxu0 }
 0x416   :  { %v6028_v6 = vadd.f32 %v4535_v4, %v1283_v1  ;;  %v6025_v0 = vadd.f32 %v4365_v57, %v1279_v63  ;;  %v4537_v8 = vpop.f32.mrb[13].mxu1  ;;  %v4367_v34 = vpop.f32.mrb[14].mxu0 }
 0x417   :  { %v6029_v17 = vadd.f32 %v4537_v8, %v1287_v2  ;;  %v6026_v47 = vadd.f32 %v4367_v34, %v1275_v16  ;;  %v4539_v18 = vpop.f32.mrb[14].mxu1  ;;  %v4369_v49 = vpop.f32.mrb[15].mxu0  ;;  %v4548_v38 = vmax.f32 %v6024_v3, 0.0 }
 0x418   :  { %v6030_v9 = vadd.f32 %v4539_v18, %v1283_v1  ;;  %v6027_v10 = vadd.f32 %v4369_v49, %v1279_v63  ;;  %v4541_v11 = vpop.f32.mrb[15].mxu1  ;;  %v4550_v12 = vmax.f32 %v6028_v6, 0.0  ;;  %v4549_v53 = vmax.f32 %v6025_v0, 0.0 }
 0x419   :  { %v4556_v23 = vmax.f32 %v6026_v47, 0.0  ;;  %v6031_v15 = vadd.f32 %v4541_v11, %v1287_v2  ;;  %v4551_v14 = vmax.f32 %v6029_v17, 0.0 }
 0x41a   :  { %v4558_v46 = vmax.f32 %v6030_v9, 0.0  ;;  %v4557_v13 = vmax.f32 %v6027_v10, 0.0 }
 0x41b   :  { %v4564_v19 = vpack.c.bf16 %v4556_v23, %v4548_v38  ;;  %v4559_v20 = vmax.f32 %v6031_v15, 0.0 }
 0x41c   :  { %v4566_v22 = vpack.c.bf16 %v4558_v46, %v4550_v12  ;;  %v4565_v24 = vpack.c.bf16 %v4557_v13, %v4549_v53 }
 0x41d   :  { %v4567_v25 = vpack.c.bf16 %v4559_v20, %v4551_v14 }
 0x41e   :  { %5201 = vmatprep.mubr.bf16.mxu0 %v4565_v24 }
 0x41f   :  { %5242 = vmatprep.mubr.bf16.mxu1 %v4567_v25  ;;  %5202 = vmatmul.mubr.bf16.vlgmr.msra.gmra.mrb[20].mxu0 %v4564_v19 }
 0x420   :  { %5243 = vmatmul.mubr.bf16.vlgmr.msra.gmra.mrb[20].mxu1 %v4566_v22 }
 0x434   :  { %v5944_v26 = vpop.f32.mrb[16].mxu0 }
 0x435   :  { %v5966_v27 = vpop.f32.mrb[16].mxu1  ;;  %v5945_v30 = vpop.f32.mrb[17].mxu0 }
 0x436   :  { %v5946_v31 = vadd.f32 %v5945_v30, %v5944_v26  ;;  %v5967_v29 = vpop.f32.mrb[17].mxu1  ;;  %v5947_v42 = vpop.f32.mrb[18].mxu0 }
 0x437   :  { %v5968_v32 = vadd.f32 %v5967_v29, %v5966_v27  ;;  %v5969_v33 = vpop.f32.mrb[18].mxu1  ;;  %v5948_v35 = vpop.f32.mrb[19].mxu0 }
 0x438   :  { %v5122_v36 = vadd.f32 %v5946_v31, %v5861_v28  ;;  %v5949_v37 = vadd.f32 %v5948_v35, %v5947_v42  ;;  %v5970_v61 = vpop.f32.mrb[19].mxu1 }
 0x439   :  { %v5971_v39 = vadd.f32 %v5970_v61, %v5969_v33 }
 0x43a   :  { %v5163_v7 = vadd.f32 %v5968_v32, %v5122_v36  ;;  %v5125_v43 = vadd.f32 %v5949_v37, %v5861_v28 }
 0x43c   :  { %v5166_v5 = vadd.f32 %v5971_v39, %v5125_v43 }
 0x4f2   :  { %v5988_v40 = vpop.f32.mrb[20].mxu0 }
 0x4f3   :  { %v6010_v41 = vpop.f32.mrb[20].mxu1  ;;  %v5989_v45 = vpop.f32.mrb[21].mxu0 }
 0x4f4   :  { %v5990_v48 = vadd.f32 %v5989_v45, %v5988_v40  ;;  %v6011_v50 = vpop.f32.mrb[21].mxu1  ;;  %v5991_v51 = vpop.f32.mrb[22].mxu0 }
 0x4f5   :  { %v6012_v52 = vadd.f32 %v6011_v50, %v6010_v41  ;;  %v6013_v54 = vpop.f32.mrb[22].mxu1  ;;  %v5992_v55 = vpop.f32.mrb[23].mxu0 }
 0x4f6   :  { %v5204_v56 = vadd.f32 %v5990_v48, %v5163_v7  ;;  %v5993_v44 = vadd.f32 %v5992_v55, %v5991_v51  ;;  %v6014_v58 = vpop.f32.mrb[23].mxu1 }
 0x4f7   :  { %v6015_v59 = vadd.f32 %v6014_v58, %v6013_v54 }
 0x4f8   :  { %v5245_v60 = vadd.f32 %v6012_v52, %v5204_v56  ;;  %v5207_v62 = vadd.f32 %v5993_v44, %v5166_v5 }
 0x4fa   :  { %v5926_v16 = vmul.f32 -1.442695, %v5245_v60  ;;  %v5248_v1 = vadd.f32 %v6015_v59, %v5207_v62 }
 0x4fc   :  { %6159 = vpow2.f32 %v5926_v16  ;;  %v5927_v63 = vmul.f32 -1.442695, %v5248_v1 }
 0x4fe   :  { %6161 = vpow2.f32 %v5927_v63 }
 0x506   :  { %v6160_v2 = vpop.eup %6159 }
 0x507   :  { %v5257_v21 = vadd.f32 1.0, %v6160_v2 }
 0x508   :  { %v6162_v3 = vpop.eup %6161 }
 0x509   :  { %6163 = vrcp.f32 %v5257_v21  ;;  %v5258_v4 = vadd.f32 1.0, %v6162_v3 }
 0x50b   :  { %6165 = vrcp.f32 %v5258_v4 }
 0x513   :  { %v6164_v57 = vpop.eup %6163 }
 0x514   :  { %5263 = vst [vmem:[#allocation14] sm:$0xff] %v6164_v57 }
 0x515   :  { %v6166_v6 = vpop.eup %6165 }
 0x516   :  { %5264 = vst [vmem:[#allocation14 + $0x8] sm:$0xff] %v6166_v6 }
 0x517   :  { %6332 = shalt.err (!%p6329_p4)
}
 0x518   :  { %s6333_s17 = scalar_lea.hbm %s6665_s7, 256 }
 0x519   :  { %p6334_p5 = scmp.ne.s32.totalorder %s6665_s7, %s6333_s17  ;;  %p6337_p6 = scmp.lt.u32.totalorder %s6333_s17, %s6665_s7 }
 0x51b   :  { %p6339_p7 = pnand %p6337_p6, %p6334_p5 }
 0x51d   :  { %6342 = shalt.err (!%p6339_p7)
}
 0x51e   :  { %5276 = dma.vmem_to_hbm [thread:$0]  %s5271_s12, 256, %s6665_s7, [#allocation4], %s6361_s5, %s6361_s5, %s6362_s18  }
 0x51f   :  { %6351 = dma.done.wait [#allocation4], 256  }
 0x520   :  { %6352 = vsyncadd [#allocation4], 4294967040 }
 0x521   :  { %5280 = vsyncpa [#allocation3], 1 }
 0x522   :  { %5281 = vsyncpa [#allocation6], 1 }
 0x523   :  { %5282 = vsyncpa [#allocation9], 1 }
 0x524   :  { %5283 = vsyncpa [#allocation12], 1 }
 0x525   :  { %5284 = vsyncpa [#allocation4], 1 }

</bundles_post_ra>
